<compile_context>
chip_gen: v7x
topology: tpu7x:2x2x1
jax: 0.10.0
libtpu: 0.0.40
codegen_flags: <defaults>
</compile_context>

<pallas_src>
import jax
import jax.numpy as jnp
import numpy as np
from jax.experimental import pallas as pl
from jax.experimental.pallas import tpu as pltpu


# ----------------------------------------------------------------------------
# The single fused kernel (whole batch, whole network, one invocation)
# ----------------------------------------------------------------------------
def _resnet_mod_kernel(
    # inputs
    x_ref,                      # (36, 64)   bf16  H-padded, batch-stacked input
    g1, g2, g3, g4, g5,         # grouped banded conv weights (bf16)
    gp1, selp, sel2,            # bf16 0/1 pooling-gather / row-select matrices
    sh,                         # (16, 256)  f32   consolidated BN shifts + fc bias
    fcw,                        # (128, 128) bf16  zero-padded classifier weight
    # output
    out_ref,                    # (1, num_classes) f32 logits
    # scratch: f32 activation buffers, batch-stacked with per-image H pad rows
    p1, p2, p3, p4, p5, p6, p7, p8, p9,
):
    f32, bf16 = jnp.float32, jnp.bfloat16

    def zrows(buf, lo, hi):
        buf[lo:hi, :] = jnp.zeros((hi - lo, buf.shape[1]), buf.dtype)

    # Zero only the H-pad / K-pad rows, once (interiors are always written
    # before being read; no per-grid-step re-zeroing since grid == ()).
    zrows(p1, 0, 1); zrows(p1, 35, 50)
    zrows(p2, 0, 1); zrows(p2, 19, 20)
    zrows(p3, 0, 1); zrows(p3, 19, 20)
    zrows(p4, 0, 1); zrows(p4, 19, 34)
    zrows(p5, 0, 1); zrows(p5, 11, 12)
    zrows(p6, 0, 1); zrows(p6, 11, 12)
    zrows(p7, 0, 1); zrows(p7, 11, 12)
    zrows(p8, 0, 1); zrows(p8, 11, 12)
    zrows(p9, 0, 1); zrows(p9, 11, 12)

    def conv3(src, nrows, b0, b1, b2):
        """3x3 conv (stride-1 in H) over a batch-stacked, H-padded buffer as
        three banded GEMMs (one per H-tap).  W taps / W stride / W padding and
        the eval-mode BN scale are folded into the band matrices.  bf16
        operands -> f32 accumulation on the MXU."""
        a = jnp.dot(src[0:nrows, :].astype(bf16), b0, preferred_element_type=f32)
        a = a + jnp.dot(src[1:nrows + 1, :].astype(bf16), b1,
                        preferred_element_type=f32)
        a = a + jnp.dot(src[2:nrows + 2, :].astype(bf16), b2,
                        preferred_element_type=f32)
        return a

    def store_conv(buf, val, hh):
        """Store a stride-1 conv result (2*hh+2 rows: img0 | 2 garbage | img1);
        the two garbage rows land exactly on the middle pad rows and are
        re-zeroed so the next conv sees clean zero padding."""
        buf[1:2 * hh + 3, :] = val
        zrows(buf, hh + 1, hh + 3)

    # ---------------- first_part: conv1 + bn1 + relu -------------------------
    y = jnp.maximum(conv3(x_ref, 34, g1[0], g1[1], g1[2]) + sh[0:1, 0:128], 0.0)
    store_conv(p1, y, 16)                                  # 16x16x8 per image

    # ---------------- first_part: MaxPool2d(3, stride=2, padding=1) ----------
    # Separable: H-max over contiguous row windows, stride-2 row pick for both
    # images with one small bf16 0/1 matmul (its two all-zero rows land exactly
    # on p2's middle pad rows), W-max via three exact 0/1 gather matmuls on the
    # packed (w, c) lanes.  Zero padding is valid because inputs are post-ReLU.
    hmax = jnp.maximum(jnp.maximum(p1[0:48, :], p1[1:49, :]), p1[2:50, :])
    rb = jnp.dot(selp[...], hmax.astype(bf16),
                 preferred_element_type=f32).astype(bf16)            # (18, 128)
    wmax = jnp.maximum(
        jnp.maximum(jnp.dot(rb, gp1[0], preferred_element_type=f32),
                    jnp.dot(rb, gp1[1], preferred_element_type=f32)),
        jnp.dot(rb, gp1[2], preferred_element_type=f32))             # (18, 64)
    p2[1:19, :] = wmax                                     # 8x8x8 per image
    zrows(p2, 9, 11)                                       # middle pads (safety)

    # ---------------- first_part: layer1 (BasicBlock 8->8, stride 1) ---------
    a1 = jnp.maximum(conv3(p2, 18, g2[0], g2[1], g2[2]) + sh[1:2, 0:64], 0.0)
    store_conv(p3, a1, 8)
    o1 = conv3(p3, 18, g2[3], g2[4], g2[5]) + sh[2:3, 0:64] + p2[1:19, :]  # +id (f32)
    store_conv(p4, jnp.maximum(o1, 0.0), 8)
    # TODO(synk): x.register_hook(activations_hook) / get_activations_gradient
    #             are autograd hooks with no forward-pass Pallas equivalent.

    # ---------------- second_part: layer2 (BasicBlock 8->16, stride 2) -------
    c2 = conv3(p4, 32, g2[6], g2[7], g2[8])                # stride-1 H rows (K-padded)
    a2 = jnp.maximum(jnp.dot(sel2[...], c2.astype(bf16),   # H stride-2 row pick,
                             preferred_element_type=f32)   # rows pre-aligned to p5
                     + sh[3:4, 0:64], 0.0)                 # (10, 64)
    store_conv(p5, a2, 4)                                  # 4x4x16 per image
    idr = jnp.dot(sel2[...], p4[1:33, :].astype(bf16),
                  preferred_element_type=f32)              # 1x1 s2 row pick (exact)
    ident = jnp.dot(idr.astype(bf16), g2[9],
                    preferred_element_type=f32) + sh[4:5, 0:64]      # downsample+bn
    o2 = conv3(p5, 10, g2[10], g2[11], g2[12]) + sh[5:6, 0:64] + ident
    store_conv(p6, jnp.maximum(o2, 0.0), 4)

    # ---------------- second_part: layer3 (BasicBlock 16->32, stride 1) ------
    a3 = jnp.maximum(conv3(p6, 10, g1[3], g1[4], g1[5]) + sh[6:7, 0:128], 0.0)
    store_conv(p7, a3, 4)                                  # 4x4x32 per image
    id3 = jnp.dot(p6[1:11, :].astype(bf16), g1[6],
                  preferred_element_type=f32) + sh[7:8, 0:128]
    o3 = conv3(p7, 10, g3[0], g3[1], g3[2]) + sh[8:9, 0:128] + id3
    store_conv(p8, jnp.maximum(o3, 0.0), 4)

    # ---------------- second_part: layer4 (BasicBlock 32->64, stride 1) ------
    a4 = jnp.maximum(conv3(p8, 10, g4[0], g4[1], g4[2]) + sh[9:10, 0:256], 0.0)
    store_conv(p9, a4, 4)                                  # 4x4x64 per image
    id4 = jnp.dot(p8[1:11, :].astype(bf16), g4[3],
                  preferred_element_type=f32) + sh[10:11, 0:256]
    feat = jnp.maximum(conv3(p9, 10, g5[0], g5[1], g5[2])
                       + sh[11:12, 0:256] + id4, 0.0)      # (10, 256)

    # ---------------- max_pool: MaxPool2d(kernel_size=4, stride=1) -----------
    # 4x4 window over a 4x4 map == per-image global max.  W direction: max of
    # the four packed 64-lane blocks (no gather matmuls, no weight bytes);
    # H direction: sublane max over each image's 4 valid rows.
    wcol = jnp.maximum(jnp.maximum(feat[:, 0:64], feat[:, 64:128]),
                       jnp.maximum(feat[:, 128:192], feat[:, 192:256]))  # (10,64)
    pool0 = jnp.max(wcol[0:4, :], axis=0, keepdims=True)   # image 0 (1, 64)
    pool1 = jnp.max(wcol[6:10, :], axis=0, keepdims=True)  # image 1 (1, 64)

    # ---------------- classifier: x.view((1, -1)) @ W + b --------------------
    # view((1, -1)) folds the batch into the FC input, so the logits are
    # pooled_0 @ W[0:64] + pooled_1 @ W[64:128] + b, all computed in-kernel.
    logits = (jnp.dot(pool0.astype(bf16), fcw[0:64, :],
                      preferred_element_type=f32)
              + jnp.dot(pool1.astype(bf16), fcw[64:128, :],
                        preferred_element_type=f32)
              + sh[12:13, 0:128])
    out_ref[...] = logits[:, 0:out_ref.shape[1]]


# ----------------------------------------------------------------------------
# Host-side parameter packing (pure one-time weight preprocessing)
# ----------------------------------------------------------------------------
def _conv_bn_raw(key, kh, kw, cin, cout):
    k1, k2, k3, k4, k5 = jax.random.split(key, 5)
    wgt = jax.random.normal(k1, (kh, kw, cin, cout), jnp.float32) * 0.1
    gamma = jax.random.uniform(k2, (cout,), jnp.float32, 0.5, 1.5)
    beta = jax.random.normal(k3, (cout,), jnp.float32) * 0.1
    mean = jax.random.normal(k4, (cout,), jnp.float32) * 0.1
    var = jax.random.uniform(k5, (cout,), jnp.float32, 0.5, 1.5)
    scale = gamma / jnp.sqrt(var + 1e-5)          # eval-mode BN folded exactly
    shift = beta - mean * scale
    return np.asarray(wgt), np.asarray(scale), np.asarray(shift)


def _conv_pack(raw, w_in, w_out, stride, pad):
    """Banded GEMM weights: fold the BN scale into the conv weight and lay the
    W-taps (incl. W-stride and W-padding) out as (KH, w_in*Cin, w_out*Cout)
    matrices.  Lane packing: input lane = w*Cin + c, output lane = j*Cout + o."""
    wgt, scale, shift = raw
    wgt = wgt * scale[None, None, None, :]
    kh_dim, kw_dim, cin, cout = wgt.shape
    bands = np.zeros((kh_dim, w_in * cin, w_out * cout), np.float32)
    for kh in range(kh_dim):
        for j in range(w_out):
            for kw in range(kw_dim):
                wi = j * stride + kw - pad
                if 0 <= wi < w_in:
                    bands[kh, wi * cin:(wi + 1) * cin,
                          j * cout:(j + 1) * cout] = wgt[kh, kw]
    shift_row = np.tile(shift, w_out)                       # (w_out*cout,)
    return bands, shift_row


def _pool_gather(k, stride, pad, w_in, w_out, c):
    """0/1 gather matrices (one per W-tap of a pooling window), packed layout."""
    g = np.zeros((k, w_in * c, w_out * c), np.float32)
    eye = np.eye(c, dtype=np.float32)
    for kw in range(k):
        for j in range(w_out):
            wi = j * stride + kw - pad
            if 0 <= wi < w_in:
                g[kw, wi * c:(wi + 1) * c, j * c:(j + 1) * c] = eye
    return g


def init_params(key, cin=4, num_classes=10, batch=2):
    assert batch == 2, "kernel folds exactly two images into one grid step"
    ks = jax.random.split(key, 16)
    raw = {
        "conv1": _conv_bn_raw(ks[0], 3, 3, cin, 8),
        "l1c1": _conv_bn_raw(ks[1], 3, 3, 8, 8),
        "l1c2": _conv_bn_raw(ks[2], 3, 3, 8, 8),
        "l2c1": _conv_bn_raw(ks[3], 3, 3, 8, 16),
        "l2c2": _conv_bn_raw(ks[4], 3, 3, 16, 16),
        "l2d": _conv_bn_raw(ks[5], 1, 1, 8, 16),
        "l3c1": _conv_bn_raw(ks[6], 3, 3, 16, 32),
        "l3c2": _conv_bn_raw(ks[7], 3, 3, 32, 32),
        "l3d": _conv_bn_raw(ks[8], 1, 1, 16, 32),
        "l4c1": _conv_bn_raw(ks[9], 3, 3, 32, 64),
        "l4c2": _conv_bn_raw(ks[10], 3, 3, 64, 64),
        "l4d": _conv_bn_raw(ks[11], 1, 1, 32, 64),
    }

    c1_b, c1_s = _conv_pack(raw["conv1"], 16, 16, 1, 1)
    l1a_b, l1a_s = _conv_pack(raw["l1c1"], 8, 8, 1, 1)
    l1b_b, l1b_s = _conv_pack(raw["l1c2"], 8, 8, 1, 1)
    l2a_b, l2a_s = _conv_pack(raw["l2c1"], 8, 4, 2, 1)
    l2d_b, l2d_s = _conv_pack(raw["l2d"], 8, 4, 2, 0)
    l2b_b, l2b_s = _conv_pack(raw["l2c2"], 4, 4, 1, 1)
    l3a_b, l3a_s = _conv_pack(raw["l3c1"], 4, 4, 1, 1)
    l3d_b, l3d_s = _conv_pack(raw["l3d"], 4, 4, 1, 0)
    l3b_b, l3b_s = _conv_pack(raw["l3c2"], 4, 4, 1, 1)
    l4a_b, l4a_s = _conv_pack(raw["l4c1"], 4, 4, 1, 1)
    l4d_b, l4d_s = _conv_pack(raw["l4d"], 4, 4, 1, 0)
    l4b_b, l4b_s = _conv_pack(raw["l4c2"], 4, 4, 1, 1)

    # Same-shaped band tensors grouped so the kernel prologue issues ~11 DMAs
    # instead of ~29.
    g1 = np.concatenate([c1_b, l3a_b, l3d_b], axis=0)               # (7, 64, 128)
    g2 = np.concatenate([l1a_b, l1b_b, l2a_b, l2d_b, l2b_b], axis=0)  # (13, 64, 64)
    g3 = l3b_b                                                       # (3, 128, 128)
    g4 = np.concatenate([l4a_b, l4d_b], axis=0)                      # (4, 128, 256)
    g5 = l4b_b                                                       # (3, 256, 256)

    gp1 = _pool_gather(3, 2, 1, 16, 8, 8)                            # (3, 128, 64)

    # Batched 0/1 H-selectors for the stacked per-image-padded row layout
    # (all-zero rows land on the destination buffers' middle pad rows).
    selp = np.zeros((18, 48), np.float32)      # maxpool(3,s2,p1) stride-2 row pick
    for i in range(8):
        selp[i, 2 * i] = 1.0                   # image 0 windows at rows 0,2,...,14
        selp[10 + i, 18 + 2 * i] = 1.0         # image 1 windows at rows 18,...,32
    sel2 = np.zeros((10, 32), np.float32)      # layer2 H-stride-2 row pick
    for i in range(4):
        sel2[i, 2 * i] = 1.0
        sel2[6 + i, 10 + 2 * i] = 1.0

    # Consolidated per-channel BN shifts + FC bias (one f32 DMA).
    shifts = np.zeros((16, 256), np.float32)
    for row, vec in enumerate((c1_s, l1a_s, l1b_s, l2a_s, l2d_s, l2b_s,
                               l3a_s, l3d_s, l3b_s, l4a_s, l4d_s, l4b_s)):
        shifts[row, :vec.shape[0]] = vec

    # classifier: x.view((1, -1)) folds the batch, so fc_in = batch * 64.
    fc_in = batch * 64
    wfc = np.asarray(jax.random.normal(ks[12], (fc_in, num_classes),
                                       jnp.float32)) * 0.05
    bfc = np.asarray(jax.random.normal(ks[13], (num_classes,), jnp.float32)) * 0.01
    fc_w = np.zeros((fc_in, 128), np.float32)     # lane-dense padded FC weight
    fc_w[:, :num_classes] = wfc
    shifts[12, :num_classes] = bfc

    bf = jnp.bfloat16
    return {
        "g1": jnp.asarray(g1, bf), "g2": jnp.asarray(g2, bf),
        "g3": jnp.asarray(g3, bf), "g4": jnp.asarray(g4, bf),
        "g5": jnp.asarray(g5, bf),
        "gp1": jnp.asarray(gp1, bf),
        "selp": jnp.asarray(selp, bf), "sel2": jnp.asarray(sel2, bf),
        "shifts": jnp.asarray(shifts, jnp.float32),
        "fc_w": jnp.asarray(fc_w, bf),
    }


# ----------------------------------------------------------------------------
# Wrapper: one pallas_call, no grid, whole forward pass fused
# ----------------------------------------------------------------------------
_WEIGHT_ORDER = ("g1", "g2", "g3", "g4", "g5",
                 "gp1", "selp", "sel2", "shifts", "fc_w")


def resnet_mod_forward(x_nchw, params, num_classes=10):
    n, c, h, w = x_nchw.shape                       # (2, 4, 16, 16)
    assert (n, h, w) == (2, 16, 16), "kernel is specialized to batch=2, 16x16"

    # Input layout plumbing only (one tiny fused XLA op, no intermediate HBM
    # traffic): NCHW -> NHWC -> pack (w, c) onto lanes -> per-image H zero-pad
    # -> stack both images along sublanes -> bf16.
    xp = jnp.transpose(x_nchw, (0, 2, 3, 1)).astype(jnp.float32).reshape(n, h, w * c)
    xp = jnp.pad(xp, ((0, 0), (1, 1), (0, 0))).reshape(n * (h + 2), w * c)
    xp = xp.astype(jnp.bfloat16)

    ops = [params[k] for k in _WEIGHT_ORDER]
    vmem = pltpu.MemorySpace.VMEM

    return pl.pallas_call(
        _resnet_mod_kernel,
        out_shape=jax.ShapeDtypeStruct((1, num_classes), jnp.float32),
        in_specs=[pl.BlockSpec(memory_space=vmem)] * (1 + len(ops)),
        out_specs=pl.BlockSpec(memory_space=vmem),
        scratch_shapes=[
            pltpu.VMEM((50, 128), jnp.float32),   # p1 conv1 out (16x16x8, padded)
            pltpu.VMEM((20, 64), jnp.float32),    # p2 pool1     (8x8x8)
            pltpu.VMEM((20, 64), jnp.float32),    # p3 l1 conv1  (8x8x8)
            pltpu.VMEM((34, 64), jnp.float32),    # p4 l1 out    (8x8x8, K-padded)
            pltpu.VMEM((12, 64), jnp.float32),    # p5 l2 conv1  (4x4x16)
            pltpu.VMEM((12, 64), jnp.float32),    # p6 l2 out    (4x4x16)
            pltpu.VMEM((12, 128), jnp.float32),   # p7 l3 conv1  (4x4x32)
            pltpu.VMEM((12, 128), jnp.float32),   # p8 l3 out    (4x4x32)
            pltpu.VMEM((12, 256), jnp.float32),   # p9 l4 conv1  (4x4x64)
        ],
        cost_estimate=pl.CostEstimate(flops=13_200_000, transcendentals=0,
                                      bytes_accessed=1_150_000),
    )(xp, *ops)


if __name__ == "__main__":
    key = jax.random.PRNGKey(0)
    kx, kp = jax.random.split(key)
    batch, cin, hw = 2, 4, 16
    x = jax.random.normal(kx, (batch, cin, hw, hw), jnp.float32)
    params = init_params(kp, cin=cin, num_classes=10, batch=batch)

    fwd = jax.jit(resnet_mod_forward)
    out = fwd(x, params)
    jax.block_until_ready(out)
    assert out.shape == (1, 10), out.shape
    print("KERNEL_OK")
</pallas_src>

<mosaic_0001>
module attributes {stable_mosaic.version = 11 : i64} {
  func.func @_resnet_mod_kernel(%arg0: memref<36x64xbf16, #tpu.memory_space<vmem>>, %arg1: memref<7x64x128xbf16, #tpu.memory_space<vmem>>, %arg2: memref<13x64x64xbf16, #tpu.memory_space<vmem>>, %arg3: memref<3x128x128xbf16, #tpu.memory_space<vmem>>, %arg4: memref<4x128x256xbf16, #tpu.memory_space<vmem>>, %arg5: memref<3x256x256xbf16, #tpu.memory_space<vmem>>, %arg6: memref<3x128x64xbf16, #tpu.memory_space<vmem>>, %arg7: memref<18x48xbf16, #tpu.memory_space<vmem>>, %arg8: memref<10x32xbf16, #tpu.memory_space<vmem>>, %arg9: memref<16x256xf32, #tpu.memory_space<vmem>>, %arg10: memref<128x128xbf16, #tpu.memory_space<vmem>>, %arg11: memref<1x10xf32, #tpu.memory_space<vmem>>, %arg12: memref<50x128xf32, #tpu.memory_space<vmem>>, %arg13: memref<20x64xf32, #tpu.memory_space<vmem>>, %arg14: memref<20x64xf32, #tpu.memory_space<vmem>>, %arg15: memref<34x64xf32, #tpu.memory_space<vmem>>, %arg16: memref<12x64xf32, #tpu.memory_space<vmem>>, %arg17: memref<12x64xf32, #tpu.memory_space<vmem>>, %arg18: memref<12x128xf32, #tpu.memory_space<vmem>>, %arg19: memref<12x128xf32, #tpu.memory_space<vmem>>, %arg20: memref<12x256xf32, #tpu.memory_space<vmem>>) attributes {dimension_semantics = [], scalar_prefetch = 0 : i64, scratch_operands = 9 : i64, tpu.core_type = #tpu.core_type<tc>} {
    %cst = arith.constant 0.000000e+00 : f32
    %0 = vector.broadcast %cst : f32 to vector<1x128xf32>
    %c0 = arith.constant 0 : index
    %c0_0 = arith.constant 0 : index
    %1 = vector.load %arg12[%c0, %c0_0] : memref<50x128xf32, #tpu.memory_space<vmem>>, vector<1x128xf32>
    tpu.vector_store %arg12[%c0, %c0_0], %0 {strides = array<i32>} : memref<50x128xf32, #tpu.memory_space<vmem>>, vector<1x128xf32>,
    %cst_1 = arith.constant 0.000000e+00 : f32
    %2 = vector.broadcast %cst_1 : f32 to vector<15x128xf32>
    %c35 = arith.constant 35 : index
    %c0_2 = arith.constant 0 : index
    %3 = vector.load %arg12[%c35, %c0_2] : memref<50x128xf32, #tpu.memory_space<vmem>>, vector<15x128xf32>
    tpu.vector_store %arg12[%c35, %c0_2], %2 {strides = array<i32>} : memref<50x128xf32, #tpu.memory_space<vmem>>, vector<15x128xf32>,
    %cst_3 = arith.constant 0.000000e+00 : f32
    %4 = vector.broadcast %cst_3 : f32 to vector<1x64xf32>
    %c0_4 = arith.constant 0 : index
    %c0_5 = arith.constant 0 : index
    %5 = vector.load %arg13[%c0_4, %c0_5] : memref<20x64xf32, #tpu.memory_space<vmem>>, vector<1x64xf32>
    tpu.vector_store %arg13[%c0_4, %c0_5], %4 {strides = array<i32>} : memref<20x64xf32, #tpu.memory_space<vmem>>, vector<1x64xf32>,
    %cst_6 = arith.constant 0.000000e+00 : f32
    %6 = vector.broadcast %cst_6 : f32 to vector<1x64xf32>
    %c19 = arith.constant 19 : index
    %c0_7 = arith.constant 0 : index
    %7 = vector.load %arg13[%c19, %c0_7] : memref<20x64xf32, #tpu.memory_space<vmem>>, vector<1x64xf32>
    tpu.vector_store %arg13[%c19, %c0_7], %6 {strides = array<i32>} : memref<20x64xf32, #tpu.memory_space<vmem>>, vector<1x64xf32>,
    %cst_8 = arith.constant 0.000000e+00 : f32
    %8 = vector.broadcast %cst_8 : f32 to vector<1x64xf32>
    %c0_9 = arith.constant 0 : index
    %c0_10 = arith.constant 0 : index
    %9 = vector.load %arg14[%c0_9, %c0_10] : memref<20x64xf32, #tpu.memory_space<vmem>>, vector<1x64xf32>
    tpu.vector_store %arg14[%c0_9, %c0_10], %8 {strides = array<i32>} : memref<20x64xf32, #tpu.memory_space<vmem>>, vector<1x64xf32>,
    %cst_11 = arith.constant 0.000000e+00 : f32
    %10 = vector.broadcast %cst_11 : f32 to vector<1x64xf32>
    %c19_12 = arith.constant 19 : index
    %c0_13 = arith.constant 0 : index
    %11 = vector.load %arg14[%c19_12, %c0_13] : memref<20x64xf32, #tpu.memory_space<vmem>>, vector<1x64xf32>
    tpu.vector_store %arg14[%c19_12, %c0_13], %10 {strides = array<i32>} : memref<20x64xf32, #tpu.memory_space<vmem>>, vector<1x64xf32>,
    %cst_14 = arith.constant 0.000000e+00 : f32
    %12 = vector.broadcast %cst_14 : f32 to vector<1x64xf32>
    %c0_15 = arith.constant 0 : index
    %c0_16 = arith.constant 0 : index
    %13 = vector.load %arg15[%c0_15, %c0_16] : memref<34x64xf32, #tpu.memory_space<vmem>>, vector<1x64xf32>
    tpu.vector_store %arg15[%c0_15, %c0_16], %12 {strides = array<i32>} : memref<34x64xf32, #tpu.memory_space<vmem>>, vector<1x64xf32>,
    %cst_17 = arith.constant 0.000000e+00 : f32
    %14 = vector.broadcast %cst_17 : f32 to vector<15x64xf32>
    %c19_18 = arith.constant 19 : index
    %c0_19 = arith.constant 0 : index
    %15 = vector.load %arg15[%c19_18, %c0_19] : memref<34x64xf32, #tpu.memory_space<vmem>>, vector<15x64xf32>
    tpu.vector_store %arg15[%c19_18, %c0_19], %14 {strides = array<i32>} : memref<34x64xf32, #tpu.memory_space<vmem>>, vector<15x64xf32>,
    %cst_20 = arith.constant 0.000000e+00 : f32
    %16 = vector.broadcast %cst_20 : f32 to vector<1x64xf32>
    %c0_21 = arith.constant 0 : index
    %c0_22 = arith.constant 0 : index
    %17 = vector.load %arg16[%c0_21, %c0_22] : memref<12x64xf32, #tpu.memory_space<vmem>>, vector<1x64xf32>
    tpu.vector_store %arg16[%c0_21, %c0_22], %16 {strides = array<i32>} : memref<12x64xf32, #tpu.memory_space<vmem>>, vector<1x64xf32>,
    %cst_23 = arith.constant 0.000000e+00 : f32
    %18 = vector.broadcast %cst_23 : f32 to vector<1x64xf32>
    %c11 = arith.constant 11 : index
    %c0_24 = arith.constant 0 : index
    %19 = vector.load %arg16[%c11, %c0_24] : memref<12x64xf32, #tpu.memory_space<vmem>>, vector<1x64xf32>
    tpu.vector_store %arg16[%c11, %c0_24], %18 {strides = array<i32>} : memref<12x64xf32, #tpu.memory_space<vmem>>, vector<1x64xf32>,
    %cst_25 = arith.constant 0.000000e+00 : f32
    %20 = vector.broadcast %cst_25 : f32 to vector<1x64xf32>
    %c0_26 = arith.constant 0 : index
    %c0_27 = arith.constant 0 : index
    %21 = vector.load %arg17[%c0_26, %c0_27] : memref<12x64xf32, #tpu.memory_space<vmem>>, vector<1x64xf32>
    tpu.vector_store %arg17[%c0_26, %c0_27], %20 {strides = array<i32>} : memref<12x64xf32, #tpu.memory_space<vmem>>, vector<1x64xf32>,
    %cst_28 = arith.constant 0.000000e+00 : f32
    %22 = vector.broadcast %cst_28 : f32 to vector<1x64xf32>
    %c11_29 = arith.constant 11 : index
    %c0_30 = arith.constant 0 : index
    %23 = vector.load %arg17[%c11_29, %c0_30] : memref<12x64xf32, #tpu.memory_space<vmem>>, vector<1x64xf32>
    tpu.vector_store %arg17[%c11_29, %c0_30], %22 {strides = array<i32>} : memref<12x64xf32, #tpu.memory_space<vmem>>, vector<1x64xf32>,
    %cst_31 = arith.constant 0.000000e+00 : f32
    %24 = vector.broadcast %cst_31 : f32 to vector<1x128xf32>
    %c0_32 = arith.constant 0 : index
    %c0_33 = arith.constant 0 : index
    %25 = vector.load %arg18[%c0_32, %c0_33] : memref<12x128xf32, #tpu.memory_space<vmem>>, vector<1x128xf32>
    tpu.vector_store %arg18[%c0_32, %c0_33], %24 {strides = array<i32>} : memref<12x128xf32, #tpu.memory_space<vmem>>, vector<1x128xf32>,
    %cst_34 = arith.constant 0.000000e+00 : f32
    %26 = vector.broadcast %cst_34 : f32 to vector<1x128xf32>
    %c11_35 = arith.constant 11 : index
    %c0_36 = arith.constant 0 : index
    %27 = vector.load %arg18[%c11_35, %c0_36] : memref<12x128xf32, #tpu.memory_space<vmem>>, vector<1x128xf32>
    tpu.vector_store %arg18[%c11_35, %c0_36], %26 {strides = array<i32>} : memref<12x128xf32, #tpu.memory_space<vmem>>, vector<1x128xf32>,
    %cst_37 = arith.constant 0.000000e+00 : f32
    %28 = vector.broadcast %cst_37 : f32 to vector<1x128xf32>
    %c0_38 = arith.constant 0 : index
    %c0_39 = arith.constant 0 : index
    %29 = vector.load %arg19[%c0_38, %c0_39] : memref<12x128xf32, #tpu.memory_space<vmem>>, vector<1x128xf32>
    tpu.vector_store %arg19[%c0_38, %c0_39], %28 {strides = array<i32>} : memref<12x128xf32, #tpu.memory_space<vmem>>, vector<1x128xf32>,
    %cst_40 = arith.constant 0.000000e+00 : f32
    %30 = vector.broadcast %cst_40 : f32 to vector<1x128xf32>
    %c11_41 = arith.constant 11 : index
    %c0_42 = arith.constant 0 : index
    %31 = vector.load %arg19[%c11_41, %c0_42] : memref<12x128xf32, #tpu.memory_space<vmem>>, vector<1x128xf32>
    tpu.vector_store %arg19[%c11_41, %c0_42], %30 {strides = array<i32>} : memref<12x128xf32, #tpu.memory_space<vmem>>, vector<1x128xf32>,
    %cst_43 = arith.constant 0.000000e+00 : f32
    %32 = vector.broadcast %cst_43 : f32 to vector<1x256xf32>
    %c0_44 = arith.constant 0 : index
    %c0_45 = arith.constant 0 : index
    %33 = vector.load %arg20[%c0_44, %c0_45] : memref<12x256xf32, #tpu.memory_space<vmem>>, vector<1x256xf32>
    tpu.vector_store %arg20[%c0_44, %c0_45], %32 {strides = array<i32>} : memref<12x256xf32, #tpu.memory_space<vmem>>, vector<1x256xf32>,
    %cst_46 = arith.constant 0.000000e+00 : f32
    %34 = vector.broadcast %cst_46 : f32 to vector<1x256xf32>
    %c11_47 = arith.constant 11 : index
    %c0_48 = arith.constant 0 : index
    %35 = vector.load %arg20[%c11_47, %c0_48] : memref<12x256xf32, #tpu.memory_space<vmem>>, vector<1x256xf32>
    tpu.vector_store %arg20[%c11_47, %c0_48], %34 {strides = array<i32>} : memref<12x256xf32, #tpu.memory_space<vmem>>, vector<1x256xf32>,
    %c0_49 = arith.constant 0 : index
    %c0_50 = arith.constant 0 : index
    %c0_51 = arith.constant 0 : index
    %36 = vector.load %arg1[%c0_49, %c0_50, %c0_51] : memref<7x64x128xbf16, #tpu.memory_space<vmem>>, vector<1x64x128xbf16>
    %37 = vector.shape_cast %36 : vector<1x64x128xbf16> to vector<64x128xbf16>
    %c1 = arith.constant 1 : index
    %c0_52 = arith.constant 0 : index
    %c0_53 = arith.constant 0 : index
    %38 = vector.load %arg1[%c1, %c0_52, %c0_53] : memref<7x64x128xbf16, #tpu.memory_space<vmem>>, vector<1x64x128xbf16>
    %39 = vector.shape_cast %38 : vector<1x64x128xbf16> to vector<64x128xbf16>
    %c2 = arith.constant 2 : index
    %c0_54 = arith.constant 0 : index
    %c0_55 = arith.constant 0 : index
    %40 = vector.load %arg1[%c2, %c0_54, %c0_55] : memref<7x64x128xbf16, #tpu.memory_space<vmem>>, vector<1x64x128xbf16>
    %41 = vector.shape_cast %40 : vector<1x64x128xbf16> to vector<64x128xbf16>
    %c0_56 = arith.constant 0 : index
    %c0_57 = arith.constant 0 : index
    %42 = vector.load %arg0[%c0_56, %c0_57] : memref<36x64xbf16, #tpu.memory_space<vmem>>, vector<34x64xbf16>
    %cst_58 = arith.constant dense<0.000000e+00> : vector<34x128xf32>
    %43 = tpu.matmul %42, %37, %cst_58 {dimension_numbers = #tpu.dot_dimension_numbers<[1], [0], [0], [1], [0, 0, 1, 1], [], []>} : vector<34x64xbf16>, vector<64x128xbf16>, vector<34x128xf32> -> vector<34x128xf32>
    %c1_59 = arith.constant 1 : index
    %c0_60 = arith.constant 0 : index
    %44 = vector.load %arg0[%c1_59, %c0_60] : memref<36x64xbf16, #tpu.memory_space<vmem>>, vector<34x64xbf16>
    %cst_61 = arith.constant dense<0.000000e+00> : vector<34x128xf32>
    %45 = tpu.matmul %44, %39, %cst_61 {dimension_numbers = #tpu.dot_dimension_numbers<[1], [0], [0], [1], [0, 0, 1, 1], [], []>} : vector<34x64xbf16>, vector<64x128xbf16>, vector<34x128xf32> -> vector<34x128xf32>
    %46 = arith.addf %43, %45 : vector<34x128xf32>
    %c2_62 = arith.constant 2 : index
    %c0_63 = arith.constant 0 : index
    %47 = vector.load %arg0[%c2_62, %c0_63] : memref<36x64xbf16, #tpu.memory_space<vmem>>, vector<34x64xbf16>
    %cst_64 = arith.constant dense<0.000000e+00> : vector<34x128xf32>
    %48 = tpu.matmul %47, %41, %cst_64 {dimension_numbers = #tpu.dot_dimension_numbers<[1], [0], [0], [1], [0, 0, 1, 1], [], []>} : vector<34x64xbf16>, vector<64x128xbf16>, vector<34x128xf32> -> vector<34x128xf32>
    %49 = arith.addf %46, %48 : vector<34x128xf32>
    %c0_65 = arith.constant 0 : index
    %c0_66 = arith.constant 0 : index
    %50 = vector.load %arg9[%c0_65, %c0_66] : memref<16x256xf32, #tpu.memory_space<vmem>>, vector<1x128xf32>
    %51 = vector.broadcast %50 : vector<1x128xf32> to vector<34x128xf32>
    %52 = arith.addf %49, %51 : vector<34x128xf32>
    %cst_67 = arith.constant 0.000000e+00 : f32
    %53 = vector.broadcast %cst_67 : f32 to vector<34x128xf32>
    %54 = arith.maximumf %52, %53 : vector<34x128xf32>
    %c1_68 = arith.constant 1 : index
    %c0_69 = arith.constant 0 : index
    %55 = vector.load %arg12[%c1_68, %c0_69] : memref<50x128xf32, #tpu.memory_space<vmem>>, vector<34x128xf32>
    tpu.vector_store %arg12[%c1_68, %c0_69], %54 {strides = array<i32>} : memref<50x128xf32, #tpu.memory_space<vmem>>, vector<34x128xf32>,
    %cst_70 = arith.constant 0.000000e+00 : f32
    %56 = vector.broadcast %cst_70 : f32 to vector<2x128xf32>
    %c17 = arith.constant 17 : index
    %c0_71 = arith.constant 0 : index
    %57 = vector.load %arg12[%c17, %c0_71] : memref<50x128xf32, #tpu.memory_space<vmem>>, vector<2x128xf32>
    tpu.vector_store %arg12[%c17, %c0_71], %56 {strides = array<i32>} : memref<50x128xf32, #tpu.memory_space<vmem>>, vector<2x128xf32>,
    %c0_72 = arith.constant 0 : index
    %c0_73 = arith.constant 0 : index
    %58 = vector.load %arg12[%c0_72, %c0_73] : memref<50x128xf32, #tpu.memory_space<vmem>>, vector<48x128xf32>
    %c1_74 = arith.constant 1 : index
    %c0_75 = arith.constant 0 : index
    %59 = vector.load %arg12[%c1_74, %c0_75] : memref<50x128xf32, #tpu.memory_space<vmem>>, vector<48x128xf32>
    %60 = arith.maximumf %58, %59 : vector<48x128xf32>
    %c2_76 = arith.constant 2 : index
    %c0_77 = arith.constant 0 : index
    %61 = vector.load %arg12[%c2_76, %c0_77] : memref<50x128xf32, #tpu.memory_space<vmem>>, vector<48x128xf32>
    %62 = arith.maximumf %60, %61 : vector<48x128xf32>
    %c0_78 = arith.constant 0 : index
    %c0_79 = arith.constant 0 : index
    %63 = vector.load %arg7[%c0_78, %c0_79] : memref<18x48xbf16, #tpu.memory_space<vmem>>, vector<18x48xbf16>
    %64 = arith.truncf %62 : vector<48x128xf32> to vector<48x128xbf16>
    %cst_80 = arith.constant dense<0.000000e+00> : vector<18x128xf32>
    %65 = tpu.matmul %63, %64, %cst_80 {dimension_numbers = #tpu.dot_dimension_numbers<[1], [0], [0], [1], [0, 0, 1, 1], [], []>} : vector<18x48xbf16>, vector<48x128xbf16>, vector<18x128xf32> -> vector<18x128xf32>
    %66 = arith.truncf %65 : vector<18x128xf32> to vector<18x128xbf16>
    %c0_81 = arith.constant 0 : index
    %c0_82 = arith.constant 0 : index
    %c0_83 = arith.constant 0 : index
    %67 = vector.load %arg6[%c0_81, %c0_82, %c0_83] : memref<3x128x64xbf16, #tpu.memory_space<vmem>>, vector<1x128x64xbf16>
    %68 = vector.shape_cast %67 : vector<1x128x64xbf16> to vector<128x64xbf16>
    %cst_84 = arith.constant dense<0.000000e+00> : vector<18x64xf32>
    %69 = tpu.matmul %66, %68, %cst_84 {dimension_numbers = #tpu.dot_dimension_numbers<[1], [0], [0], [1], [0, 0, 1, 1], [], []>} : vector<18x128xbf16>, vector<128x64xbf16>, vector<18x64xf32> -> vector<18x64xf32>
    %c1_85 = arith.constant 1 : index
    %c0_86 = arith.constant 0 : index
    %c0_87 = arith.constant 0 : index
    %70 = vector.load %arg6[%c1_85, %c0_86, %c0_87] : memref<3x128x64xbf16, #tpu.memory_space<vmem>>, vector<1x128x64xbf16>
    %71 = vector.shape_cast %70 : vector<1x128x64xbf16> to vector<128x64xbf16>
    %cst_88 = arith.constant dense<0.000000e+00> : vector<18x64xf32>
    %72 = tpu.matmul %66, %71, %cst_88 {dimension_numbers = #tpu.dot_dimension_numbers<[1], [0], [0], [1], [0, 0, 1, 1], [], []>} : vector<18x128xbf16>, vector<128x64xbf16>, vector<18x64xf32> -> vector<18x64xf32>
    %73 = arith.maximumf %69, %72 : vector<18x64xf32>
    %c2_89 = arith.constant 2 : index
    %c0_90 = arith.constant 0 : index
    %c0_91 = arith.constant 0 : index
    %74 = vector.load %arg6[%c2_89, %c0_90, %c0_91] : memref<3x128x64xbf16, #tpu.memory_space<vmem>>, vector<1x128x64xbf16>
    %75 = vector.shape_cast %74 : vector<1x128x64xbf16> to vector<128x64xbf16>
    %cst_92 = arith.constant dense<0.000000e+00> : vector<18x64xf32>
    %76 = tpu.matmul %66, %75, %cst_92 {dimension_numbers = #tpu.dot_dimension_numbers<[1], [0], [0], [1], [0, 0, 1, 1], [], []>} : vector<18x128xbf16>, vector<128x64xbf16>, vector<18x64xf32> -> vector<18x64xf32>
    %77 = arith.maximumf %73, %76 : vector<18x64xf32>
    %c1_93 = arith.constant 1 : index
    %c0_94 = arith.constant 0 : index
    %78 = vector.load %arg13[%c1_93, %c0_94] : memref<20x64xf32, #tpu.memory_space<vmem>>, vector<18x64xf32>
    tpu.vector_store %arg13[%c1_93, %c0_94], %77 {strides = array<i32>} : memref<20x64xf32, #tpu.memory_space<vmem>>, vector<18x64xf32>,
    %cst_95 = arith.constant 0.000000e+00 : f32
    %79 = vector.broadcast %cst_95 : f32 to vector<2x64xf32>
    %c9 = arith.constant 9 : index
    %c0_96 = arith.constant 0 : index
    %80 = vector.load %arg13[%c9, %c0_96] : memref<20x64xf32, #tpu.memory_space<vmem>>, vector<2x64xf32>
    tpu.vector_store %arg13[%c9, %c0_96], %79 {strides = array<i32>} : memref<20x64xf32, #tpu.memory_space<vmem>>, vector<2x64xf32>,
    %c0_97 = arith.constant 0 : index
    %c0_98 = arith.constant 0 : index
    %c0_99 = arith.constant 0 : index
    %81 = vector.load %arg2[%c0_97, %c0_98, %c0_99] : memref<13x64x64xbf16, #tpu.memory_space<vmem>>, vector<1x64x64xbf16>
    %82 = vector.shape_cast %81 : vector<1x64x64xbf16> to vector<64x64xbf16>
    %c1_100 = arith.constant 1 : index
    %c0_101 = arith.constant 0 : index
    %c0_102 = arith.constant 0 : index
    %83 = vector.load %arg2[%c1_100, %c0_101, %c0_102] : memref<13x64x64xbf16, #tpu.memory_space<vmem>>, vector<1x64x64xbf16>
    %84 = vector.shape_cast %83 : vector<1x64x64xbf16> to vector<64x64xbf16>
    %c2_103 = arith.constant 2 : index
    %c0_104 = arith.constant 0 : index
    %c0_105 = arith.constant 0 : index
    %85 = vector.load %arg2[%c2_103, %c0_104, %c0_105] : memref<13x64x64xbf16, #tpu.memory_space<vmem>>, vector<1x64x64xbf16>
    %86 = vector.shape_cast %85 : vector<1x64x64xbf16> to vector<64x64xbf16>
    %c0_106 = arith.constant 0 : index
    %c0_107 = arith.constant 0 : index
    %87 = vector.load %arg13[%c0_106, %c0_107] : memref<20x64xf32, #tpu.memory_space<vmem>>, vector<18x64xf32>
    %88 = arith.truncf %87 : vector<18x64xf32> to vector<18x64xbf16>
    %cst_108 = arith.constant dense<0.000000e+00> : vector<18x64xf32>
    %89 = tpu.matmul %88, %82, %cst_108 {dimension_numbers = #tpu.dot_dimension_numbers<[1], [0], [0], [1], [0, 0, 1, 1], [], []>} : vector<18x64xbf16>, vector<64x64xbf16>, vector<18x64xf32> -> vector<18x64xf32>
    %c1_109 = arith.constant 1 : index
    %c0_110 = arith.constant 0 : index
    %90 = vector.load %arg13[%c1_109, %c0_110] : memref<20x64xf32, #tpu.memory_space<vmem>>, vector<18x64xf32>
    %91 = arith.truncf %90 : vector<18x64xf32> to vector<18x64xbf16>
    %cst_111 = arith.constant dense<0.000000e+00> : vector<18x64xf32>
    %92 = tpu.matmul %91, %84, %cst_111 {dimension_numbers = #tpu.dot_dimension_numbers<[1], [0], [0], [1], [0, 0, 1, 1], [], []>} : vector<18x64xbf16>, vector<64x64xbf16>, vector<18x64xf32> -> vector<18x64xf32>
    %93 = arith.addf %89, %92 : vector<18x64xf32>
    %c2_112 = arith.constant 2 : index
    %c0_113 = arith.constant 0 : index
    %94 = vector.load %arg13[%c2_112, %c0_113] : memref<20x64xf32, #tpu.memory_space<vmem>>, vector<18x64xf32>
    %95 = arith.truncf %94 : vector<18x64xf32> to vector<18x64xbf16>
    %cst_114 = arith.constant dense<0.000000e+00> : vector<18x64xf32>
    %96 = tpu.matmul %95, %86, %cst_114 {dimension_numbers = #tpu.dot_dimension_numbers<[1], [0], [0], [1], [0, 0, 1, 1], [], []>} : vector<18x64xbf16>, vector<64x64xbf16>, vector<18x64xf32> -> vector<18x64xf32>
    %97 = arith.addf %93, %96 : vector<18x64xf32>
    %c1_115 = arith.constant 1 : index
    %c0_116 = arith.constant 0 : index
    %98 = vector.load %arg9[%c1_115, %c0_116] : memref<16x256xf32, #tpu.memory_space<vmem>>, vector<1x64xf32>
    %99 = vector.broadcast %98 : vector<1x64xf32> to vector<18x64xf32>
    %100 = arith.addf %97, %99 : vector<18x64xf32>
    %cst_117 = arith.constant 0.000000e+00 : f32
    %101 = vector.broadcast %cst_117 : f32 to vector<18x64xf32>
    %102 = arith.maximumf %100, %101 : vector<18x64xf32>
    %c1_118 = arith.constant 1 : index
    %c0_119 = arith.constant 0 : index
    %103 = vector.load %arg14[%c1_118, %c0_119] : memref<20x64xf32, #tpu.memory_space<vmem>>, vector<18x64xf32>
    tpu.vector_store %arg14[%c1_118, %c0_119], %102 {strides = array<i32>} : memref<20x64xf32, #tpu.memory_space<vmem>>, vector<18x64xf32>,
    %cst_120 = arith.constant 0.000000e+00 : f32
    %104 = vector.broadcast %cst_120 : f32 to vector<2x64xf32>
    %c9_121 = arith.constant 9 : index
    %c0_122 = arith.constant 0 : index
    %105 = vector.load %arg14[%c9_121, %c0_122] : memref<20x64xf32, #tpu.memory_space<vmem>>, vector<2x64xf32>
    tpu.vector_store %arg14[%c9_121, %c0_122], %104 {strides = array<i32>} : memref<20x64xf32, #tpu.memory_space<vmem>>, vector<2x64xf32>,
    %c3 = arith.constant 3 : index
    %c0_123 = arith.constant 0 : index
    %c0_124 = arith.constant 0 : index
    %106 = vector.load %arg2[%c3, %c0_123, %c0_124] : memref<13x64x64xbf16, #tpu.memory_space<vmem>>, vector<1x64x64xbf16>
    %107 = vector.shape_cast %106 : vector<1x64x64xbf16> to vector<64x64xbf16>
    %c4 = arith.constant 4 : index
    %c0_125 = arith.constant 0 : index
    %c0_126 = arith.constant 0 : index
    %108 = vector.load %arg2[%c4, %c0_125, %c0_126] : memref<13x64x64xbf16, #tpu.memory_space<vmem>>, vector<1x64x64xbf16>
    %109 = vector.shape_cast %108 : vector<1x64x64xbf16> to vector<64x64xbf16>
    %c5 = arith.constant 5 : index
    %c0_127 = arith.constant 0 : index
    %c0_128 = arith.constant 0 : index
    %110 = vector.load %arg2[%c5, %c0_127, %c0_128] : memref<13x64x64xbf16, #tpu.memory_space<vmem>>, vector<1x64x64xbf16>
    %111 = vector.shape_cast %110 : vector<1x64x64xbf16> to vector<64x64xbf16>
    %c0_129 = arith.constant 0 : index
    %c0_130 = arith.constant 0 : index
    %112 = vector.load %arg14[%c0_129, %c0_130] : memref<20x64xf32, #tpu.memory_space<vmem>>, vector<18x64xf32>
    %113 = arith.truncf %112 : vector<18x64xf32> to vector<18x64xbf16>
    %cst_131 = arith.constant dense<0.000000e+00> : vector<18x64xf32>
    %114 = tpu.matmul %113, %107, %cst_131 {dimension_numbers = #tpu.dot_dimension_numbers<[1], [0], [0], [1], [0, 0, 1, 1], [], []>} : vector<18x64xbf16>, vector<64x64xbf16>, vector<18x64xf32> -> vector<18x64xf32>
    %c1_132 = arith.constant 1 : index
    %c0_133 = arith.constant 0 : index
    %115 = vector.load %arg14[%c1_132, %c0_133] : memref<20x64xf32, #tpu.memory_space<vmem>>, vector<18x64xf32>
    %116 = arith.truncf %115 : vector<18x64xf32> to vector<18x64xbf16>
    %cst_134 = arith.constant dense<0.000000e+00> : vector<18x64xf32>
    %117 = tpu.matmul %116, %109, %cst_134 {dimension_numbers = #tpu.dot_dimension_numbers<[1], [0], [0], [1], [0, 0, 1, 1], [], []>} : vector<18x64xbf16>, vector<64x64xbf16>, vector<18x64xf32> -> vector<18x64xf32>
    %118 = arith.addf %114, %117 : vector<18x64xf32>
    %c2_135 = arith.constant 2 : index
    %c0_136 = arith.constant 0 : index
    %119 = vector.load %arg14[%c2_135, %c0_136] : memref<20x64xf32, #tpu.memory_space<vmem>>, vector<18x64xf32>
    %120 = arith.truncf %119 : vector<18x64xf32> to vector<18x64xbf16>
    %cst_137 = arith.constant dense<0.000000e+00> : vector<18x64xf32>
    %121 = tpu.matmul %120, %111, %cst_137 {dimension_numbers = #tpu.dot_dimension_numbers<[1], [0], [0], [1], [0, 0, 1, 1], [], []>} : vector<18x64xbf16>, vector<64x64xbf16>, vector<18x64xf32> -> vector<18x64xf32>
    %122 = arith.addf %118, %121 : vector<18x64xf32>
    %c2_138 = arith.constant 2 : index
    %c0_139 = arith.constant 0 : index
    %123 = vector.load %arg9[%c2_138, %c0_139] : memref<16x256xf32, #tpu.memory_space<vmem>>, vector<1x64xf32>
    %124 = vector.broadcast %123 : vector<1x64xf32> to vector<18x64xf32>
    %125 = arith.addf %122, %124 : vector<18x64xf32>
    %c1_140 = arith.constant 1 : index
    %c0_141 = arith.constant 0 : index
    %126 = vector.load %arg13[%c1_140, %c0_141] : memref<20x64xf32, #tpu.memory_space<vmem>>, vector<18x64xf32>
    %127 = arith.addf %125, %126 : vector<18x64xf32>
    %cst_142 = arith.constant 0.000000e+00 : f32
    %128 = vector.broadcast %cst_142 : f32 to vector<18x64xf32>
    %129 = arith.maximumf %127, %128 : vector<18x64xf32>
    %c1_143 = arith.constant 1 : index
    %c0_144 = arith.constant 0 : index
    %130 = vector.load %arg15[%c1_143, %c0_144] : memref<34x64xf32, #tpu.memory_space<vmem>>, vector<18x64xf32>
    tpu.vector_store %arg15[%c1_143, %c0_144], %129 {strides = array<i32>} : memref<34x64xf32, #tpu.memory_space<vmem>>, vector<18x64xf32>,
    %cst_145 = arith.constant 0.000000e+00 : f32
    %131 = vector.broadcast %cst_145 : f32 to vector<2x64xf32>
    %c9_146 = arith.constant 9 : index
    %c0_147 = arith.constant 0 : index
    %132 = vector.load %arg15[%c9_146, %c0_147] : memref<34x64xf32, #tpu.memory_space<vmem>>, vector<2x64xf32>
    tpu.vector_store %arg15[%c9_146, %c0_147], %131 {strides = array<i32>} : memref<34x64xf32, #tpu.memory_space<vmem>>, vector<2x64xf32>,
    %c6 = arith.constant 6 : index
    %c0_148 = arith.constant 0 : index
    %c0_149 = arith.constant 0 : index
    %133 = vector.load %arg2[%c6, %c0_148, %c0_149] : memref<13x64x64xbf16, #tpu.memory_space<vmem>>, vector<1x64x64xbf16>
    %134 = vector.shape_cast %133 : vector<1x64x64xbf16> to vector<64x64xbf16>
    %c7 = arith.constant 7 : index
    %c0_150 = arith.constant 0 : index
    %c0_151 = arith.constant 0 : index
    %135 = vector.load %arg2[%c7, %c0_150, %c0_151] : memref<13x64x64xbf16, #tpu.memory_space<vmem>>, vector<1x64x64xbf16>
    %136 = vector.shape_cast %135 : vector<1x64x64xbf16> to vector<64x64xbf16>
    %c8 = arith.constant 8 : index
    %c0_152 = arith.constant 0 : index
    %c0_153 = arith.constant 0 : index
    %137 = vector.load %arg2[%c8, %c0_152, %c0_153] : memref<13x64x64xbf16, #tpu.memory_space<vmem>>, vector<1x64x64xbf16>
    %138 = vector.shape_cast %137 : vector<1x64x64xbf16> to vector<64x64xbf16>
    %c0_154 = arith.constant 0 : index
    %c0_155 = arith.constant 0 : index
    %139 = vector.load %arg15[%c0_154, %c0_155] : memref<34x64xf32, #tpu.memory_space<vmem>>, vector<32x64xf32>
    %140 = arith.truncf %139 : vector<32x64xf32> to vector<32x64xbf16>
    %cst_156 = arith.constant dense<0.000000e+00> : vector<32x64xf32>
    %141 = tpu.matmul %140, %134, %cst_156 {dimension_numbers = #tpu.dot_dimension_numbers<[1], [0], [0], [1], [0, 0, 1, 1], [], []>} : vector<32x64xbf16>, vector<64x64xbf16>, vector<32x64xf32> -> vector<32x64xf32>
    %c1_157 = arith.constant 1 : index
    %c0_158 = arith.constant 0 : index
    %142 = vector.load %arg15[%c1_157, %c0_158] : memref<34x64xf32, #tpu.memory_space<vmem>>, vector<32x64xf32>
    %143 = arith.truncf %142 : vector<32x64xf32> to vector<32x64xbf16>
    %cst_159 = arith.constant dense<0.000000e+00> : vector<32x64xf32>
    %144 = tpu.matmul %143, %136, %cst_159 {dimension_numbers = #tpu.dot_dimension_numbers<[1], [0], [0], [1], [0, 0, 1, 1], [], []>} : vector<32x64xbf16>, vector<64x64xbf16>, vector<32x64xf32> -> vector<32x64xf32>
    %145 = arith.addf %141, %144 : vector<32x64xf32>
    %c2_160 = arith.constant 2 : index
    %c0_161 = arith.constant 0 : index
    %146 = vector.load %arg15[%c2_160, %c0_161] : memref<34x64xf32, #tpu.memory_space<vmem>>, vector<32x64xf32>
    %147 = arith.truncf %146 : vector<32x64xf32> to vector<32x64xbf16>
    %cst_162 = arith.constant dense<0.000000e+00> : vector<32x64xf32>
    %148 = tpu.matmul %147, %138, %cst_162 {dimension_numbers = #tpu.dot_dimension_numbers<[1], [0], [0], [1], [0, 0, 1, 1], [], []>} : vector<32x64xbf16>, vector<64x64xbf16>, vector<32x64xf32> -> vector<32x64xf32>
    %149 = arith.addf %145, %148 : vector<32x64xf32>
    %c0_163 = arith.constant 0 : index
    %c0_164 = arith.constant 0 : index
    %150 = vector.load %arg8[%c0_163, %c0_164] : memref<10x32xbf16, #tpu.memory_space<vmem>>, vector<10x32xbf16>
    %151 = arith.truncf %149 : vector<32x64xf32> to vector<32x64xbf16>
    %cst_165 = arith.constant dense<0.000000e+00> : vector<10x64xf32>
    %152 = tpu.matmul %150, %151, %cst_165 {dimension_numbers = #tpu.dot_dimension_numbers<[1], [0], [0], [1], [0, 0, 1, 1], [], []>} : vector<10x32xbf16>, vector<32x64xbf16>, vector<10x64xf32> -> vector<10x64xf32>
    %c3_166 = arith.constant 3 : index
    %c0_167 = arith.constant 0 : index
    %153 = vector.load %arg9[%c3_166, %c0_167] : memref<16x256xf32, #tpu.memory_space<vmem>>, vector<1x64xf32>
    %154 = vector.broadcast %153 : vector<1x64xf32> to vector<10x64xf32>
    %155 = arith.addf %152, %154 : vector<10x64xf32>
    %cst_168 = arith.constant 0.000000e+00 : f32
    %156 = vector.broadcast %cst_168 : f32 to vector<10x64xf32>
    %157 = arith.maximumf %155, %156 : vector<10x64xf32>
    %c1_169 = arith.constant 1 : index
    %c0_170 = arith.constant 0 : index
    %158 = vector.load %arg16[%c1_169, %c0_170] : memref<12x64xf32, #tpu.memory_space<vmem>>, vector<10x64xf32>
    tpu.vector_store %arg16[%c1_169, %c0_170], %157 {strides = array<i32>} : memref<12x64xf32, #tpu.memory_space<vmem>>, vector<10x64xf32>,
    %cst_171 = arith.constant 0.000000e+00 : f32
    %159 = vector.broadcast %cst_171 : f32 to vector<2x64xf32>
    %c5_172 = arith.constant 5 : index
    %c0_173 = arith.constant 0 : index
    %160 = vector.load %arg16[%c5_172, %c0_173] : memref<12x64xf32, #tpu.memory_space<vmem>>, vector<2x64xf32>
    tpu.vector_store %arg16[%c5_172, %c0_173], %159 {strides = array<i32>} : memref<12x64xf32, #tpu.memory_space<vmem>>, vector<2x64xf32>,
    %c0_174 = arith.constant 0 : index
    %c0_175 = arith.constant 0 : index
    %161 = vector.load %arg8[%c0_174, %c0_175] : memref<10x32xbf16, #tpu.memory_space<vmem>>, vector<10x32xbf16>
    %c1_176 = arith.constant 1 : index
    %c0_177 = arith.constant 0 : index
    %162 = vector.load %arg15[%c1_176, %c0_177] : memref<34x64xf32, #tpu.memory_space<vmem>>, vector<32x64xf32>
    %163 = arith.truncf %162 : vector<32x64xf32> to vector<32x64xbf16>
    %cst_178 = arith.constant dense<0.000000e+00> : vector<10x64xf32>
    %164 = tpu.matmul %161, %163, %cst_178 {dimension_numbers = #tpu.dot_dimension_numbers<[1], [0], [0], [1], [0, 0, 1, 1], [], []>} : vector<10x32xbf16>, vector<32x64xbf16>, vector<10x64xf32> -> vector<10x64xf32>
    %165 = arith.truncf %164 : vector<10x64xf32> to vector<10x64xbf16>
    %c9_179 = arith.constant 9 : index
    %c0_180 = arith.constant 0 : index
    %c0_181 = arith.constant 0 : index
    %166 = vector.load %arg2[%c9_179, %c0_180, %c0_181] : memref<13x64x64xbf16, #tpu.memory_space<vmem>>, vector<1x64x64xbf16>
    %167 = vector.shape_cast %166 : vector<1x64x64xbf16> to vector<64x64xbf16>
    %cst_182 = arith.constant dense<0.000000e+00> : vector<10x64xf32>
    %168 = tpu.matmul %165, %167, %cst_182 {dimension_numbers = #tpu.dot_dimension_numbers<[1], [0], [0], [1], [0, 0, 1, 1], [], []>} : vector<10x64xbf16>, vector<64x64xbf16>, vector<10x64xf32> -> vector<10x64xf32>
    %c4_183 = arith.constant 4 : index
    %c0_184 = arith.constant 0 : index
    %169 = vector.load %arg9[%c4_183, %c0_184] : memref<16x256xf32, #tpu.memory_space<vmem>>, vector<1x64xf32>
    %170 = vector.broadcast %169 : vector<1x64xf32> to vector<10x64xf32>
    %171 = arith.addf %168, %170 : vector<10x64xf32>
    %c10 = arith.constant 10 : index
    %c0_185 = arith.constant 0 : index
    %c0_186 = arith.constant 0 : index
    %172 = vector.load %arg2[%c10, %c0_185, %c0_186] : memref<13x64x64xbf16, #tpu.memory_space<vmem>>, vector<1x64x64xbf16>
    %173 = vector.shape_cast %172 : vector<1x64x64xbf16> to vector<64x64xbf16>
    %c11_187 = arith.constant 11 : index
    %c0_188 = arith.constant 0 : index
    %c0_189 = arith.constant 0 : index
    %174 = vector.load %arg2[%c11_187, %c0_188, %c0_189] : memref<13x64x64xbf16, #tpu.memory_space<vmem>>, vector<1x64x64xbf16>
    %175 = vector.shape_cast %174 : vector<1x64x64xbf16> to vector<64x64xbf16>
    %c12 = arith.constant 12 : index
    %c0_190 = arith.constant 0 : index
    %c0_191 = arith.constant 0 : index
    %176 = vector.load %arg2[%c12, %c0_190, %c0_191] : memref<13x64x64xbf16, #tpu.memory_space<vmem>>, vector<1x64x64xbf16>
    %177 = vector.shape_cast %176 : vector<1x64x64xbf16> to vector<64x64xbf16>
    %c0_192 = arith.constant 0 : index
    %c0_193 = arith.constant 0 : index
    %178 = vector.load %arg16[%c0_192, %c0_193] : memref<12x64xf32, #tpu.memory_space<vmem>>, vector<10x64xf32>
    %179 = arith.truncf %178 : vector<10x64xf32> to vector<10x64xbf16>
    %cst_194 = arith.constant dense<0.000000e+00> : vector<10x64xf32>
    %180 = tpu.matmul %179, %173, %cst_194 {dimension_numbers = #tpu.dot_dimension_numbers<[1], [0], [0], [1], [0, 0, 1, 1], [], []>} : vector<10x64xbf16>, vector<64x64xbf16>, vector<10x64xf32> -> vector<10x64xf32>
    %c1_195 = arith.constant 1 : index
    %c0_196 = arith.constant 0 : index
    %181 = vector.load %arg16[%c1_195, %c0_196] : memref<12x64xf32, #tpu.memory_space<vmem>>, vector<10x64xf32>
    %182 = arith.truncf %181 : vector<10x64xf32> to vector<10x64xbf16>
    %cst_197 = arith.constant dense<0.000000e+00> : vector<10x64xf32>
    %183 = tpu.matmul %182, %175, %cst_197 {dimension_numbers = #tpu.dot_dimension_numbers<[1], [0], [0], [1], [0, 0, 1, 1], [], []>} : vector<10x64xbf16>, vector<64x64xbf16>, vector<10x64xf32> -> vector<10x64xf32>
    %184 = arith.addf %180, %183 : vector<10x64xf32>
    %c2_198 = arith.constant 2 : index
    %c0_199 = arith.constant 0 : index
    %185 = vector.load %arg16[%c2_198, %c0_199] : memref<12x64xf32, #tpu.memory_space<vmem>>, vector<10x64xf32>
    %186 = arith.truncf %185 : vector<10x64xf32> to vector<10x64xbf16>
    %cst_200 = arith.constant dense<0.000000e+00> : vector<10x64xf32>
    %187 = tpu.matmul %186, %177, %cst_200 {dimension_numbers = #tpu.dot_dimension_numbers<[1], [0], [0], [1], [0, 0, 1, 1], [], []>} : vector<10x64xbf16>, vector<64x64xbf16>, vector<10x64xf32> -> vector<10x64xf32>
    %188 = arith.addf %184, %187 : vector<10x64xf32>
    %c5_201 = arith.constant 5 : index
    %c0_202 = arith.constant 0 : index
    %189 = vector.load %arg9[%c5_201, %c0_202] : memref<16x256xf32, #tpu.memory_space<vmem>>, vector<1x64xf32>
    %190 = vector.broadcast %189 : vector<1x64xf32> to vector<10x64xf32>
    %191 = arith.addf %188, %190 : vector<10x64xf32>
    %192 = arith.addf %191, %171 : vector<10x64xf32>
    %cst_203 = arith.constant 0.000000e+00 : f32
    %193 = vector.broadcast %cst_203 : f32 to vector<10x64xf32>
    %194 = arith.maximumf %192, %193 : vector<10x64xf32>
    %c1_204 = arith.constant 1 : index
    %c0_205 = arith.constant 0 : index
    %195 = vector.load %arg17[%c1_204, %c0_205] : memref<12x64xf32, #tpu.memory_space<vmem>>, vector<10x64xf32>
    tpu.vector_store %arg17[%c1_204, %c0_205], %194 {strides = array<i32>} : memref<12x64xf32, #tpu.memory_space<vmem>>, vector<10x64xf32>,
    %cst_206 = arith.constant 0.000000e+00 : f32
    %196 = vector.broadcast %cst_206 : f32 to vector<2x64xf32>
    %c5_207 = arith.constant 5 : index
    %c0_208 = arith.constant 0 : index
    %197 = vector.load %arg17[%c5_207, %c0_208] : memref<12x64xf32, #tpu.memory_space<vmem>>, vector<2x64xf32>
    tpu.vector_store %arg17[%c5_207, %c0_208], %196 {strides = array<i32>} : memref<12x64xf32, #tpu.memory_space<vmem>>, vector<2x64xf32>,
    %c3_209 = arith.constant 3 : index
    %c0_210 = arith.constant 0 : index
    %c0_211 = arith.constant 0 : index
    %198 = vector.load %arg1[%c3_209, %c0_210, %c0_211] : memref<7x64x128xbf16, #tpu.memory_space<vmem>>, vector<1x64x128xbf16>
    %199 = vector.shape_cast %198 : vector<1x64x128xbf16> to vector<64x128xbf16>
    %c4_212 = arith.constant 4 : index
    %c0_213 = arith.constant 0 : index
    %c0_214 = arith.constant 0 : index
    %200 = vector.load %arg1[%c4_212, %c0_213, %c0_214] : memref<7x64x128xbf16, #tpu.memory_space<vmem>>, vector<1x64x128xbf16>
    %201 = vector.shape_cast %200 : vector<1x64x128xbf16> to vector<64x128xbf16>
    %c5_215 = arith.constant 5 : index
    %c0_216 = arith.constant 0 : index
    %c0_217 = arith.constant 0 : index
    %202 = vector.load %arg1[%c5_215, %c0_216, %c0_217] : memref<7x64x128xbf16, #tpu.memory_space<vmem>>, vector<1x64x128xbf16>
    %203 = vector.shape_cast %202 : vector<1x64x128xbf16> to vector<64x128xbf16>
    %c0_218 = arith.constant 0 : index
    %c0_219 = arith.constant 0 : index
    %204 = vector.load %arg17[%c0_218, %c0_219] : memref<12x64xf32, #tpu.memory_space<vmem>>, vector<10x64xf32>
    %205 = arith.truncf %204 : vector<10x64xf32> to vector<10x64xbf16>
    %cst_220 = arith.constant dense<0.000000e+00> : vector<10x128xf32>
    %206 = tpu.matmul %205, %199, %cst_220 {dimension_numbers = #tpu.dot_dimension_numbers<[1], [0], [0], [1], [0, 0, 1, 1], [], []>} : vector<10x64xbf16>, vector<64x128xbf16>, vector<10x128xf32> -> vector<10x128xf32>
    %c1_221 = arith.constant 1 : index
    %c0_222 = arith.constant 0 : index
    %207 = vector.load %arg17[%c1_221, %c0_222] : memref<12x64xf32, #tpu.memory_space<vmem>>, vector<10x64xf32>
    %208 = arith.truncf %207 : vector<10x64xf32> to vector<10x64xbf16>
    %cst_223 = arith.constant dense<0.000000e+00> : vector<10x128xf32>
    %209 = tpu.matmul %208, %201, %cst_223 {dimension_numbers = #tpu.dot_dimension_numbers<[1], [0], [0], [1], [0, 0, 1, 1], [], []>} : vector<10x64xbf16>, vector<64x128xbf16>, vector<10x128xf32> -> vector<10x128xf32>
    %210 = arith.addf %206, %209 : vector<10x128xf32>
    %c2_224 = arith.constant 2 : index
    %c0_225 = arith.constant 0 : index
    %211 = vector.load %arg17[%c2_224, %c0_225] : memref<12x64xf32, #tpu.memory_space<vmem>>, vector<10x64xf32>
    %212 = arith.truncf %211 : vector<10x64xf32> to vector<10x64xbf16>
    %cst_226 = arith.constant dense<0.000000e+00> : vector<10x128xf32>
    %213 = tpu.matmul %212, %203, %cst_226 {dimension_numbers = #tpu.dot_dimension_numbers<[1], [0], [0], [1], [0, 0, 1, 1], [], []>} : vector<10x64xbf16>, vector<64x128xbf16>, vector<10x128xf32> -> vector<10x128xf32>
    %214 = arith.addf %210, %213 : vector<10x128xf32>
    %c6_227 = arith.constant 6 : index
    %c0_228 = arith.constant 0 : index
    %215 = vector.load %arg9[%c6_227, %c0_228] : memref<16x256xf32, #tpu.memory_space<vmem>>, vector<1x128xf32>
    %216 = vector.broadcast %215 : vector<1x128xf32> to vector<10x128xf32>
    %217 = arith.addf %214, %216 : vector<10x128xf32>
    %cst_229 = arith.constant 0.000000e+00 : f32
    %218 = vector.broadcast %cst_229 : f32 to vector<10x128xf32>
    %219 = arith.maximumf %217, %218 : vector<10x128xf32>
    %c1_230 = arith.constant 1 : index
    %c0_231 = arith.constant 0 : index
    %220 = vector.load %arg18[%c1_230, %c0_231] : memref<12x128xf32, #tpu.memory_space<vmem>>, vector<10x128xf32>
    tpu.vector_store %arg18[%c1_230, %c0_231], %219 {strides = array<i32>} : memref<12x128xf32, #tpu.memory_space<vmem>>, vector<10x128xf32>,
    %cst_232 = arith.constant 0.000000e+00 : f32
    %221 = vector.broadcast %cst_232 : f32 to vector<2x128xf32>
    %c5_233 = arith.constant 5 : index
    %c0_234 = arith.constant 0 : index
    %222 = vector.load %arg18[%c5_233, %c0_234] : memref<12x128xf32, #tpu.memory_space<vmem>>, vector<2x128xf32>
    tpu.vector_store %arg18[%c5_233, %c0_234], %221 {strides = array<i32>} : memref<12x128xf32, #tpu.memory_space<vmem>>, vector<2x128xf32>,
    %c1_235 = arith.constant 1 : index
    %c0_236 = arith.constant 0 : index
    %223 = vector.load %arg17[%c1_235, %c0_236] : memref<12x64xf32, #tpu.memory_space<vmem>>, vector<10x64xf32>
    %224 = arith.truncf %223 : vector<10x64xf32> to vector<10x64xbf16>
    %c6_237 = arith.constant 6 : index
    %c0_238 = arith.constant 0 : index
    %c0_239 = arith.constant 0 : index
    %225 = vector.load %arg1[%c6_237, %c0_238, %c0_239] : memref<7x64x128xbf16, #tpu.memory_space<vmem>>, vector<1x64x128xbf16>
    %226 = vector.shape_cast %225 : vector<1x64x128xbf16> to vector<64x128xbf16>
    %cst_240 = arith.constant dense<0.000000e+00> : vector<10x128xf32>
    %227 = tpu.matmul %224, %226, %cst_240 {dimension_numbers = #tpu.dot_dimension_numbers<[1], [0], [0], [1], [0, 0, 1, 1], [], []>} : vector<10x64xbf16>, vector<64x128xbf16>, vector<10x128xf32> -> vector<10x128xf32>
    %c7_241 = arith.constant 7 : index
    %c0_242 = arith.constant 0 : index
    %228 = vector.load %arg9[%c7_241, %c0_242] : memref<16x256xf32, #tpu.memory_space<vmem>>, vector<1x128xf32>
    %229 = vector.broadcast %228 : vector<1x128xf32> to vector<10x128xf32>
    %230 = arith.addf %227, %229 : vector<10x128xf32>
    %c0_243 = arith.constant 0 : index
    %c0_244 = arith.constant 0 : index
    %c0_245 = arith.constant 0 : index
    %231 = vector.load %arg3[%c0_243, %c0_244, %c0_245] : memref<3x128x128xbf16, #tpu.memory_space<vmem>>, vector<1x128x128xbf16>
    %232 = vector.shape_cast %231 : vector<1x128x128xbf16> to vector<128x128xbf16>
    %c1_246 = arith.constant 1 : index
    %c0_247 = arith.constant 0 : index
    %c0_248 = arith.constant 0 : index
    %233 = vector.load %arg3[%c1_246, %c0_247, %c0_248] : memref<3x128x128xbf16, #tpu.memory_space<vmem>>, vector<1x128x128xbf16>
    %234 = vector.shape_cast %233 : vector<1x128x128xbf16> to vector<128x128xbf16>
    %c2_249 = arith.constant 2 : index
    %c0_250 = arith.constant 0 : index
    %c0_251 = arith.constant 0 : index
    %235 = vector.load %arg3[%c2_249, %c0_250, %c0_251] : memref<3x128x128xbf16, #tpu.memory_space<vmem>>, vector<1x128x128xbf16>
    %236 = vector.shape_cast %235 : vector<1x128x128xbf16> to vector<128x128xbf16>
    %c0_252 = arith.constant 0 : index
    %c0_253 = arith.constant 0 : index
    %237 = vector.load %arg18[%c0_252, %c0_253] : memref<12x128xf32, #tpu.memory_space<vmem>>, vector<10x128xf32>
    %238 = arith.truncf %237 : vector<10x128xf32> to vector<10x128xbf16>
    %cst_254 = arith.constant dense<0.000000e+00> : vector<10x128xf32>
    %239 = tpu.matmul %238, %232, %cst_254 {dimension_numbers = #tpu.dot_dimension_numbers<[1], [0], [0], [1], [0, 0, 1, 1], [], []>} : vector<10x128xbf16>, vector<128x128xbf16>, vector<10x128xf32> -> vector<10x128xf32>
    %c1_255 = arith.constant 1 : index
    %c0_256 = arith.constant 0 : index
    %240 = vector.load %arg18[%c1_255, %c0_256] : memref<12x128xf32, #tpu.memory_space<vmem>>, vector<10x128xf32>
    %241 = arith.truncf %240 : vector<10x128xf32> to vector<10x128xbf16>
    %cst_257 = arith.constant dense<0.000000e+00> : vector<10x128xf32>
    %242 = tpu.matmul %241, %234, %cst_257 {dimension_numbers = #tpu.dot_dimension_numbers<[1], [0], [0], [1], [0, 0, 1, 1], [], []>} : vector<10x128xbf16>, vector<128x128xbf16>, vector<10x128xf32> -> vector<10x128xf32>
    %243 = arith.addf %239, %242 : vector<10x128xf32>
    %c2_258 = arith.constant 2 : index
    %c0_259 = arith.constant 0 : index
    %244 = vector.load %arg18[%c2_258, %c0_259] : memref<12x128xf32, #tpu.memory_space<vmem>>, vector<10x128xf32>
    %245 = arith.truncf %244 : vector<10x128xf32> to vector<10x128xbf16>
    %cst_260 = arith.constant dense<0.000000e+00> : vector<10x128xf32>
    %246 = tpu.matmul %245, %236, %cst_260 {dimension_numbers = #tpu.dot_dimension_numbers<[1], [0], [0], [1], [0, 0, 1, 1], [], []>} : vector<10x128xbf16>, vector<128x128xbf16>, vector<10x128xf32> -> vector<10x128xf32>
    %247 = arith.addf %243, %246 : vector<10x128xf32>
    %c8_261 = arith.constant 8 : index
    %c0_262 = arith.constant 0 : index
    %248 = vector.load %arg9[%c8_261, %c0_262] : memref<16x256xf32, #tpu.memory_space<vmem>>, vector<1x128xf32>
    %249 = vector.broadcast %248 : vector<1x128xf32> to vector<10x128xf32>
    %250 = arith.addf %247, %249 : vector<10x128xf32>
    %251 = arith.addf %250, %230 : vector<10x128xf32>
    %cst_263 = arith.constant 0.000000e+00 : f32
    %252 = vector.broadcast %cst_263 : f32 to vector<10x128xf32>
    %253 = arith.maximumf %251, %252 : vector<10x128xf32>
    %c1_264 = arith.constant 1 : index
    %c0_265 = arith.constant 0 : index
    %254 = vector.load %arg19[%c1_264, %c0_265] : memref<12x128xf32, #tpu.memory_space<vmem>>, vector<10x128xf32>
    tpu.vector_store %arg19[%c1_264, %c0_265], %253 {strides = array<i32>} : memref<12x128xf32, #tpu.memory_space<vmem>>, vector<10x128xf32>,
    %cst_266 = arith.constant 0.000000e+00 : f32
    %255 = vector.broadcast %cst_266 : f32 to vector<2x128xf32>
    %c5_267 = arith.constant 5 : index
    %c0_268 = arith.constant 0 : index
    %256 = vector.load %arg19[%c5_267, %c0_268] : memref<12x128xf32, #tpu.memory_space<vmem>>, vector<2x128xf32>
    tpu.vector_store %arg19[%c5_267, %c0_268], %255 {strides = array<i32>} : memref<12x128xf32, #tpu.memory_space<vmem>>, vector<2x128xf32>,
    %c0_269 = arith.constant 0 : index
    %c0_270 = arith.constant 0 : index
    %c0_271 = arith.constant 0 : index
    %257 = vector.load %arg4[%c0_269, %c0_270, %c0_271] : memref<4x128x256xbf16, #tpu.memory_space<vmem>>, vector<1x128x256xbf16>
    %258 = vector.shape_cast %257 : vector<1x128x256xbf16> to vector<128x256xbf16>
    %c1_272 = arith.constant 1 : index
    %c0_273 = arith.constant 0 : index
    %c0_274 = arith.constant 0 : index
    %259 = vector.load %arg4[%c1_272, %c0_273, %c0_274] : memref<4x128x256xbf16, #tpu.memory_space<vmem>>, vector<1x128x256xbf16>
    %260 = vector.shape_cast %259 : vector<1x128x256xbf16> to vector<128x256xbf16>
    %c2_275 = arith.constant 2 : index
    %c0_276 = arith.constant 0 : index
    %c0_277 = arith.constant 0 : index
    %261 = vector.load %arg4[%c2_275, %c0_276, %c0_277] : memref<4x128x256xbf16, #tpu.memory_space<vmem>>, vector<1x128x256xbf16>
    %262 = vector.shape_cast %261 : vector<1x128x256xbf16> to vector<128x256xbf16>
    %c0_278 = arith.constant 0 : index
    %c0_279 = arith.constant 0 : index
    %263 = vector.load %arg19[%c0_278, %c0_279] : memref<12x128xf32, #tpu.memory_space<vmem>>, vector<10x128xf32>
    %264 = arith.truncf %263 : vector<10x128xf32> to vector<10x128xbf16>
    %cst_280 = arith.constant dense<0.000000e+00> : vector<10x256xf32>
    %265 = tpu.matmul %264, %258, %cst_280 {dimension_numbers = #tpu.dot_dimension_numbers<[1], [0], [0], [1], [0, 0, 1, 1], [], []>} : vector<10x128xbf16>, vector<128x256xbf16>, vector<10x256xf32> -> vector<10x256xf32>
    %c1_281 = arith.constant 1 : index
    %c0_282 = arith.constant 0 : index
    %266 = vector.load %arg19[%c1_281, %c0_282] : memref<12x128xf32, #tpu.memory_space<vmem>>, vector<10x128xf32>
    %267 = arith.truncf %266 : vector<10x128xf32> to vector<10x128xbf16>
    %cst_283 = arith.constant dense<0.000000e+00> : vector<10x256xf32>
    %268 = tpu.matmul %267, %260, %cst_283 {dimension_numbers = #tpu.dot_dimension_numbers<[1], [0], [0], [1], [0, 0, 1, 1], [], []>} : vector<10x128xbf16>, vector<128x256xbf16>, vector<10x256xf32> -> vector<10x256xf32>
    %269 = arith.addf %265, %268 : vector<10x256xf32>
    %c2_284 = arith.constant 2 : index
    %c0_285 = arith.constant 0 : index
    %270 = vector.load %arg19[%c2_284, %c0_285] : memref<12x128xf32, #tpu.memory_space<vmem>>, vector<10x128xf32>
    %271 = arith.truncf %270 : vector<10x128xf32> to vector<10x128xbf16>
    %cst_286 = arith.constant dense<0.000000e+00> : vector<10x256xf32>
    %272 = tpu.matmul %271, %262, %cst_286 {dimension_numbers = #tpu.dot_dimension_numbers<[1], [0], [0], [1], [0, 0, 1, 1], [], []>} : vector<10x128xbf16>, vector<128x256xbf16>, vector<10x256xf32> -> vector<10x256xf32>
    %273 = arith.addf %269, %272 : vector<10x256xf32>
    %c9_287 = arith.constant 9 : index
    %c0_288 = arith.constant 0 : index
    %274 = vector.load %arg9[%c9_287, %c0_288] : memref<16x256xf32, #tpu.memory_space<vmem>>, vector<1x256xf32>
    %275 = vector.broadcast %274 : vector<1x256xf32> to vector<10x256xf32>
    %276 = arith.addf %273, %275 : vector<10x256xf32>
    %cst_289 = arith.constant 0.000000e+00 : f32
    %277 = vector.broadcast %cst_289 : f32 to vector<10x256xf32>
    %278 = arith.maximumf %276, %277 : vector<10x256xf32>
    %c1_290 = arith.constant 1 : index
    %c0_291 = arith.constant 0 : index
    %279 = vector.load %arg20[%c1_290, %c0_291] : memref<12x256xf32, #tpu.memory_space<vmem>>, vector<10x256xf32>
    tpu.vector_store %arg20[%c1_290, %c0_291], %278 {strides = array<i32>} : memref<12x256xf32, #tpu.memory_space<vmem>>, vector<10x256xf32>,
    %cst_292 = arith.constant 0.000000e+00 : f32
    %280 = vector.broadcast %cst_292 : f32 to vector<2x256xf32>
    %c5_293 = arith.constant 5 : index
    %c0_294 = arith.constant 0 : index
    %281 = vector.load %arg20[%c5_293, %c0_294] : memref<12x256xf32, #tpu.memory_space<vmem>>, vector<2x256xf32>
    tpu.vector_store %arg20[%c5_293, %c0_294], %280 {strides = array<i32>} : memref<12x256xf32, #tpu.memory_space<vmem>>, vector<2x256xf32>,
    %c1_295 = arith.constant 1 : index
    %c0_296 = arith.constant 0 : index
    %282 = vector.load %arg19[%c1_295, %c0_296] : memref<12x128xf32, #tpu.memory_space<vmem>>, vector<10x128xf32>
    %283 = arith.truncf %282 : vector<10x128xf32> to vector<10x128xbf16>
    %c3_297 = arith.constant 3 : index
    %c0_298 = arith.constant 0 : index
    %c0_299 = arith.constant 0 : index
    %284 = vector.load %arg4[%c3_297, %c0_298, %c0_299] : memref<4x128x256xbf16, #tpu.memory_space<vmem>>, vector<1x128x256xbf16>
    %285 = vector.shape_cast %284 : vector<1x128x256xbf16> to vector<128x256xbf16>
    %cst_300 = arith.constant dense<0.000000e+00> : vector<10x256xf32>
    %286 = tpu.matmul %283, %285, %cst_300 {dimension_numbers = #tpu.dot_dimension_numbers<[1], [0], [0], [1], [0, 0, 1, 1], [], []>} : vector<10x128xbf16>, vector<128x256xbf16>, vector<10x256xf32> -> vector<10x256xf32>
    %c10_301 = arith.constant 10 : index
    %c0_302 = arith.constant 0 : index
    %287 = vector.load %arg9[%c10_301, %c0_302] : memref<16x256xf32, #tpu.memory_space<vmem>>, vector<1x256xf32>
    %288 = vector.broadcast %287 : vector<1x256xf32> to vector<10x256xf32>
    %289 = arith.addf %286, %288 : vector<10x256xf32>
    %c0_303 = arith.constant 0 : index
    %c0_304 = arith.constant 0 : index
    %c0_305 = arith.constant 0 : index
    %290 = vector.load %arg5[%c0_303, %c0_304, %c0_305] : memref<3x256x256xbf16, #tpu.memory_space<vmem>>, vector<1x256x256xbf16>
    %291 = vector.shape_cast %290 : vector<1x256x256xbf16> to vector<256x256xbf16>
    %c1_306 = arith.constant 1 : index
    %c0_307 = arith.constant 0 : index
    %c0_308 = arith.constant 0 : index
    %292 = vector.load %arg5[%c1_306, %c0_307, %c0_308] : memref<3x256x256xbf16, #tpu.memory_space<vmem>>, vector<1x256x256xbf16>
    %293 = vector.shape_cast %292 : vector<1x256x256xbf16> to vector<256x256xbf16>
    %c2_309 = arith.constant 2 : index
    %c0_310 = arith.constant 0 : index
    %c0_311 = arith.constant 0 : index
    %294 = vector.load %arg5[%c2_309, %c0_310, %c0_311] : memref<3x256x256xbf16, #tpu.memory_space<vmem>>, vector<1x256x256xbf16>
    %295 = vector.shape_cast %294 : vector<1x256x256xbf16> to vector<256x256xbf16>
    %c0_312 = arith.constant 0 : index
    %c0_313 = arith.constant 0 : index
    %296 = vector.load %arg20[%c0_312, %c0_313] : memref<12x256xf32, #tpu.memory_space<vmem>>, vector<10x256xf32>
    %297 = arith.truncf %296 : vector<10x256xf32> to vector<10x256xbf16>
    %cst_314 = arith.constant dense<0.000000e+00> : vector<10x256xf32>
    %298 = tpu.matmul %297, %291, %cst_314 {dimension_numbers = #tpu.dot_dimension_numbers<[1], [0], [0], [1], [0, 0, 1, 1], [], []>} : vector<10x256xbf16>, vector<256x256xbf16>, vector<10x256xf32> -> vector<10x256xf32>
    %c1_315 = arith.constant 1 : index
    %c0_316 = arith.constant 0 : index
    %299 = vector.load %arg20[%c1_315, %c0_316] : memref<12x256xf32, #tpu.memory_space<vmem>>, vector<10x256xf32>
    %300 = arith.truncf %299 : vector<10x256xf32> to vector<10x256xbf16>
    %cst_317 = arith.constant dense<0.000000e+00> : vector<10x256xf32>
    %301 = tpu.matmul %300, %293, %cst_317 {dimension_numbers = #tpu.dot_dimension_numbers<[1], [0], [0], [1], [0, 0, 1, 1], [], []>} : vector<10x256xbf16>, vector<256x256xbf16>, vector<10x256xf32> -> vector<10x256xf32>
    %302 = arith.addf %298, %301 : vector<10x256xf32>
    %c2_318 = arith.constant 2 : index
    %c0_319 = arith.constant 0 : index
    %303 = vector.load %arg20[%c2_318, %c0_319] : memref<12x256xf32, #tpu.memory_space<vmem>>, vector<10x256xf32>
    %304 = arith.truncf %303 : vector<10x256xf32> to vector<10x256xbf16>
    %cst_320 = arith.constant dense<0.000000e+00> : vector<10x256xf32>
    %305 = tpu.matmul %304, %295, %cst_320 {dimension_numbers = #tpu.dot_dimension_numbers<[1], [0], [0], [1], [0, 0, 1, 1], [], []>} : vector<10x256xbf16>, vector<256x256xbf16>, vector<10x256xf32> -> vector<10x256xf32>
    %306 = arith.addf %302, %305 : vector<10x256xf32>
    %c11_321 = arith.constant 11 : index
    %c0_322 = arith.constant 0 : index
    %307 = vector.load %arg9[%c11_321, %c0_322] : memref<16x256xf32, #tpu.memory_space<vmem>>, vector<1x256xf32>
    %308 = vector.broadcast %307 : vector<1x256xf32> to vector<10x256xf32>
    %309 = arith.addf %306, %308 : vector<10x256xf32>
    %310 = arith.addf %309, %289 : vector<10x256xf32>
    %cst_323 = arith.constant 0.000000e+00 : f32
    %311 = vector.broadcast %cst_323 : f32 to vector<10x256xf32>
    %312 = arith.maximumf %310, %311 : vector<10x256xf32>
    %313 = vector.extract_strided_slice %312 {offsets = [0, 0], sizes = [10, 64], strides = [1, 1]} : vector<10x256xf32> to vector<10x64xf32>
    %314 = vector.extract_strided_slice %312 {offsets = [0, 64], sizes = [10, 64], strides = [1, 1]} : vector<10x256xf32> to vector<10x64xf32>
    %315 = arith.maximumf %313, %314 : vector<10x64xf32>
    %316 = vector.extract_strided_slice %312 {offsets = [0, 128], sizes = [10, 64], strides = [1, 1]} : vector<10x256xf32> to vector<10x64xf32>
    %317 = vector.extract_strided_slice %312 {offsets = [0, 192], sizes = [10, 64], strides = [1, 1]} : vector<10x256xf32> to vector<10x64xf32>
    %318 = arith.maximumf %316, %317 : vector<10x64xf32>
    %319 = arith.maximumf %315, %318 : vector<10x64xf32>
    %320 = vector.extract_strided_slice %319 {offsets = [0, 0], sizes = [4, 64], strides = [1, 1]} : vector<10x64xf32> to vector<4x64xf32>
    %cst_324 = arith.constant dense<0xFF800000> : vector<64xf32>
    %321 = vector.multi_reduction <maximumf>, %320, %cst_324 [0] : vector<4x64xf32> to vector<64xf32>
    %322 = vector.shape_cast %321 : vector<64xf32> to vector<1x64xf32>
    %323 = vector.extract_strided_slice %319 {offsets = [6, 0], sizes = [4, 64], strides = [1, 1]} : vector<10x64xf32> to vector<4x64xf32>
    %cst_325 = arith.constant dense<0xFF800000> : vector<64xf32>
    %324 = vector.multi_reduction <maximumf>, %323, %cst_325 [0] : vector<4x64xf32> to vector<64xf32>
    %325 = vector.shape_cast %324 : vector<64xf32> to vector<1x64xf32>
    %326 = arith.truncf %322 : vector<1x64xf32> to vector<1x64xbf16>
    %c0_326 = arith.constant 0 : index
    %c0_327 = arith.constant 0 : index
    %327 = vector.load %arg10[%c0_326, %c0_327] : memref<128x128xbf16, #tpu.memory_space<vmem>>, vector<64x128xbf16>
    %cst_328 = arith.constant dense<0.000000e+00> : vector<1x128xf32>
    %328 = tpu.matmul %326, %327, %cst_328 {dimension_numbers = #tpu.dot_dimension_numbers<[1], [0], [0], [1], [0, 0, 1, 1], [], []>} : vector<1x64xbf16>, vector<64x128xbf16>, vector<1x128xf32> -> vector<1x128xf32>
    %329 = arith.truncf %325 : vector<1x64xf32> to vector<1x64xbf16>
    %c64 = arith.constant 64 : index
    %c0_329 = arith.constant 0 : index
    %330 = vector.load %arg10[%c64, %c0_329] : memref<128x128xbf16, #tpu.memory_space<vmem>>, vector<64x128xbf16>
    %cst_330 = arith.constant dense<0.000000e+00> : vector<1x128xf32>
    %331 = tpu.matmul %329, %330, %cst_330 {dimension_numbers = #tpu.dot_dimension_numbers<[1], [0], [0], [1], [0, 0, 1, 1], [], []>} : vector<1x64xbf16>, vector<64x128xbf16>, vector<1x128xf32> -> vector<1x128xf32>
    %332 = arith.addf %328, %331 : vector<1x128xf32>
    %c12_331 = arith.constant 12 : index
    %c0_332 = arith.constant 0 : index
    %333 = vector.load %arg9[%c12_331, %c0_332] : memref<16x256xf32, #tpu.memory_space<vmem>>, vector<1x128xf32>
    %334 = arith.addf %332, %333 : vector<1x128xf32>
    %335 = vector.extract_strided_slice %334 {offsets = [0, 0], sizes = [1, 10], strides = [1, 1]} : vector<1x128xf32> to vector<1x10xf32>
    %c0_333 = arith.constant 0 : index
    %c0_334 = arith.constant 0 : index
    %336 = vector.load %arg11[%c0_333, %c0_334] : memref<1x10xf32, #tpu.memory_space<vmem>>, vector<1x10xf32>
    tpu.vector_store %arg11[%c0_333, %c0_334], %335 {strides = array<i32>} : memref<1x10xf32, #tpu.memory_space<vmem>>, vector<1x10xf32>,
    return
  }
}

</mosaic_0001>

<bundles_post_ra>
// kernel: resnet_mod_forward.1
= control target key start
LH: loop header
LB: loop body
LE: loop exit
PB: predicated region body
PF: predicated region fallthrough
CT: control target
= control target key end

     0   :  { %16 = vsyncpa [#allocation12], 0  ;;  %s7166_s0 = inlined_call_operand.vmem [shape: bf16[36,64], index: 0, kind: input, shape index: {}]   ;;  %s7167_s1 = inlined_call_operand.hbm [shape: bf16[7,64,128], index: 1, kind: input, shape index: {}]   ;;  %s7168_s2 = inlined_call_operand.hbm [shape: bf16[13,64,64], index: 2, kind: input, shape index: {}]   ;;  %s7169_s3 = inlined_call_operand.hbm [shape: bf16[3,128,128], index: 3, kind: input, shape index: {}]   ;;  %s7170_s4 = inlined_call_operand.hbm [shape: bf16[4,128,256], index: 4, kind: input, shape index: {}]   ;;  %s7171_s5 = inlined_call_operand.vmem [shape: bf16[3,256,256], index: 5, kind: input, shape index: {}]   ;;  %s7172_s6 = inlined_call_operand.vmem [shape: bf16[3,128,64], index: 6, kind: input, shape index: {}]   ;;  %s7173_s7 = inlined_call_operand.hbm [shape: bf16[18,48], index: 7, kind: input, shape index: {}]   ;;  %s7174_s8 = inlined_call_operand.vmem [shape: bf16[10,32], index: 8, kind: input, shape index: {}]   ;;  %s7175_s9 = inlined_call_operand.vmem [shape: f32[16,256], index: 9, kind: input, shape index: {}]   ;;  %s7176_s10 = inlined_call_operand.hbm [shape: bf16[128,128], index: 10, kind: input, shape index: {}]   ;;  %s7177_s11 = inlined_call_operand.hbm [shape: f32[1,10], index: 11, kind: output, shape index: {}]  }
   0x1   :  { %17 = vsyncpa [#allocation15], 0 }
   0x2   :  { %18 = vsyncpa [#allocation18], 0 }
   0x3   :  { %19 = vsyncpa [#allocation21], 0 }
   0x4   :  { %20 = vsyncpa [#allocation13], 0  ;;  %s6294_s17 = smov [#allocation14]   ;;  %s6295_s19 = smov [#allocation17]  }
   0x5   :  { %s40_s18 = sshll.u32 %s6294_s17, 4  ;;  %s64_s20 = sshll.u32 %s6295_s19, 4  ;;  %s41_s18 = int_to_ptr.vmem [resolvable:$true] %s40_s18  ;;  %s6368_s20 = int_to_ptr.vmem [resolvable:$true] %s64_s20 }
   0x6   :  { %s6130_s23 = scalar_lea.hbm %s7168_s2, 6656 }
   0x7   :  { %p6131_p0 = scmp.ne.s32.totalorder %s7168_s2, %s6130_s23  ;;  %p6134_p1 = scmp.lt.u32.totalorder %s6130_s23, %s7168_s2 }
   0x9   :  { %p6136_p2 = pnand %p6134_p1, %p6131_p0 }
   0xb   :  { %6139 = shalt.err (!%p6136_p2)
}
   0xc   :  { %s6140_s28 = scalar_lea.vmem %s41_s18, 6656  ;;  %p6145_p4 = scmp.lt.s32.totalorder %s41_s18, %s41_s18 }
   0xd   :  { %p6141_p3 = scmp.ne.s32.totalorder %s41_s18, %s6140_s28  ;;  %p6146_p5 = scmp.lt.s32.totalorder %s6140_s28, %s6140_s28 }
   0xf   :  { %p6147_p6 = por %p6146_p5, %p6145_p4 }
  0x11   :  { %p6148_p7 = pnand %p6147_p6, %p6141_p3 }
  0x13   :  { %6151 = shalt.err (!%p6148_p7)
}
  0x14   :  { %s6296_s29 = smov 64   ;;  %s6297_s30 = smov 4  }
  0x15   :  { %46 = dma.hbm_to_vmem [thread:$0]  %s7168_s2, 6656, %s41_s18, [#allocation15], %s6296_s29, %s6296_s29, %s6297_s30  }
  0x16   :  { %s6152_s16 = scalar_lea.hbm %s7170_s4, 8192 }
  0x17   :  { %p6153_p8 = scmp.ne.s32.totalorder %s7170_s4, %s6152_s16  ;;  %p6156_p9 = scmp.lt.u32.totalorder %s6152_s16, %s7170_s4 }
  0x19   :  { %p6158_p10 = pnand %p6156_p9, %p6153_p8 }
  0x1b   :  { %6161 = shalt.err (!%p6158_p10)
}
  0x1c   :  { %s6162_s23 = scalar_lea.vmem %s6368_s20, 8192  ;;  %p6167_p12 = scmp.lt.s32.totalorder %s6368_s20, %s6368_s20 }
  0x1d   :  { %p6163_p11 = scmp.ne.s32.totalorder %s6368_s20, %s6162_s23  ;;  %p6168_p13 = scmp.lt.s32.totalorder %s6162_s23, %s6162_s23 }
  0x1f   :  { %p6169_p0 = por %p6168_p13, %p6167_p12 }
  0x21   :  { %p6170_p1 = pnand %p6169_p0, %p6163_p11 }
  0x23   :  { %6173 = shalt.err (!%p6170_p1)
}
  0x24   :  { %s6298_s2 = smov 128   ;;  %s6299_s18 = smov 8  }
  0x25   :  { %70 = dma.hbm_to_vmem [thread:$0]  %s7170_s4, 8192, %s6368_s20, [#allocation18], %s6298_s2, %s6298_s2, %s6299_s18  }
  0x26   :  { %s6300_s26 = smov [#allocation11]   ;;  %s6301_s28 = smov [#allocation16]  }
  0x27   :  { %s28_s27 = sshll.u32 %s6300_s26, 4  ;;  %s52_s12 = sshll.u32 %s6301_s28, 4  ;;  %s29_s27 = int_to_ptr.vmem [resolvable:$true] %s28_s27  ;;  %s6402_s12 = int_to_ptr.vmem [resolvable:$true] %s52_s12 }
  0x28   :  { %s6174_s15 = scalar_lea.hbm %s7167_s1, 3584 }
  0x29   :  { %p6175_p2 = scmp.ne.s32.totalorder %s7167_s1, %s6174_s15  ;;  %p6178_p3 = scmp.lt.u32.totalorder %s6174_s15, %s7167_s1 }
  0x2b   :  { %p6180_p4 = pnand %p6178_p3, %p6175_p2 }
  0x2d   :  { %6183 = shalt.err (!%p6180_p4)
}
  0x2e   :  { %s6184_s4 = scalar_lea.vmem %s29_s27, 3584  ;;  %p6189_p6 = scmp.lt.s32.totalorder %s29_s27, %s29_s27 }
  0x2f   :  { %p6185_p5 = scmp.ne.s32.totalorder %s29_s27, %s6184_s4  ;;  %p6190_p7 = scmp.lt.s32.totalorder %s6184_s4, %s6184_s4 }
  0x31   :  { %p6191_p8 = por %p6190_p7, %p6189_p6 }
  0x33   :  { %p6192_p9 = pnand %p6191_p8, %p6185_p5 }
  0x35   :  { %6195 = shalt.err (!%p6192_p9)
}
  0x36   :  { %34 = dma.hbm_to_vmem [thread:$0]  %s7167_s1, 3584, %s29_s27, [#allocation12], %s6296_s29, %s6296_s29, %s6297_s30  }
  0x37   :  { %s6196_s18 = scalar_lea.hbm %s7169_s3, 3072 }
  0x38   :  { %p6197_p10 = scmp.ne.s32.totalorder %s7169_s3, %s6196_s18  ;;  %p6200_p11 = scmp.lt.u32.totalorder %s6196_s18, %s7169_s3 }
  0x3a   :  { %p6202_p12 = pnand %p6200_p11, %p6197_p10 }
  0x3c   :  { %6205 = shalt.err (!%p6202_p12)
}
  0x3d   :  { %s6206_s13 = scalar_lea.vmem %s6402_s12, 3072  ;;  %p6211_p0 = scmp.lt.s32.totalorder %s6402_s12, %s6402_s12 }
  0x3e   :  { %p6207_p13 = scmp.ne.s32.totalorder %s6402_s12, %s6206_s13  ;;  %p6212_p1 = scmp.lt.s32.totalorder %s6206_s13, %s6206_s13 }
  0x40   :  { %p6213_p2 = por %p6212_p1, %p6211_p0 }
  0x42   :  { %p6214_p3 = pnand %p6213_p2, %p6207_p13 }
  0x44   :  { %6217 = shalt.err (!%p6214_p3)
}
  0x45   :  { %58 = dma.hbm_to_vmem [thread:$0]  %s7169_s3, 3072, %s6402_s12, [#allocation15], %s6296_s29, %s6296_s29, %s6297_s30  }
  0x46   :  { %s6302_s14 = smov [#allocation19]   ;;  %s6303_s16 = smov [#allocation20]  }
  0x47   :  { %s80_s15 = sshll.u32 %s6302_s14, 4  ;;  %s96_s17 = sshll.u32 %s6303_s16, 4  ;;  %s81_s15 = int_to_ptr.vmem [resolvable:$true] %s80_s15  ;;  %s6439_s17 = int_to_ptr.vmem [resolvable:$true] %s96_s17 }
  0x48   :  { %s6218_s4 = scalar_lea.hbm %s7173_s7, 192 }
  0x49   :  { %p6219_p4 = scmp.ne.s32.totalorder %s7173_s7, %s6218_s4  ;;  %p6222_p5 = scmp.lt.u32.totalorder %s6218_s4, %s7173_s7 }
  0x4b   :  { %p6224_p6 = pnand %p6222_p5, %p6219_p4 }
  0x4d   :  { %6227 = shalt.err (!%p6224_p6)
}
  0x4e   :  { %s6228_s3 = scalar_lea.vmem %s81_s15, 192  ;;  %p6233_p8 = scmp.lt.s32.totalorder %s81_s15, %s81_s15 }
  0x4f   :  { %p6229_p7 = scmp.ne.s32.totalorder %s81_s15, %s6228_s3  ;;  %p6234_p9 = scmp.lt.s32.totalorder %s6228_s3, %s6228_s3 }
  0x51   :  { %p6235_p10 = por %p6234_p9, %p6233_p8 }
  0x53   :  { %p6236_p11 = pnand %p6235_p10, %p6229_p7 }
  0x55   :  { %6239 = shalt.err (!%p6236_p11)
}
  0x56   :  { %86 = dma.hbm_to_vmem [thread:$0]  %s7173_s7, 192, %s81_s15, [#allocation18], %s6296_s29, %s6296_s29, %s6297_s30  }
  0x57   :  { %s6240_s26 = scalar_lea.hbm %s7176_s10, 1024 }
  0x58   :  { %p6241_p12 = scmp.ne.s32.totalorder %s7176_s10, %s6240_s26  ;;  %p6244_p13 = scmp.lt.u32.totalorder %s6240_s26, %s7176_s10 }
  0x5a   :  { %p6246_p0 = pnand %p6244_p13, %p6241_p12 }
  0x5c   :  { %6249 = shalt.err (!%p6246_p0)
}
  0x5d   :  { %s6250_s14 = scalar_lea.vmem %s6439_s17, 1024  ;;  %p6255_p2 = scmp.lt.s32.totalorder %s6439_s17, %s6439_s17 }
  0x5e   :  { %p6251_p1 = scmp.ne.s32.totalorder %s6439_s17, %s6250_s14  ;;  %p6256_p3 = scmp.lt.s32.totalorder %s6250_s14, %s6250_s14 }
  0x60   :  { %p6257_p4 = por %p6256_p3, %p6255_p2 }
  0x62   :  { %p6258_p5 = pnand %p6257_p4, %p6251_p1 }
  0x64   :  { %6261 = shalt.err (!%p6258_p5)
}
  0x65   :  { %102 = dma.hbm_to_vmem [thread:$0]  %s7176_s10, 1024, %s6439_s17, [#allocation21], %s6296_s29, %s6296_s29, %s6297_s30  }
  0x66   :  { %6284 = dma.done.wait [#allocation12], 3584  }
  0x67   :  { %6285 = vsyncadd [#allocation12], 4294963712 }
  0x68   :  { %6286 = dma.done.wait [#allocation15], 9728  }
  0x69   :  { %6287 = vsyncadd [#allocation15], 4294957568 }
  0x6a   :  { %6288 = dma.done.wait [#allocation18], 8384  }
  0x6b   :  { %6289 = vsyncadd [#allocation18], 4294958912 }
  0x6c   :  { %6290 = dma.done.wait [#allocation21], 1024  }
  0x6d   :  { %6291 = vsyncadd [#allocation21], 4294966272  ;;  %vm131_vm0 = vcmask 523264   ;;  %v6304_v0 = vmov 0.0   ;;  %vm6305_vm1 = vmmov 0   ;;  %v5743_v1 = vld [vmem:[#allocation11 + $0x20] sm:$0xff]  }
  0x6e   :  { %5217 = vmatprep.subr.bf16.mxu0 %v6304_v0  ;;  %122 = vst [vmem:[#allocation2] sm:$0x1] %v6304_v0  ;;  %123 = vst [vmem:[#allocation2 + $0x23] sm:$0xff] %v6304_v0  ;;  %5237 = vmatprep.subr.bf16.mxu1 %v6304_v0  ;;  %v5744_v2 = vld [vmem:[#allocation11] sm:$0xff]   ;;  %v5745_v3 = vld [vmem:[#allocation11 + $0x28] sm:$0xff]   ;;  %vm404_vm3 = vcmask 1046528  }
  0x6f   :  { %124 = vst [vmem:[#allocation2 + $0x2b] sm:$0x7f] %v6304_v0  ;;  %139 = vst [vmem:[#allocation8] sm:$0x1] %v6304_v0  ;;  %5225 = vmatprep.mubr.msk.bf16.mxu0 %vm6305_vm1, %v6304_v0  ;;  %5245 = vmatprep.mubr.msk.bf16.mxu1 %vm6305_vm1, %v6304_v0  ;;  %v5746_v4 = vld [vmem:[#allocation11 + $0x8] sm:$0xff]   ;;  %v5747_v5 = vld [vmem:[#allocation11 + $0x30] sm:$0xff]  }
  0x70   :  { %140 = vst [vmem:[#allocation8 + $0xb] sm:$0x1] %v6304_v0  ;;  %141 = vst [vmem:[#allocation9] sm:$0x1] %v6304_v0  ;;  %5218 = vmatpush3.bf16.msra.mxu0 %v5743_v1  ;;  %5238 = vmatpush3.bf16.msra.mxu1 %v5744_v2  ;;  %v5748_v6 = vld [vmem:[#allocation11 + $0x10] sm:$0xff]   ;;  %v5752_v10 = vld [vmem:[%s7166_s0 + $0x8] sm:$0xff]  }
  0x71   :  { %142 = vst [vmem:[#allocation9 + $0xb] sm:$0x1] %v6304_v0  ;;  %132 = vst.msk [vmem:[#allocation5 + $0x13] sm:$0xff] %vm131_vm0, %v6304_v0  ;;  %5219 = vmatprep.subr.bf16.mxu0 %v6304_v0  ;;  %5239 = vmatprep.subr.bf16.mxu1 %v6304_v0  ;;  %v178_v7 = vld [vmem:[%s7166_s0] sm:$0xf]  ;;  %v5749_v11 = vld [vmem:[#allocation11 + $0x38] sm:$0xff]  }
  0x72   :  { %v179_v8 = vld [vmem:[%s7166_s0 + $0x4] sm:$0xf]  ;;  %v5753_v12 = vld [vmem:[%s7166_s0 + $0x10] ss:$0 sps:$4 sm:$0x33]   ;;  %v5750_v13 = vld [vmem:[#allocation11 + $0x18] sm:$0xff]  }
  0x73   :  { %v4579_v9 = vcombine.low %v178_v7, %v179_v8  ;;  %v206_v16 = vshll.u32 %v5752_v10, 16  ;;  %v214_v17 = vshll.u32 %v5753_v12, 16  ;;  %vm197_vm2 = vsmask.f32 7424  ;;  %v5754_v21 = vld [vmem:[#allocation11 + $0x40] sm:$0xff]   ;;  %v5755_v30 = vld [vmem:[#allocation11 + $0x48] sm:$0xff]  }
  0x74   :  { %5220 = vmatpush3.bf16.msra.mxu0 %v5745_v3  ;;  %5240 = vmatpush3.bf16.msra.mxu1 %v5746_v4  ;;  %v210_v20 = vshrl.u32 %v5752_v10, 16  ;;  %v218_v22 = vshrl.u32 %v5753_v12, 16  ;;  %v400_v25 = vld [vmem:[%s7166_s0] sm:$0xe]  ;;  %v406_v26 = vrot.slane %v5752_v10, 1  ;;  %v408_v27 = vrot.slane %v5753_v12, 1 }
  0x75   :  { %5221 = vmatprep.subr.bf16.mxu0 %v6304_v0  ;;  %5241 = vmatprep.subr.bf16.mxu1 %v6304_v0  ;;  %v199_v14 = vshrl.u32 %v4579_v9, 16  ;;  %v201_v15 = vshll.u32 %v4579_v9, 16  ;;  %v208_v19 = vrot.slane %v206_v16, 1  ;;  %v216_v24 = vrot.slane %v214_v17, 1  ;;  %v5757_v33 = vld [vmem:[#allocation11 + $0x50] sm:$0xff]   ;;  %v5758_v35 = vld [vmem:[#allocation11 + $0x58] sm:$0xff]  }
  0x76   :  { %v4597_v29 = vcombine.low %v400_v25, %v179_v8  ;;  %v5756_v36 = vld [vmem:[%s7166_s0 + $0x10] ss:$0 sps:$4 sm:$0x11]   ;;  %v409_v39 = vsel %vm404_vm3, %v406_v26, %v408_v27  ;;  %vm565_vm4 = vcmask 392192   ;;  %v5762_v41 = vld [vmem:[%s7172_s6 + $0x80] sm:$0xff]   ;;  %v5764_v42 = vld [vmem:[%s7172_s6 + $0x88] sm:$0xff]  }
  0x77   :  { %v203_v18 = vrot.slane %v201_v15, 1  ;;  %v212_v31 = vor.u32 %v210_v20, %v208_v19  ;;  %v220_v37 = vor.u32 %v218_v22, %v216_v24  ;;  %v5759_v40 = vld [vmem:[#allocation19] sm:$0xff]   ;;  %v5768_v44 = vld [vmem:[%s7172_s6 + $0x98] sm:$0xff]   ;;  %v5770_v45 = vld [vmem:[%s7172_s6 + $0xa0] sm:$0xff]   ;;  %vm125_vm5 = vcmask 516096   ;;  %s6307_s12 = smov [#allocation22]  }
  0x78   :  { %5222 = vmatpush3.bf16.msra.mxu0 %v5747_v5  ;;  %5242 = vmatpush3.bf16.msra.mxu1 %v5748_v6  ;;  %v405_v32 = vrot.slane %v4597_v29, 1  ;;  %v5766_v43 = vld [vmem:[%s7172_s6 + $0x90] sm:$0xff]   ;;  %v5772_v46 = vld [vmem:[%s7172_s6 + $0xa8] sm:$0xff]   ;;  %vm968_vm6 = vcmask 517120   ;;  %vm133_vm7 = vcmask 522240   ;;  %vm1852_vm8 = vcmask 261120  }
  0x79   :  { %5223 = vmatprep.subr.bf16.mxu0 %v6304_v0  ;;  %5243 = vmatprep.subr.bf16.mxu1 %v6304_v0  ;;  %v204_v23 = vor.u32 %v203_v18, %v199_v14  ;;  %v217_v34 = vsel %vm197_vm2, %v212_v31, %v216_v24  ;;  %vm3416_vm10 = vcmask 1040384   ;;  %vm4395_vm11 = vcmask 523270   ;;  %s4567_s18 = sshll.u32 %s6307_s12, 4  ;;  %s4568_s18 = int_to_ptr.vmem [resolvable:$true] %s4567_s18 }
  0x7a   :  { %v407_v38 = vsel %vm404_vm3, %v405_v32, %v406_v26  ;;  %vm4387_vm12 = vcmask 519168   ;;  %vm4559_vm13 = vcmask 73728   ;;  %s6262_s24 = scalar_lea.vmem %s4568_s18, 16  ;;  %s6266_s25 = scalar_lea.vmem %s4568_s18, 32 }
  0x7b   :  { %v209_v28 = vsel %vm197_vm2, %v204_v23, %v208_v19  ;;  %p6263_p6 = scmp.ne.s32.totalorder %s4568_s18, %s6262_s24  ;;  %p6267_p7 = scmp.lt.s32.totalorder %s4568_s18, %s4568_s18 }
  0x7c   :  { %5224 = vmatpush3.bf16.msra.mxu0 %v5749_v11  ;;  %5244 = vmatpush3.bf16.msra.mxu1 %v5750_v13  ;;  %v504_v13 = vld [vmem:[%s7175_s9] ss:$0 sm:$0xff]  ;;  %p6268_p8 = scmp.lt.s32.totalorder %s6266_s25, %s6262_s24 }
  0x7d   :  { %5257 = vmatprep.subr.bf16.mxu0 %v6304_v0 }
  0x7e   :  { %p6269_p9 = por %p6268_p8, %p6267_p7 }
  0x7f   :  { %5226 = vmatmul.mubr.msk.bf16.vlgmr.msra.gmra.mrb[0].mxu0 %vm131_vm0, %v209_v28  ;;  %5246 = vmatmul.mubr.msk.bf16.vlgmr.msra.gmra.mrb[0].mxu1 %vm131_vm0, %v4579_v9 }
  0x80   :  { %5229 = vmatprep.mubr.msk.bf16.mxu0 %vm6305_vm1, %v6304_v0  ;;  %5249 = vmatprep.mubr.msk.bf16.mxu1 %vm6305_vm1, %v6304_v0  ;;  %p6270_p10 = pnand %p6269_p9, %p6263_p6 }
  0x81   :  { %5258 = vmatpush3.bf16.msra.mxu0 %v5754_v21 }
  0x82   :  { %5259 = vmatprep.subr.bf16.mxu0 %v6304_v0 }
  0x85   :  { %5260 = vmatpush3.bf16.msra.mxu0 %v5755_v30 }
  0x86   :  { %5261 = vmatprep.subr.bf16.mxu0 %v6304_v0 }
  0x87   :  { %5230 = vmatmul.mubr.msk.bf16.gmra.mrb[4].mxu0 %vm131_vm0, %v217_v34  ;;  %5250 = vmatmul.mubr.msk.bf16.gmra.mrb[4].mxu1 %vm131_vm0, %v5752_v10 }
  0x88   :  { %5233 = vmatprep.mubr.msk.bf16.mxu0 %vm6305_vm1, %v6304_v0  ;;  %5253 = vmatprep.mubr.msk.bf16.mxu1 %vm6305_vm1, %v6304_v0 }
  0x89   :  { %5262 = vmatpush3.bf16.msra.mxu0 %v5757_v33  ;;  %v6566_v33 = vld [vmem:[#allocation2 + $0x23] sm:$0xff] }
  0x8a   :  { %5263 = vmatprep.subr.bf16.mxu0 %v6304_v0  ;;  %127 = vst.msk [vmem:[#allocation3 + $0x13] sm:$0x1] %vm125_vm5, %v6566_v33  ;;  %126 = vst.msk [vmem:[#allocation3] sm:$0x1] %vm125_vm5, %v6566_v33 }
  0x8b   :  { %128 = vst.msk [vmem:[#allocation4] sm:$0x1] %vm125_vm5, %v6566_v33  ;;  %129 = vst.msk [vmem:[#allocation4 + $0x13] sm:$0x1] %vm125_vm5, %v6566_v33 }
  0x8c   :  { %130 = vst.msk [vmem:[#allocation5] sm:$0x1] %vm125_vm5, %v6566_v33  ;;  %135 = vst.msk [vmem:[#allocation6] sm:$0x1] %vm125_vm5, %v6566_v33 }
  0x8d   :  { %5264 = vmatpush3.bf16.msra.mxu0 %v5758_v35  ;;  %136 = vst.msk [vmem:[#allocation6 + $0xb] sm:$0x1] %vm125_vm5, %v6566_v33  ;;  %137 = vst.msk [vmem:[#allocation7] sm:$0x1] %vm125_vm5, %v6566_v33 }
  0x8e   :  { %5327 = vmatprep.subr.bf16.mxu0 %v5762_v41  ;;  %138 = vst.msk [vmem:[#allocation7 + $0xb] sm:$0x1] %vm125_vm5, %v6566_v33 }
  0x8f   :  { %5234 = vmatmul.mubr.msk.bf16.gmra.mrb[8].mxu0 %vm131_vm0, %v220_v37  ;;  %5254 = vmatmul.mubr.msk.bf16.gmra.mrb[8].mxu1 %vm131_vm0, %v5756_v36  ;;  %134 = vst.msk [vmem:[#allocation5 + $0x1b] sm:$0x7f] %vm133_vm7, %v6566_v33 }
  0x90   :  { %5265 = vmatprep.mubr.msk.bf16.mxu0 %vm6305_vm1, %v6304_v0  ;;  %5283 = vmatprep.mubr.msk.bf16.mxu1 %vm565_vm4, %v5759_v40 }
  0x97   :  { %5266 = vmatmul.mubr.msk.bf16.vlgmr.msra.gmra.mrb[12].mxu0 %vm131_vm0, %v407_v38 }
  0x98   :  { %5269 = vmatprep.mubr.msk.bf16.mxu0 %vm6305_vm1, %v6304_v0  ;;  %5328 = vmatpush3.bf16.msra.mxu0 %v5762_v41 }
  0x99   :  { %5329 = vmatprep.subr.bf16.mxu0 %v5764_v42 }
  0x9c   :  { %5330 = vmatpush3.bf16.msra.mxu0 %v5764_v42 }
  0x9d   :  { %5331 = vmatprep.subr.bf16.mxu0 %v5766_v43 }
  0x9f   :  { %5270 = vmatmul.mubr.msk.bf16.gmra.mrb[16].mxu0 %vm131_vm0, %v409_v39 }
  0xa0   :  { %5273 = vmatprep.mubr.msk.bf16.mxu0 %vm6305_vm1, %v6304_v0  ;;  %5332 = vmatpush3.bf16.msra.mxu0 %v5766_v43 }
  0xa1   :  { %5333 = vmatprep.subr.bf16.mxu0 %v5768_v44 }
  0xa4   :  { %5334 = vmatpush3.bf16.msra.mxu0 %v5768_v44 }
  0xa5   :  { %5335 = vmatprep.subr.bf16.mxu0 %v5770_v45 }
  0xa7   :  { %5274 = vmatmul.mubr.msk.bf16.gmra.mrb[20].mxu0 %vm131_vm0, %v408_v27 }
  0xa8   :  { %5336 = vmatpush3.bf16.msra.mxu0 %v5770_v45 }
  0xa9   :  { %5337 = vmatprep.subr.bf16.mxu0 %v5772_v46 }
  0xac   :  { %5338 = vmatpush3.bf16.msra.mxu0 %v5772_v46 }
 0x152   :  { %v288_v47 = vpop.f32.mrb[0].mxu0  ;;  %v378_v48 = vpop.f32.mrb[0].mxu1 }
 0x153   :  { %v379_v49 = vadd.f32 %v378_v48, %v288_v47  ;;  %v5227_v50 = vpop.f32.mrb[1].mxu0  ;;  %v5247_v51 = vpop.f32.mrb[1].mxu1  ;;  %v526_v47 = vld [vmem:[#allocation2 + $0x28] sm:$0xff] }
 0x154   :  { %v291_v52 = vpop.f32.mrb[2].mxu0  ;;  %v381_v53 = vpop.f32.mrb[2].mxu1 }
 0x155   :  { %v382_v54 = vadd.f32 %v381_v53, %v291_v52  ;;  %v5228_v55 = vpop.f32.mrb[3].mxu0  ;;  %v5248_v56 = vpop.f32.mrb[3].mxu1  ;;  %v532_v52 = vld [vmem:[#allocation2 + $0x29] sm:$0xff] }
 0x156   :  { %v538_v56 = vmax.f32 %v526_v47, %v532_v52 }
 0x15a   :  { %v296_v57 = vpop.f32.mrb[4].mxu0  ;;  %v386_v58 = vpop.f32.mrb[4].mxu1 }
 0x15b   :  { %v387_v59 = vadd.f32 %v386_v58, %v296_v57  ;;  %v5231_v60 = vpop.f32.mrb[5].mxu0  ;;  %v5251_v61 = vpop.f32.mrb[5].mxu1  ;;  %v544_v58 = vld [vmem:[#allocation2 + $0x2a] sm:$0xff] }
 0x15c   :  { %v299_v62 = vpop.f32.mrb[6].mxu0  ;;  %v389_v63 = vpop.f32.mrb[6].mxu1 }
 0x15d   :  { %v390_v0 = vadd.f32 %v389_v63, %v299_v62  ;;  %v5232_v1 = vpop.f32.mrb[7].mxu0  ;;  %v5252_v2 = vpop.f32.mrb[7].mxu1 }
 0x15e   :  { %v550_v2 = vmax.f32 %v538_v56, %v544_v58 }
 0x162   :  { %v304_v3 = vpop.f32.mrb[8].mxu0  ;;  %v394_v4 = vpop.f32.mrb[8].mxu1 }
 0x163   :  { %v395_v5 = vadd.f32 %v394_v4, %v304_v3  ;;  %v5235_v6 = vpop.f32.mrb[9].mxu0  ;;  %v5255_v7 = vpop.f32.mrb[9].mxu1 }
 0x164   :  { %v307_v8 = vpop.f32.mrb[10].mxu0  ;;  %v397_v9 = vpop.f32.mrb[10].mxu1  ;;  %v5761_v7 = vld [vmem:[%s7172_s6] sm:$0xff]  }
 0x165   :  { %v5236_v10 = vpop.f32.mrb[11].mxu0  ;;  %v5256_v11 = vpop.f32.mrb[11].mxu1  ;;  %v5760_v8 = vld [vmem:[#allocation19 + $0x8] ss:$0 sps:$4 sm:$0x11]   ;;  %v5763_v9 = vld [vmem:[%s7172_s6 + $0x8] sm:$0xff]  }
 0x166   :  { %v5765_v10 = vld [vmem:[%s7172_s6 + $0x10] sm:$0xff]   ;;  %v5767_v11 = vld [vmem:[%s7172_s6 + $0x18] sm:$0xff]  }
 0x16a   :  { %v477_v12 = vpop.f32.mrb[12].mxu0 }
 0x16b   :  { %v499_v14 = vadd.f32 %v477_v12, %v379_v49  ;;  %v5267_v15 = vpop.f32.mrb[13].mxu0  ;;  %v5769_v12 = vld [vmem:[%s7172_s6 + $0x20] sm:$0xff]  }
 0x16c   :  { %v480_v16 = vpop.f32.mrb[14].mxu0  ;;  %v5774_v15 = vld [vmem:[%s7172_s6 + $0xb0] sm:$0xff]  }
 0x16d   :  { %v505_v17 = vadd.f32 %v504_v13, %v499_v14  ;;  %v500_v18 = vadd.f32 %v480_v16, %v382_v54  ;;  %v5268_v19 = vpop.f32.mrb[15].mxu0  ;;  %v5773_v14 = vld [vmem:[%s7172_s6 + $0x30] sm:$0xff]   ;;  %5339 = vmatprep.subr.bf16.mxu0 %v5774_v15  ;;  %v5775_v16 = vld [vmem:[%s7172_s6 + $0x38] sm:$0xff]  }
 0x16e   :  { %5340 = vmatpush3.bf16.msra.mxu0 %v5774_v15  ;;  %v5798_v15 = vld [vmem:[#allocation14 + $0x60] sm:$0xff]  }
 0x16f   :  { %v510_v20 = vmax.f32 %v505_v17, 0.0  ;;  %v506_v21 = vadd.f32 %v504_v13, %v500_v18  ;;  %v5776_v17 = vld [vmem:[%s7172_s6 + $0xb8] sm:$0xff]   ;;  %v5777_v18 = vld [vmem:[%s7172_s6 + $0x40] sm:$0xff]  }
 0x170   :  { %5341 = vmatprep.subr.bf16.mxu0 %v5776_v17 }
 0x171   :  { %515 = vst [vmem:[#allocation2 + $0x1] sm:$0xff] %v510_v20  ;;  %v511_v22 = vmax.f32 %v506_v21, 0.0 }
 0x172   :  { %v485_v23 = vpop.f32.mrb[16].mxu0  ;;  %5342 = vmatpush3.bf16.msra.mxu0 %v5776_v17  ;;  %v5800_v17 = vld [vmem:[#allocation14 + $0x68] sm:$0xff]  }
 0x173   :  { %516 = vst [vmem:[#allocation2 + $0x9] sm:$0xff] %v511_v22  ;;  %v501_v24 = vadd.f32 %v485_v23, %v387_v59  ;;  %v5271_v25 = vpop.f32.mrb[17].mxu0 }
 0x174   :  { %v488_v26 = vpop.f32.mrb[18].mxu0  ;;  %v5778_v25 = vld [vmem:[%s7172_s6 + $0x48] sm:$0xff]  }
 0x175   :  { %v507_v27 = vadd.f32 %v504_v13, %v501_v24  ;;  %v502_v28 = vadd.f32 %v488_v26, %v390_v0  ;;  %v5272_v29 = vpop.f32.mrb[19].mxu0  ;;  %v5779_v26 = vld [vmem:[%s7172_s6 + $0x50] sm:$0xff]  }
 0x176   :  { %v5782_v29 = vld [vmem:[%s7172_s6 + $0x68] sm:$0xff]  }
 0x177   :  { %v512_v30 = vmax.f32 %v507_v27, 0.0  ;;  %v508_v31 = vadd.f32 %v504_v13, %v502_v28  ;;  %v5780_v27 = vld [vmem:[%s7172_s6 + $0x58] sm:$0xff]   ;;  %v5781_v28 = vld [vmem:[%s7172_s6 + $0x60] sm:$0xff]  }
 0x178   :  { %v521_v37 = vld [vmem:[#allocation2] sm:$0xff] }
 0x179   :  { %517 = vst [vmem:[#allocation2 + $0x11] sm:$0xff] %v512_v30  ;;  %v513_v32 = vmax.f32 %v508_v31, 0.0  ;;  %v533_v42 = vmax.f32 %v521_v37, %v510_v20  ;;  %v5783_v30 = vld [vmem:[%s7172_s6 + $0x70] sm:$0xff]   ;;  %v5784_v31 = vld [vmem:[%s7172_s6 + $0x78] sm:$0xff]   ;;  %v5789_v37 = vld [vmem:[#allocation14 + $0x30] sm:$0xff]  }
 0x17a   :  { %520 = vst [vmem:[#allocation2 + $0x11] sm:$0x3] %v6566_v33  ;;  %v493_v34 = vpop.f32.mrb[20].mxu0  ;;  %v522_v41 = vld [vmem:[#allocation2 + $0x8] sm:$0xff] }
 0x17b   :  { %518 = vst [vmem:[#allocation2 + $0x19] sm:$0xff] %v513_v32  ;;  %v503_v35 = vadd.f32 %v493_v34, %v395_v5  ;;  %v5275_v36 = vpop.f32.mrb[21].mxu0  ;;  %v539_v44 = vld [vmem:[#allocation2 + $0x2] sm:$0xff]  ;;  %v534_v45 = vmax.f32 %v522_v41, %v511_v22  ;;  %v5786_v34 = vld [vmem:[#allocation14 + $0x40] sm:$0xff]  }
 0x17c   :  { %v496_v38 = vpop.f32.mrb[22].mxu0  ;;  %v545_v48 = vmax.f32 %v533_v42, %v539_v44  ;;  %5371 = vmatprep.subr.bf16.mxu0 %v5786_v34  ;;  %v5788_v36 = vld [vmem:[#allocation14 + $0x48] sm:$0xff]   ;;  %v5793_v41 = vld [vmem:[#allocation14] sm:$0xff]  }
 0x17d   :  { %v509_v39 = vadd.f32 %v504_v13, %v503_v35  ;;  %v5276_v40 = vpop.f32.mrb[23].mxu0  ;;  %v5771_v13 = vld [vmem:[%s7172_s6 + $0x28] sm:$0xff]   ;;  %v5787_v35 = vld [vmem:[#allocation14 + $0x28] sm:$0xff]   ;;  %v5790_v38 = vld [vmem:[#allocation14 + $0x50] sm:$0xff]  }
 0x17e   :  { %v5792_v40 = vld [vmem:[#allocation14 + $0x58] sm:$0xff]  }
 0x17f   :  { %v514_v43 = vmax.f32 %v509_v39, 0.0  ;;  %v5791_v39 = vld [vmem:[#allocation14 + $0x38] sm:$0xff]  }
 0x181   :  { %519 = vst [vmem:[#allocation2 + $0x21] sm:$0x3] %v514_v43  ;;  %v540_v46 = vld [vmem:[#allocation2 + $0xa] sm:$0xff] }
 0x182   :  { %v546_v49 = vmax.f32 %v534_v45, %v540_v46  ;;  %v523_v50 = vld [vmem:[#allocation2 + $0x10] sm:$0xff]  ;;  %v524_v54 = vld [vmem:[#allocation2 + $0x18] sm:$0xff] }
 0x183   :  { %v529_v51 = vld [vmem:[#allocation2 + $0x11] sm:$0xff]  ;;  %v536_v59 = vmax.f32 %v524_v54, %v513_v32 }
 0x184   :  { %v554_v53 = vpack.c.bf16 %v546_v49, %v545_v48  ;;  %v535_v55 = vmax.f32 %v523_v50, %v529_v51  ;;  %v541_v57 = vld [vmem:[#allocation2 + $0x12] sm:$0xff] }
 0x185   :  { %v5785_v32 = vld [vmem:[#allocation14 + $0x20] sm:$0xff]  }
 0x186   :  { %5277 = vmatprep.subr.bf16.mxu1 %v554_v53  ;;  %v547_v63 = vmax.f32 %v535_v55, %v541_v57 }
 0x187   :  { %5278 = vmatpush3.bf16.msra.mxu1 %v554_v53 }
 0x188   :  { %v542_v60 = vld [vmem:[#allocation2 + $0x1a] sm:$0xff]  ;;  %v543_v3 = vld [vmem:[#allocation2 + $0x22] sm:$0xff] }
 0x189   :  { %v525_v61 = vld [vmem:[#allocation2 + $0x20] sm:$0xff]  ;;  %v548_v0 = vmax.f32 %v536_v59, %v542_v60 }
 0x18a   :  { %v531_v62 = vld [vmem:[#allocation2 + $0x21] sm:$0xff] }
 0x18b   :  { %v537_v1 = vmax.f32 %v525_v61, %v531_v62  ;;  %v555_v4 = vpack.c.bf16 %v548_v0, %v547_v63 }
 0x18d   :  { %v549_v5 = vmax.f32 %v537_v1, %v543_v3  ;;  %5279 = vmatprep.subr.bf16.mxu1 %v555_v4 }
 0x18e   :  { %5280 = vmatpush3.bf16.msra.mxu1 %v555_v4 }
 0x18f   :  { %v556_v6 = vpack.c.bf16 %v550_v2, %v549_v5 }
 0x191   :  { %5281 = vmatprep.subr.bf16.mxu1 %v556_v6 }
 0x192   :  { %5282 = vmatpush3.bf16.msra.mxu1 %v556_v6 }
 0x193   :  { %5287 = vmatprep.subr.bf16.mxu1 %v5761_v7 }
 0x195   :  { %5284 = vmatmul.mubr.msk.bf16.vlgmr.msra.gmra.mrb[12].mxu1 %vm565_vm4, %v5760_v8  ;;  %v5794_v8 = vld [vmem:[#allocation14 + $0x8] sm:$0xff]  }
 0x196   :  { %5288 = vmatpush3.bf16.msra.mxu1 %v5761_v7 }
 0x197   :  { %5289 = vmatprep.subr.bf16.mxu1 %v5763_v9 }
 0x19a   :  { %5290 = vmatpush3.bf16.msra.mxu1 %v5763_v9 }
 0x19b   :  { %5291 = vmatprep.subr.bf16.mxu1 %v5765_v10 }
 0x19e   :  { %5292 = vmatpush3.bf16.msra.mxu1 %v5765_v10  ;;  %v5795_v10 = vld [vmem:[#allocation14 + $0x10] sm:$0xff]  }
 0x19f   :  { %5293 = vmatprep.subr.bf16.mxu1 %v5767_v11 }
 0x1a2   :  { %5294 = vmatpush3.bf16.msra.mxu1 %v5767_v11  ;;  %v5796_v11 = vld [vmem:[#allocation14 + $0x18] sm:$0xff]  }
 0x1a3   :  { %5295 = vmatprep.subr.bf16.mxu1 %v5769_v12 }
 0x1a6   :  { %5296 = vmatpush3.bf16.msra.mxu1 %v5769_v12 }
 0x1a7   :  { %5297 = vmatprep.subr.bf16.mxu1 %v5771_v13 }
 0x1aa   :  { %5298 = vmatpush3.bf16.msra.mxu1 %v5771_v13 }
 0x1ab   :  { %5299 = vmatprep.subr.bf16.mxu1 %v5773_v14 }
 0x1ae   :  { %5300 = vmatpush3.bf16.msra.mxu1 %v5773_v14  ;;  %v5797_v14 = vld [vmem:[#allocation14 + $0x80] sm:$0xff]  }
 0x1af   :  { %5301 = vmatprep.subr.bf16.mxu1 %v5775_v16 }
 0x1b2   :  { %5302 = vmatpush3.bf16.msra.mxu1 %v5775_v16  ;;  %v5799_v16 = vld [vmem:[#allocation14 + $0x88] sm:$0xff]  }
 0x1b3   :  { %5307 = vmatprep.subr.bf16.mxu1 %v5777_v18 }
 0x268   :  { %v5285_v19 = vpop.f32.mrb[12].mxu1 }
 0x269   :  { %v606_v20 = vpop.f32.mrb[13].mxu1  ;;  %v621_v24 = vpack.c.bf16 %v5285_v19, %v5285_v19  ;;  %v5802_v19 = vld [vmem:[#allocation14 + $0x70] sm:$0xff]  }
 0x26a   :  { %v5286_v21 = vpop.f32.mrb[14].mxu1 }
 0x26b   :  { %v609_v22 = vpop.f32.mrb[15].mxu1  ;;  %v5804_v21 = vld [vmem:[#allocation14 + $0x78] sm:$0xff]  }
 0x26c   :  { %v620_v23 = vpack.c.bf16 %v609_v22, %v606_v20  ;;  %v5803_v20 = vld [vmem:[#allocation14 + $0x98] sm:$0xff]   ;;  %v5805_v22 = vld [vmem:[#allocation14 + $0xa0] sm:$0xff]  }
 0x26e   :  { %5303 = vmatprep.mubr.bf16.mxu1 %v620_v23  ;;  %5343 = vmatprep.mubr.bf16.mxu0 %v620_v23 }
 0x26f   :  { %5304 = vmatmul.mubr.bf16.vlgmr.msra.gmra.mrb[16].mxu1 %v621_v24  ;;  %5344 = vmatmul.mubr.bf16.vlgmr.msra.gmra.mrb[24].mxu0 %v621_v24 }
 0x270   :  { %5308 = vmatpush3.bf16.msra.mxu1 %v5777_v18  ;;  %5323 = vmatprep.mubr.bf16.mxu1 %v620_v23  ;;  %v5801_v18 = vld [vmem:[#allocation14 + $0x90] sm:$0xff]  }
 0x271   :  { %5309 = vmatprep.subr.bf16.mxu1 %v5778_v25  ;;  %5372 = vmatpush3.bf16.msra.mxu0 %v5786_v34 }
 0x272   :  { %5373 = vmatprep.subr.bf16.mxu0 %v5788_v36 }
 0x274   :  { %5310 = vmatpush3.bf16.msra.mxu1 %v5778_v25 }
 0x275   :  { %5311 = vmatprep.subr.bf16.mxu1 %v5779_v26  ;;  %5374 = vmatpush3.bf16.msra.mxu0 %v5788_v36 }
 0x276   :  { %5375 = vmatprep.subr.bf16.mxu0 %v5790_v38 }
 0x278   :  { %5312 = vmatpush3.bf16.msra.mxu1 %v5779_v26 }
 0x279   :  { %5313 = vmatprep.subr.bf16.mxu1 %v5780_v27  ;;  %5376 = vmatpush3.bf16.msra.mxu0 %v5790_v38 }
 0x27a   :  { %5377 = vmatprep.subr.bf16.mxu0 %v5792_v40 }
 0x27c   :  { %5314 = vmatpush3.bf16.msra.mxu1 %v5780_v27 }
 0x27d   :  { %5315 = vmatprep.subr.bf16.mxu1 %v5781_v28  ;;  %5378 = vmatpush3.bf16.msra.mxu0 %v5792_v40 }
 0x27e   :  { %5395 = vmatprep.subr.bf16.mxu0 %v5798_v15 }
 0x280   :  { %5316 = vmatpush3.bf16.msra.mxu1 %v5781_v28 }
 0x281   :  { %5317 = vmatprep.subr.bf16.mxu1 %v5782_v29 }
 0x284   :  { %5318 = vmatpush3.bf16.msra.mxu1 %v5782_v29 }
 0x285   :  { %5319 = vmatprep.subr.bf16.mxu1 %v5783_v30 }
 0x288   :  { %5320 = vmatpush3.bf16.msra.mxu1 %v5783_v30 }
 0x289   :  { %5321 = vmatprep.subr.bf16.mxu1 %v5784_v31 }
 0x28c   :  { %5322 = vmatpush3.bf16.msra.mxu1 %v5784_v31 }
 0x28d   :  { %5347 = vmatprep.subr.bf16.mxu1 %v5785_v32 }
 0x28f   :  { %5324 = vmatmul.mubr.bf16.vlgmr.msra.gmra.mrb[20].mxu1 %v621_v24 }
 0x290   :  { %5348 = vmatpush3.bf16.msra.mxu1 %v5785_v32 }
 0x291   :  { %5349 = vmatprep.subr.bf16.mxu1 %v5787_v35 }
 0x294   :  { %5350 = vmatpush3.bf16.msra.mxu1 %v5787_v35  ;;  %v1249_v35 = vld [vmem:[%s7175_s9 + $0x1] ss:$0 sm:$0xff] }
 0x295   :  { %5351 = vmatprep.subr.bf16.mxu1 %v5789_v37 }
 0x298   :  { %5352 = vmatpush3.bf16.msra.mxu1 %v5789_v37 }
 0x299   :  { %5353 = vmatprep.subr.bf16.mxu1 %v5791_v39 }
 0x29c   :  { %5354 = vmatpush3.bf16.msra.mxu1 %v5791_v39 }
 0x29d   :  { %5359 = vmatprep.subr.bf16.mxu1 %v5793_v41 }
 0x342   :  { %v5305_v42 = vpop.f32.mrb[16].mxu1  ;;  %v5345_v43 = vpop.f32.mrb[24].mxu0 }
 0x343   :  { %v720_v44 = vpop.f32.mrb[17].mxu1  ;;  %v949_v45 = vpop.f32.mrb[25].mxu0 }
 0x344   :  { %v5306_v46 = vpop.f32.mrb[18].mxu1  ;;  %v5346_v47 = vpop.f32.mrb[26].mxu0 }
 0x345   :  { %v723_v48 = vpop.f32.mrb[19].mxu1  ;;  %v952_v49 = vpop.f32.mrb[27].mxu0 }
 0x362   :  { %v5325_v50 = vpop.f32.mrb[20].mxu1 }
 0x363   :  { %v849_v51 = vmax.f32 %v5305_v42, %v5325_v50  ;;  %v833_v52 = vpop.f32.mrb[21].mxu1 }
 0x364   :  { %v847_v53 = vmax.f32 %v720_v44, %v833_v52  ;;  %v5326_v54 = vpop.f32.mrb[22].mxu1 }
 0x365   :  { %v965_v55 = vmax.f32 %v849_v51, %v5345_v43  ;;  %v836_v56 = vpop.f32.mrb[23].mxu1 }
 0x366   :  { %v963_v57 = vmax.f32 %v847_v53, %v949_v45  ;;  %v848_v58 = vmax.f32 %v723_v48, %v836_v56 }
 0x367   :  { %969 = vst.msk [vmem:[#allocation3 + $0x11] sm:$0x3] %vm968_vm6, %v965_v55 }
 0x368   :  { %966 = vst.msk [vmem:[#allocation3 + $0x1] sm:$0xff] %vm131_vm0, %v963_v57  ;;  %v964_v59 = vmax.f32 %v848_v58, %v952_v49 }
 0x36a   :  { %967 = vst.msk [vmem:[#allocation3 + $0x9] sm:$0xff] %vm131_vm0, %v964_v59 }
 0x36b   :  { %970 = vst.msk [vmem:[#allocation3 + $0x9] sm:$0x3] %vm968_vm6, %v6566_v33 }
 0x36e   :  { %v1004_v61 = vld [vmem:[#allocation3 + $0x11] sm:$0x3] }
 0x36f   :  { %v6638_v60 = vld [vmem:[#allocation3 + $0x1] sm:$0xff]  ;;  %v1165_v62 = vld [vmem:[#allocation3 + $0x12] sm:$0x3]  ;;  %v1006_v5 = vpack.c.bf16 %v1004_v61, %v1004_v61 }
 0x370   :  { %v1167_v6 = vpack.c.bf16 %v1165_v62, %v1165_v62  ;;  %v997_v7 = vld [vmem:[#allocation3] sm:$0xff] }
 0x371   :  { %v999_v12 = vld [vmem:[#allocation3 + $0x10] sm:$0x3]  ;;  %v5806_v62 = vld [vmem:[#allocation14 + $0xa8] sm:$0xff]  }
 0x372   :  { %v6640_v63 = vld [vmem:[#allocation3 + $0x9] sm:$0xff]  ;;  %v1001_v13 = vpack.c.bf16 %v999_v12, %v999_v12 }
 0x373   :  { %v1163_v0 = vld [vmem:[#allocation3 + $0x2] sm:$0xff]  ;;  %v1164_v1 = vld [vmem:[#allocation3 + $0xa] sm:$0xff]  ;;  %v1005_v2 = vpack.c.bf16 %v6640_v63, %v6638_v60 }
 0x374   :  { %v1166_v3 = vpack.c.bf16 %v1164_v1, %v1163_v0  ;;  %v998_v4 = vld [vmem:[#allocation3 + $0x8] sm:$0xff] }
 0x375   :  { %5355 = vmatprep.mubr.msk.bf16.mxu1 %vm131_vm0, %v1005_v2  ;;  %v1000_v9 = vpack.c.bf16 %v998_v4, %v997_v7  ;;  %v5807_v1 = vld [vmem:[#allocation14 + $0xb0] sm:$0xff]   ;;  %v5808_v2 = vld [vmem:[#allocation14 + $0xb8] sm:$0xff]  }
 0x376   :  { %5379 = vmatprep.mubr.msk.bf16.mxu0 %vm131_vm0, %v1166_v3  ;;  %5356 = vmatmul.mubr.msk.bf16.vlgmr.msra.gmra.mrb[24].mxu1 %vm131_vm0, %v1006_v5  ;;  %v5809_v5 = vld [vmem:[#allocation14 + $0xe0] sm:$0xff]   ;;  %v5811_v7 = vld [vmem:[#allocation14 + $0xf0] sm:$0xff]  }
 0x377   :  { %5380 = vmatmul.mubr.msk.bf16.vlgmr.msra.gmra.mrb[28].mxu0 %vm131_vm0, %v1167_v6  ;;  %5360 = vmatpush3.bf16.msra.mxu1 %v5793_v41  ;;  %v5810_v6 = vld [vmem:[#allocation14 + $0xe8] sm:$0xff]  }
 0x378   :  { %5367 = vmatprep.mubr.msk.bf16.mxu1 %vm131_vm0, %v1000_v9  ;;  %5361 = vmatprep.subr.bf16.mxu1 %v5794_v8  ;;  %v5813_v9 = vld [vmem:[#allocation14 + $0xc0] sm:$0xff]  }
 0x379   :  { %5396 = vmatpush3.bf16.msra.mxu0 %v5798_v15 }
 0x37a   :  { %5397 = vmatprep.subr.bf16.mxu0 %v5800_v17 }
 0x37b   :  { %5362 = vmatpush3.bf16.msra.mxu1 %v5794_v8  ;;  %v5812_v8 = vld [vmem:[#allocation14 + $0xf8] sm:$0xff]  }
 0x37c   :  { %5363 = vmatprep.subr.bf16.mxu1 %v5795_v10 }
 0x37d   :  { %5398 = vmatpush3.bf16.msra.mxu0 %v5800_v17 }
 0x37e   :  { %5399 = vmatprep.subr.bf16.mxu0 %v5802_v19 }
 0x37f   :  { %5364 = vmatpush3.bf16.msra.mxu1 %v5795_v10 }
 0x380   :  { %5365 = vmatprep.subr.bf16.mxu1 %v5796_v11 }
 0x381   :  { %5400 = vmatpush3.bf16.msra.mxu0 %v5802_v19 }
 0x382   :  { %5401 = vmatprep.subr.bf16.mxu0 %v5804_v21 }
 0x383   :  { %5366 = vmatpush3.bf16.msra.mxu1 %v5796_v11 }
 0x384   :  { %5383 = vmatprep.subr.bf16.mxu1 %v5797_v14 }
 0x385   :  { %5402 = vmatpush3.bf16.msra.mxu0 %v5804_v21 }
 0x386   :  { %5368 = vmatmul.mubr.msk.bf16.vlgmr.msra.gmra.mrb[28].mxu1 %vm131_vm0, %v1001_v13  ;;  %5419 = vmatprep.subr.bf16.mxu0 %v5809_v5 }
 0x387   :  { %5384 = vmatpush3.bf16.msra.mxu1 %v5797_v14 }
 0x388   :  { %5385 = vmatprep.subr.bf16.mxu1 %v5799_v16 }
 0x38b   :  { %5386 = vmatpush3.bf16.msra.mxu1 %v5799_v16 }
 0x38c   :  { %5387 = vmatprep.subr.bf16.mxu1 %v5801_v18 }
 0x38f   :  { %5388 = vmatpush3.bf16.msra.mxu1 %v5801_v18 }
 0x390   :  { %5389 = vmatprep.subr.bf16.mxu1 %v5803_v20 }
 0x393   :  { %5390 = vmatpush3.bf16.msra.mxu1 %v5803_v20 }
 0x394   :  { %5407 = vmatprep.subr.bf16.mxu1 %v5805_v22 }
 0x449   :  { %v5357_v23 = vpop.f32.mrb[24].mxu1 }
 0x44a   :  { %v5381_v24 = vpop.f32.mrb[28].mxu0  ;;  %v1071_v25 = vpop.f32.mrb[25].mxu1 }
 0x44b   :  { %v1232_v26 = vpop.f32.mrb[29].mxu0  ;;  %v5358_v27 = vpop.f32.mrb[26].mxu1 }
 0x44c   :  { %v5382_v28 = vpop.f32.mrb[30].mxu0  ;;  %v1074_v29 = vpop.f32.mrb[27].mxu1 }
 0x44d   :  { %v1235_v30 = vpop.f32.mrb[31].mxu0 }
 0x459   :  { %v5369_v31 = vpop.f32.mrb[28].mxu1 }
 0x45a   :  { %v1158_v32 = vadd.f32 %v5369_v31, %v5357_v23  ;;  %v1149_v34 = vpop.f32.mrb[29].mxu1 }
 0x45b   :  { %v1150_v36 = vadd.f32 %v1149_v34, %v1071_v25  ;;  %v5370_v37 = vpop.f32.mrb[30].mxu1 }
 0x45c   :  { %v1248_v38 = vadd.f32 %v5381_v24, %v1158_v32  ;;  %v1152_v39 = vpop.f32.mrb[31].mxu1 }
 0x45d   :  { %v1246_v40 = vadd.f32 %v1232_v26, %v1150_v36  ;;  %v1153_v41 = vadd.f32 %v1152_v39, %v1074_v29  ;;  %v1545_v29 = vld [vmem:[#allocation3 + $0x11] sm:$0x3] }
 0x45e   :  { %v1252_v42 = vadd.f32 %v1249_v35, %v1248_v38 }
 0x45f   :  { %v1250_v43 = vadd.f32 %v1249_v35, %v1246_v40  ;;  %v1247_v44 = vadd.f32 %v1235_v30, %v1153_v41  ;;  %v1592_v41 = vld [vmem:[#allocation5 + $0x19] sm:$0xff] }
 0x460   :  { %v1255_v45 = vmax.f32 %v1252_v42, 0.0 }
 0x461   :  { %v1253_v46 = vmax.f32 %v1250_v43, 0.0  ;;  %v1251_v47 = vadd.f32 %v1249_v35, %v1247_v44 }
 0x462   :  { %1258 = vst.msk [vmem:[#allocation4 + $0x11] sm:$0x3] %vm968_vm6, %v1255_v45 }
 0x463   :  { %1256 = vst.msk [vmem:[#allocation4 + $0x1] sm:$0xff] %vm131_vm0, %v1253_v46  ;;  %v1254_v48 = vmax.f32 %v1251_v47, 0.0  ;;  %v5814_v47 = vld [vmem:[#allocation14 + $0xc8] sm:$0xff]  }
 0x465   :  { %1257 = vst.msk [vmem:[#allocation4 + $0x9] sm:$0xff] %vm131_vm0, %v1254_v48  ;;  %v5815_v48 = vld [vmem:[#allocation14 + $0xd0] sm:$0xff]  }
 0x466   :  { %1259 = vst.msk [vmem:[#allocation4 + $0x9] sm:$0x3] %vm968_vm6, %v6566_v33 }
 0x469   :  { %v1294_v49 = vld [vmem:[#allocation4 + $0x11] sm:$0x3] }
 0x46a   :  { %v1292_v50 = vld [vmem:[#allocation4 + $0x1] sm:$0xff]  ;;  %v1296_v59 = vpack.c.bf16 %v1294_v49, %v1294_v49  ;;  %v1455_v3 = vld [vmem:[#allocation4 + $0x12] sm:$0x3]  ;;  %v5816_v49 = vld [vmem:[#allocation14 + $0xd8] sm:$0xff]  }
 0x46b   :  { %v1287_v51 = vld [vmem:[#allocation4] sm:$0xff]  ;;  %v1457_v4 = vpack.c.bf16 %v1455_v3, %v1455_v3 }
 0x46c   :  { %v1289_v52 = vld [vmem:[#allocation4 + $0x10] sm:$0x3] }
 0x46d   :  { %v1293_v53 = vld [vmem:[#allocation4 + $0x9] sm:$0xff]  ;;  %v1291_v61 = vpack.c.bf16 %v1289_v52, %v1289_v52 }
 0x46e   :  { %v1288_v54 = vld [vmem:[#allocation4 + $0x8] sm:$0xff]  ;;  %v1295_v56 = vpack.c.bf16 %v1293_v53, %v1292_v50  ;;  %v5817_v50 = vld [vmem:[#allocation14 + $0x100] sm:$0xff]   ;;  %v1586_v52 = vld [vmem:[#allocation5 + $0x18] sm:$0xff] }
 0x46f   :  { %v1453_v55 = vld [vmem:[#allocation4 + $0x2] sm:$0xff]  ;;  %v1290_v57 = vpack.c.bf16 %v1288_v54, %v1287_v51  ;;  %v1454_v58 = vld [vmem:[#allocation4 + $0xa] sm:$0xff] }
 0x470   :  { %5391 = vmatprep.mubr.msk.bf16.mxu1 %vm131_vm0, %v1295_v56  ;;  %v1456_v0 = vpack.c.bf16 %v1454_v58, %v1453_v55  ;;  %v5818_v56 = vld [vmem:[#allocation14 + $0x108] sm:$0xff]   ;;  %v5819_v58 = vld [vmem:[#allocation14 + $0x110] sm:$0xff]  }
 0x471   :  { %5403 = vmatprep.mubr.msk.bf16.mxu0 %vm131_vm0, %v1290_v57  ;;  %5392 = vmatmul.mubr.msk.bf16.vlgmr.msra.gmra.mrb[32].mxu1 %vm131_vm0, %v1296_v59  ;;  %v5820_v59 = vld [vmem:[#allocation14 + $0x118] sm:$0xff]  }
 0x472   :  { %5404 = vmatmul.mubr.msk.bf16.vlgmr.msra.gmra.mrb[32].mxu0 %vm131_vm0, %v1291_v61  ;;  %5408 = vmatpush3.bf16.msra.mxu1 %v5805_v22  ;;  %v1539_v22 = vld [vmem:[%s7175_s9 + $0x2] ss:$0 sm:$0xff] }
 0x473   :  { %5415 = vmatprep.mubr.msk.bf16.mxu1 %vm131_vm0, %v1456_v0  ;;  %5409 = vmatprep.subr.bf16.mxu1 %v5806_v62 }
 0x474   :  { %5420 = vmatpush3.bf16.msra.mxu0 %v5809_v5 }
 0x475   :  { %5421 = vmatprep.subr.bf16.mxu0 %v5810_v6 }
 0x476   :  { %5410 = vmatpush3.bf16.msra.mxu1 %v5806_v62  ;;  %v1756_v62 = vld [vmem:[#allocation5 + $0x1a] sm:$0xff] }
 0x477   :  { %5411 = vmatprep.subr.bf16.mxu1 %v5807_v1 }
 0x478   :  { %5422 = vmatpush3.bf16.msra.mxu0 %v5810_v6 }
 0x479   :  { %5423 = vmatprep.subr.bf16.mxu0 %v5811_v7 }
 0x47a   :  { %5412 = vmatpush3.bf16.msra.mxu1 %v5807_v1 }
 0x47b   :  { %5413 = vmatprep.subr.bf16.mxu1 %v5808_v2 }
 0x47c   :  { %5424 = vmatpush3.bf16.msra.mxu0 %v5811_v7  ;;  %v5821_v7 = vld [vmem:[%s7174_s8] sm:$0x1f]  }
 0x47d   :  { %5425 = vmatprep.subr.bf16.mxu0 %v5812_v8 }
 0x47e   :  { %5414 = vmatpush3.bf16.msra.mxu1 %v5808_v2 }
 0x47f   :  { %5455 = vmatprep.subr.bf16.mxu1 %v6566_v33 }
 0x480   :  { %5426 = vmatpush3.bf16.msra.mxu0 %v5812_v8  ;;  %v5822_v8 = vld [vmem:[%s7174_s8] sm:$0x1f]  }
 0x481   :  { %5416 = vmatmul.mubr.msk.bf16.vlgmr.msra.gmra.mrb[36].mxu1 %vm131_vm0, %v1457_v4  ;;  %5431 = vmatprep.subr.bf16.mxu0 %v5813_v9 }
 0x482   :  { %5459 = vmatprep.mubr.msk.bf16.mxu1 %vm6305_vm1, %v6566_v33 }
 0x544   :  { %v5393_v10 = vpop.f32.mrb[32].mxu1 }
 0x545   :  { %v5405_v11 = vpop.f32.mrb[32].mxu0  ;;  %v1361_v13 = vpop.f32.mrb[33].mxu1 }
 0x546   :  { %v1448_v12 = vadd.f32 %v5405_v11, %v5393_v10  ;;  %v1439_v14 = vpop.f32.mrb[33].mxu0  ;;  %v5394_v16 = vpop.f32.mrb[34].mxu1  ;;  %v5824_v10 = vld [vmem:[#allocation14 + $0x128] sm:$0xff]   ;;  %v5825_v11 = vld [vmem:[#allocation14 + $0x130] sm:$0xff]  }
 0x547   :  { %v1440_v15 = vadd.f32 %v1439_v14, %v1361_v13  ;;  %v5406_v17 = vpop.f32.mrb[34].mxu0  ;;  %v1364_v18 = vpop.f32.mrb[35].mxu1  ;;  %v1846_v13 = vld [vmem:[%s7175_s9 + $0x3] ss:$0 sm:$0xff] }
 0x548   :  { %v1442_v19 = vpop.f32.mrb[35].mxu0 }
 0x549   :  { %v1443_v20 = vadd.f32 %v1442_v19, %v1364_v18 }
 0x554   :  { %v5417_v21 = vpop.f32.mrb[36].mxu1 }
 0x555   :  { %v1538_v23 = vadd.f32 %v5417_v21, %v1448_v12  ;;  %v1522_v24 = vpop.f32.mrb[37].mxu1  ;;  %v5826_v12 = vld [vmem:[#allocation14 + $0x138] sm:$0xff]  }
 0x556   :  { %v1536_v25 = vadd.f32 %v1522_v24, %v1440_v15  ;;  %v5418_v26 = vpop.f32.mrb[38].mxu1 }
 0x557   :  { %v1542_v27 = vadd.f32 %v1539_v22, %v1538_v23  ;;  %v1525_v28 = vpop.f32.mrb[39].mxu1 }
 0x558   :  { %v1540_v30 = vadd.f32 %v1539_v22, %v1536_v25  ;;  %v1537_v31 = vadd.f32 %v1525_v28, %v1443_v20  ;;  %v5827_v25 = vld [vmem:[#allocation14 + $0x160] sm:$0xff]   ;;  %v5828_v28 = vld [vmem:[#allocation14 + $0x168] sm:$0xff]  }
 0x559   :  { %v1548_v32 = vadd.f32 %v1545_v29, %v1542_v27  ;;  %v5829_v29 = vld [vmem:[#allocation14 + $0x170] sm:$0xff]  }
 0x55a   :  { %v1546_v34 = vadd.f32 %v1540_v30, %v6638_v60  ;;  %v1541_v35 = vadd.f32 %v1539_v22, %v1537_v31  ;;  %v5830_v30 = vld [vmem:[#allocation14 + $0x178] sm:$0xff]  }
 0x55b   :  { %v1551_v36 = vmax.f32 %v1548_v32, 0.0 }
 0x55c   :  { %v1549_v37 = vmax.f32 %v1546_v34, 0.0  ;;  %v1547_v38 = vadd.f32 %v1541_v35, %v6640_v63  ;;  %v5831_v34 = vld [vmem:[#allocation14 + $0x140] sm:$0xff]  }
 0x55d   :  { %1554 = vst.msk [vmem:[#allocation5 + $0x11] sm:$0x3] %vm968_vm6, %v1551_v36  ;;  %v5832_v36 = vld [vmem:[#allocation14 + $0x148] sm:$0xff]  }
 0x55e   :  { %1552 = vst.msk [vmem:[#allocation5 + $0x1] sm:$0xff] %vm131_vm0, %v1549_v37  ;;  %v1550_v39 = vmax.f32 %v1547_v38, 0.0  ;;  %v5833_v37 = vld [vmem:[#allocation14 + $0x150] sm:$0xff]   ;;  %v5834_v38 = vld [vmem:[#allocation14 + $0x158] sm:$0xff]  }
 0x560   :  { %1553 = vst.msk [vmem:[#allocation5 + $0x9] sm:$0xff] %vm131_vm0, %v1550_v39 }
 0x561   :  { %1555 = vst.msk [vmem:[#allocation5 + $0x9] sm:$0x3] %vm968_vm6, %v6566_v33 }
 0x564   :  { %v1591_v40 = vld [vmem:[#allocation5 + $0x11] sm:$0xff] }
 0x565   :  { %v1589_v42 = vld [vmem:[#allocation5 + $0x1] sm:$0xff]  ;;  %v1594_v45 = vpack.c.bf16 %v1592_v41, %v1591_v40  ;;  %v1755_v61 = vld [vmem:[#allocation5 + $0x12] sm:$0xff] }
 0x566   :  { %v1583_v46 = vld [vmem:[#allocation5] sm:$0xff]  ;;  %v1758_v0 = vpack.c.bf16 %v1756_v62, %v1755_v61  ;;  %v5835_v41 = vld [vmem:[#allocation14 + $0x180] sm:$0xff]  }
 0x567   :  { %v1585_v51 = vld [vmem:[#allocation5 + $0x10] sm:$0xff] }
 0x568   :  { %v1590_v43 = vld [vmem:[#allocation5 + $0x9] sm:$0xff]  ;;  %v1588_v55 = vpack.c.bf16 %v1586_v52, %v1585_v51  ;;  %v5843_v51 = vld [vmem:[#allocation11 + $0x90] sm:$0xff]  }
 0x569   :  { %v1584_v60 = vld [vmem:[#allocation5 + $0x8] sm:$0xff]  ;;  %v1593_v44 = vpack.c.bf16 %v1590_v43, %v1589_v42  ;;  %v5836_v43 = vld [vmem:[#allocation14 + $0x188] sm:$0xff]   ;;  %v5844_v52 = vld [vmem:[#allocation11 + $0xd0] sm:$0xff]  }
 0x56a   :  { %v1587_v63 = vpack.c.bf16 %v1584_v60, %v1583_v46  ;;  %v1753_v53 = vld [vmem:[#allocation5 + $0x2] sm:$0xff]  ;;  %v1754_v54 = vld [vmem:[#allocation5 + $0xa] sm:$0xff]  ;;  %v5837_v60 = vld [vmem:[#allocation14 + $0x190] sm:$0xff]  }
 0x56b   :  { %5427 = vmatprep.mubr.msk.bf16.mxu0 %vm131_vm0, %v1593_v44  ;;  %v1757_v57 = vpack.c.bf16 %v1754_v54, %v1753_v53  ;;  %v5845_v53 = vld [vmem:[#allocation11 + $0x98] sm:$0xff]  }
 0x56c   :  { %5428 = vmatmul.mubr.msk.bf16.vlgmr.msra.gmra.mrb[36].mxu0 %vm131_vm0, %v1594_v45  ;;  %v5846_v54 = vld [vmem:[#allocation11 + $0xd8] sm:$0xff]  }
 0x56d   :  { %5432 = vmatpush3.bf16.msra.mxu0 %v5813_v9  ;;  %5439 = vmatprep.mubr.msk.bf16.mxu0 %vm131_vm0, %v1587_v63  ;;  %v5823_v9 = vld [vmem:[#allocation14 + $0x120] sm:$0xff]  }
 0x56e   :  { %5433 = vmatprep.subr.bf16.mxu0 %v5814_v47  ;;  %v5839_v63 = vld [vmem:[#allocation11 + $0x80] sm:$0xff]  }
 0x571   :  { %5434 = vmatpush3.bf16.msra.mxu0 %v5814_v47 }
 0x572   :  { %5435 = vmatprep.subr.bf16.mxu0 %v5815_v48 }
 0x575   :  { %5436 = vmatpush3.bf16.msra.mxu0 %v5815_v48  ;;  %v5840_v48 = vld [vmem:[#allocation11 + $0xc0] sm:$0xff]  }
 0x576   :  { %5437 = vmatprep.subr.bf16.mxu0 %v5816_v49 }
 0x579   :  { %5438 = vmatpush3.bf16.msra.mxu0 %v5816_v49  ;;  %v5841_v49 = vld [vmem:[#allocation11 + $0x88] sm:$0xff]  }
 0x57a   :  { %5443 = vmatprep.subr.bf16.mxu0 %v5817_v50 }
 0x57c   :  { %5440 = vmatmul.mubr.msk.bf16.vlgmr.msra.gmra.mrb[36].mxu0 %vm131_vm0, %v1588_v55  ;;  %v6742_v55 = vld [vmem:[#allocation2 + $0x23] sm:$0xff] }
 0x57d   :  { %5444 = vmatpush3.bf16.msra.mxu0 %v5817_v50  ;;  %5451 = vmatprep.mubr.msk.bf16.mxu0 %vm131_vm0, %v1757_v57  ;;  %v5842_v50 = vld [vmem:[#allocation11 + $0xc8] sm:$0xff]  }
 0x57e   :  { %5445 = vmatprep.subr.bf16.mxu0 %v5818_v56 }
 0x581   :  { %5446 = vmatpush3.bf16.msra.mxu0 %v5818_v56  ;;  %v1969_v56 = vld [vmem:[%s7175_s9 + $0x4] ss:$0 sm:$0xff] }
 0x582   :  { %5447 = vmatprep.subr.bf16.mxu0 %v5819_v58 }
 0x585   :  { %5448 = vmatpush3.bf16.msra.mxu0 %v5819_v58  ;;  %v2280_v58 = vld [vmem:[%s7175_s9 + $0x5] ss:$0 sm:$0xff] }
 0x586   :  { %5449 = vmatprep.subr.bf16.mxu0 %v5820_v59 }
 0x589   :  { %5450 = vmatpush3.bf16.msra.mxu0 %v5820_v59 }
 0x58a   :  { %5519 = vmatprep.subr.bf16.mxu0 %v6566_v33 }
 0x58c   :  { %5452 = vmatmul.mubr.msk.bf16.vlgmr.msra.gmra.mrb[36].mxu0 %vm131_vm0, %v1758_v0 }
 0x58d   :  { %5527 = vmatprep.mubr.msk.bf16.mxu0 %vm6305_vm1, %v6566_v33  ;;  %5520 = vmatpush3.bf16.msra.mxu0 %v5839_v63 }
 0x58e   :  { %5521 = vmatprep.subr.bf16.mxu0 %v6566_v33 }
 0x591   :  { %5522 = vmatpush3.bf16.msra.mxu0 %v5841_v49 }
 0x592   :  { %5523 = vmatprep.subr.bf16.mxu0 %v6566_v33 }
 0x595   :  { %5524 = vmatpush3.bf16.msra.mxu0 %v5843_v51 }
 0x596   :  { %5525 = vmatprep.subr.bf16.mxu0 %v6566_v33 }
 0x599   :  { %5526 = vmatpush3.bf16.msra.mxu0 %v5845_v53 }
 0x59a   :  { %5531 = vmatprep.subr.bf16.mxu0 %v6742_v55 }
 0x65f   :  { %v5453_v1 = vpop.f32.mrb[36].mxu0 }
 0x660   :  { %v1823_v2 = vpop.f32.mrb[37].mxu0 }
 0x661   :  { %v5454_v3 = vpop.f32.mrb[38].mxu0 }
 0x662   :  { %v1845_v4 = vpack.c.bf16 %v5454_v3, %v5453_v1  ;;  %v1826_v5 = vpop.f32.mrb[39].mxu0 }
 0x663   :  { %v1844_v6 = vpack.c.bf16 %v1826_v5, %v1823_v2 }
 0x665   :  { %5456 = vmatpush3.bf16.msra.mxu1 %v1844_v6 }
 0x666   :  { %5457 = vmatprep.subr.bf16.mxu1 %v6566_v33 }
 0x669   :  { %5458 = vmatpush3.bf16.msra.mxu1 %v1845_v4 }
 0x66a   :  { %5463 = vmatprep.subr.bf16.mxu1 %v6566_v33 }
 0x66c   :  { %5460 = vmatmul.mubr.msk.bf16.vlgmr.msra.gmra.mrb[40].mxu1 %vm1852_vm8, %v5821_v7  ;;  %v5847_v7 = vld [vmem:[#allocation11 + $0x60] sm:$0xff]  }
 0x66d   :  { %5464 = vmatpush3.bf16.msra.mxu1 %v1593_v44  ;;  %5467 = vmatprep.mubr.msk.bf16.mxu1 %vm6305_vm1, %v6566_v33  ;;  %v5838_v44 = vld [vmem:[#allocation14 + $0x198] sm:$0xff]  }
 0x66e   :  { %5465 = vmatprep.subr.bf16.mxu1 %v6566_v33 }
 0x671   :  { %5466 = vmatpush3.bf16.msra.mxu1 %v1594_v45 }
 0x672   :  { %5471 = vmatprep.subr.bf16.mxu1 %v6566_v33 }
 0x674   :  { %5468 = vmatmul.mubr.msk.bf16.vlgmr.msra.gmra.mrb[44].mxu1 %vm1852_vm8, %v5822_v8 }
 0x675   :  { %5472 = vmatpush3.bf16.msra.mxu1 %v5823_v9  ;;  %5479 = vmatprep.mubr.msk.bf16.mxu1 %vm6305_vm1, %v6566_v33 }
 0x676   :  { %5473 = vmatprep.subr.bf16.mxu1 %v6566_v33 }
 0x679   :  { %5474 = vmatpush3.bf16.msra.mxu1 %v5824_v10 }
 0x67a   :  { %5475 = vmatprep.subr.bf16.mxu1 %v6566_v33 }
 0x67d   :  { %5476 = vmatpush3.bf16.msra.mxu1 %v5825_v11  ;;  %v5848_v11 = vld [vmem:[#allocation11 + $0x68] sm:$0xff]  }
 0x67e   :  { %5477 = vmatprep.subr.bf16.mxu1 %v6566_v33 }
 0x681   :  { %5478 = vmatpush3.bf16.msra.mxu1 %v5826_v12  ;;  %v5849_v12 = vld [vmem:[#allocation11 + $0x70] sm:$0xff]  }
 0x682   :  { %5483 = vmatprep.subr.bf16.mxu1 %v6566_v33 }
 0x73f   :  { %v1890_v14 = vpop.f32.mrb[40].mxu1 }
 0x740   :  { %v1891_v15 = vadd.f32 %v1890_v14, %v1846_v13  ;;  %v5461_v16 = vpop.f32.mrb[41].mxu1 }
 0x741   :  { %v1893_v17 = vpop.f32.mrb[42].mxu1  ;;  %v5851_v16 = vld [vmem:[#allocation11 + $0xa0] sm:$0xff]  }
 0x742   :  { %v1897_v18 = vmax.f32 %v1891_v15, 0.0  ;;  %v1894_v19 = vadd.f32 %v1893_v17, %v1846_v13  ;;  %v5462_v20 = vpop.f32.mrb[43].mxu1  ;;  %v5850_v13 = vld [vmem:[#allocation11 + $0x78] sm:$0xff]  }
 0x743   :  { %v5854_v20 = vld [vmem:[#allocation11 + $0xb8] sm:$0xff]  }
 0x744   :  { %1899 = vst.msk [vmem:[#allocation6 + $0x1] sm:$0xff] %vm131_vm0, %v1897_v18  ;;  %v1898_v21 = vmax.f32 %v1894_v19, 0.0  ;;  %v5852_v18 = vld [vmem:[#allocation11 + $0xa8] sm:$0xff]   ;;  %v5853_v19 = vld [vmem:[#allocation11 + $0xb0] sm:$0xff]  }
 0x745   :  { %1901 = vst.msk [vmem:[#allocation6 + $0x5] sm:$0x3] %vm968_vm6, %v6566_v33 }
 0x746   :  { %1900 = vst.msk [vmem:[#allocation6 + $0x9] sm:$0x3] %vm968_vm6, %v1898_v21 }
 0x747   :  { %v1952_v22 = vpop.f32.mrb[44].mxu1 }
 0x748   :  { %v5469_v23 = vpop.f32.mrb[45].mxu1 }
 0x749   :  { %v1955_v24 = vpop.f32.mrb[46].mxu1 }
 0x74a   :  { %v1959_v26 = vpack.c.bf16 %v1955_v24, %v1952_v22  ;;  %v5470_v27 = vpop.f32.mrb[47].mxu1  ;;  %v5855_v24 = vld [vmem:[#allocation16 + $0x40] sm:$0xff]  }
 0x74b   :  { %v5858_v27 = vld [vmem:[#allocation16 + $0x58] sm:$0xff]  }
 0x74c   :  { %5480 = vmatmul.mubr.msk.bf16.vlgmr.msra.gmra.mrb[48].mxu1 %vm131_vm0, %v1959_v26  ;;  %v2068_v31 = vld [vmem:[#allocation6 + $0x1] sm:$0xff]  ;;  %v5857_v26 = vld [vmem:[#allocation16 + $0x50] sm:$0xff]  }
 0x74d   :  { %5484 = vmatpush3.bf16.msra.mxu1 %v5827_v25  ;;  %5491 = vmatprep.mubr.msk.bf16.mxu1 %vm6305_vm1, %v6566_v33  ;;  %v2069_v32 = vld [vmem:[#allocation6 + $0x9] sm:$0x3]  ;;  %v2065_v39 = vld [vmem:[#allocation6] sm:$0xff] }
 0x74e   :  { %5485 = vmatprep.subr.bf16.mxu1 %v6566_v33  ;;  %v2070_v35 = vpack.c.bf16 %v2069_v32, %v2068_v31  ;;  %v2066_v40 = vld [vmem:[#allocation6 + $0x8] sm:$0x3]  ;;  %v2208_v46 = vld [vmem:[#allocation6 + $0xa] sm:$0x3]  ;;  %v5862_v31 = vld [vmem:[#allocation16 + $0x78] sm:$0xff]  }
 0x74f   :  { %v2067_v42 = vpack.c.bf16 %v2066_v40, %v2065_v39  ;;  %v2207_v45 = vld [vmem:[#allocation6 + $0x2] sm:$0xff]  ;;  %v5890_v39 = vld [vmem:[#allocation17 + $0xb4] ss:$8 sps:$4 sm:$0xff]   ;;  %v5888_v40 = vld [vmem:[#allocation17 + $0xb0] ss:$8 sps:$4 sm:$0xff]  }
 0x750   :  { %v2209_v47 = vpack.c.bf16 %v2208_v46, %v2207_v45  ;;  %v5856_v25 = vld [vmem:[#allocation16 + $0x48] sm:$0xff]  }
 0x751   :  { %5486 = vmatpush3.bf16.msra.mxu1 %v5828_v28  ;;  %v5859_v28 = vld [vmem:[#allocation16 + $0x60] sm:$0xff]  }
 0x752   :  { %5487 = vmatprep.subr.bf16.mxu1 %v6566_v33  ;;  %v5879_v32 = vld [vmem:[#allocation17 + $0x80] ss:$8 sps:$4 sm:$0xff]  }
 0x755   :  { %5488 = vmatpush3.bf16.msra.mxu1 %v5829_v29  ;;  %v5860_v29 = vld [vmem:[#allocation16 + $0x68] sm:$0xff]  }
 0x756   :  { %5489 = vmatprep.subr.bf16.mxu1 %v6566_v33 }
 0x759   :  { %5490 = vmatpush3.bf16.msra.mxu1 %v5830_v30  ;;  %v5861_v30 = vld [vmem:[#allocation16 + $0x70] sm:$0xff]  }
 0x75a   :  { %5495 = vmatprep.subr.bf16.mxu1 %v6566_v33 }
 0x75c   :  { %5492 = vmatmul.mubr.msk.bf16.vlgmr.msra.gmra.mrb[48].mxu1 %vm131_vm0, %v2070_v35  ;;  %v5884_v35 = vld [vmem:[#allocation17 + $0x94] ss:$8 sps:$4 sm:$0xff]  }
 0x75d   :  { %5496 = vmatpush3.bf16.msra.mxu1 %v5831_v34  ;;  %5503 = vmatprep.mubr.msk.bf16.mxu1 %vm6305_vm1, %v6566_v33  ;;  %v5881_v34 = vld [vmem:[#allocation17 + $0x84] ss:$8 sps:$4 sm:$0xff]  }
 0x75e   :  { %5497 = vmatprep.subr.bf16.mxu1 %v6566_v33 }
 0x761   :  { %5498 = vmatpush3.bf16.msra.mxu1 %v5832_v36  ;;  %v5882_v36 = vld [vmem:[#allocation17 + $0x90] ss:$8 sps:$4 sm:$0xff]  }
 0x762   :  { %5499 = vmatprep.subr.bf16.mxu1 %v6566_v33 }
 0x765   :  { %5500 = vmatpush3.bf16.msra.mxu1 %v5833_v37  ;;  %v5887_v37 = vld [vmem:[#allocation17 + $0xa4] ss:$8 sps:$4 sm:$0xff]  }
 0x766   :  { %5501 = vmatprep.subr.bf16.mxu1 %v6566_v33 }
 0x769   :  { %5502 = vmatpush3.bf16.msra.mxu1 %v5834_v38  ;;  %v5885_v38 = vld [vmem:[#allocation17 + $0xa0] ss:$8 sps:$4 sm:$0xff]  }
 0x76a   :  { %5507 = vmatprep.subr.bf16.mxu1 %v6566_v33 }
 0x76c   :  { %5504 = vmatmul.mubr.msk.bf16.vlgmr.msra.gmra.mrb[48].mxu1 %vm131_vm0, %v2067_v42 }
 0x76d   :  { %5508 = vmatpush3.bf16.msra.mxu1 %v5835_v41  ;;  %5515 = vmatprep.mubr.msk.bf16.mxu1 %vm6305_vm1, %v6566_v33 }
 0x76e   :  { %5509 = vmatprep.subr.bf16.mxu1 %v6566_v33 }
 0x771   :  { %5510 = vmatpush3.bf16.msra.mxu1 %v5836_v43 }
 0x772   :  { %5511 = vmatprep.subr.bf16.mxu1 %v6566_v33 }
 0x775   :  { %5512 = vmatpush3.bf16.msra.mxu1 %v5837_v60 }
 0x776   :  { %5513 = vmatprep.subr.bf16.mxu1 %v6566_v33 }
 0x779   :  { %5514 = vmatpush3.bf16.msra.mxu1 %v5838_v44 }
 0x77a   :  { %5555 = vmatprep.subr.bf16.mxu1 %v6566_v33 }
 0x77c   :  { %5516 = vmatmul.mubr.msk.bf16.vlgmr.msra.gmra.mrb[48].mxu1 %vm131_vm0, %v2209_v47 }
 0x77d   :  { %5563 = vmatprep.mubr.msk.bf16.mxu1 %vm6305_vm1, %v6566_v33  ;;  %5556 = vmatpush3.bf16.msra.mxu1 %v5840_v48 }
 0x77e   :  { %5557 = vmatprep.subr.bf16.mxu1 %v6566_v33 }
 0x781   :  { %5558 = vmatpush3.bf16.msra.mxu1 %v5842_v50  ;;  %v2532_v50 = vld [vmem:[%s7175_s9 + $0x6] ss:$0 sm:$0xff] }
 0x782   :  { %5559 = vmatprep.subr.bf16.mxu1 %v6566_v33 }
 0x785   :  { %5560 = vmatpush3.bf16.msra.mxu1 %v5844_v52 }
 0x786   :  { %5561 = vmatprep.subr.bf16.mxu1 %v6566_v33 }
 0x789   :  { %5562 = vmatpush3.bf16.msra.mxu1 %v5846_v54 }
 0x78a   :  { %5567 = vmatprep.subr.bf16.mxu1 %v6742_v55 }
 0x84f   :  { %v2271_v57 = vpop.f32.mrb[48].mxu1 }
 0x850   :  { %v5651_v59 = vadd.f32 %v2271_v57, %v1969_v56  ;;  %v5517_v61 = vpop.f32.mrb[49].mxu1 }
 0x851   :  { %v2274_v33 = vpop.f32.mrb[50].mxu1 }
 0x852   :  { %v5652_v62 = vadd.f32 %v5651_v59, %v2280_v58  ;;  %v5653_v0 = vadd.f32 %v2274_v33, %v1969_v56  ;;  %v5518_v1 = vpop.f32.mrb[51].mxu1 }
 0x854   :  { %v2285_v2 = vmax.f32 %v5652_v62, 0.0  ;;  %v5654_v3 = vadd.f32 %v5653_v0, %v2280_v58  ;;  %v5863_v0 = vld [vmem:[#allocation16] sm:$0xff]  }
 0x856   :  { %2287 = vst.msk [vmem:[#allocation7 + $0x1] sm:$0xff] %vm131_vm0, %v2285_v2  ;;  %v2286_v4 = vmax.f32 %v5654_v3, 0.0  ;;  %v5864_v2 = vld [vmem:[#allocation16 + $0x8] sm:$0xff]   ;;  %v5865_v3 = vld [vmem:[#allocation16 + $0x10] sm:$0xff]  }
 0x857   :  { %2289 = vst.msk [vmem:[#allocation7 + $0x5] sm:$0x3] %vm968_vm6, %v6742_v55 }
 0x858   :  { %2288 = vst.msk [vmem:[#allocation7 + $0x9] sm:$0x3] %vm968_vm6, %v2286_v4  ;;  %v5866_v4 = vld [vmem:[#allocation16 + $0x18] sm:$0xff]  }
 0x85e   :  { %v2320_v5 = vld [vmem:[#allocation7 + $0x1] sm:$0xff] }
 0x85f   :  { %v2321_v6 = vld [vmem:[#allocation7 + $0x9] sm:$0x3]  ;;  %v2317_v14 = vld [vmem:[#allocation7] sm:$0xff] }
 0x860   :  { %v2541_v8 = vld [vmem:[#allocation7 + $0x9] sm:$0x3]  ;;  %v2322_v9 = vpack.c.bf16 %v2321_v6, %v2320_v5  ;;  %v5868_v6 = vld [vmem:[#allocation16 + $0x28] sm:$0xff]  }
 0x861   :  { %v2542_v10 = vpack.c.bf16 %v2541_v8, %v2320_v5  ;;  %v2318_v15 = vld [vmem:[#allocation7 + $0x8] sm:$0x3]  ;;  %v2460_v22 = vld [vmem:[#allocation7 + $0xa] sm:$0x3]  ;;  %v5867_v5 = vld [vmem:[#allocation16 + $0x20] sm:$0xff]  }
 0x862   :  { %5528 = vmatmul.mubr.msk.bf16.vlgmr.msra.gmra.mrb[40].mxu0 %vm131_vm0, %v2322_v9  ;;  %v2319_v17 = vpack.c.bf16 %v2318_v15, %v2317_v14  ;;  %v2459_v21 = vld [vmem:[#allocation7 + $0x2] sm:$0xff] }
 0x863   :  { %5564 = vmatmul.mubr.msk.bf16.vlgmr.msra.gmra.mrb[52].mxu1 %vm131_vm0, %v2542_v10  ;;  %5532 = vmatpush3.bf16.msra.mxu0 %v5847_v7  ;;  %v2461_v23 = vpack.c.bf16 %v2460_v22, %v2459_v21  ;;  %v5869_v7 = vld [vmem:[#allocation16 + $0x30] sm:$0xff]   ;;  %v5870_v8 = vld [vmem:[#allocation16 + $0x38] sm:$0xff]  }
 0x864   :  { %5539 = vmatprep.mubr.msk.bf16.mxu0 %vm6305_vm1, %v6742_v55  ;;  %5533 = vmatprep.subr.bf16.mxu0 %v6742_v55  ;;  %v5873_v14 = vld [vmem:[#allocation16 + $0x90] sm:$0xff]   ;;  %v5874_v15 = vld [vmem:[#allocation16 + $0x98] sm:$0xff]  }
 0x865   :  { %5583 = vmatprep.mubr.msk.bf16.mxu1 %vm6305_vm1, %v6742_v55  ;;  %5568 = vmatpush3.bf16.msra.mxu1 %v5855_v24  ;;  %v5891_v24 = vld [vmem:[#allocation17 + $0xc0] ss:$8 sps:$4 sm:$0xff]  }
 0x866   :  { %5569 = vmatprep.subr.bf16.mxu1 %v6742_v55 }
 0x867   :  { %5534 = vmatpush3.bf16.msra.mxu0 %v5848_v11  ;;  %v5871_v11 = vld [vmem:[#allocation16 + $0x80] sm:$0xff]  }
 0x868   :  { %5535 = vmatprep.subr.bf16.mxu0 %v6742_v55 }
 0x869   :  { %5570 = vmatpush3.bf16.msra.mxu1 %v5856_v25  ;;  %v5896_v25 = vld [vmem:[#allocation17 + $0xd4] ss:$8 sps:$4 sm:$0xff]  }
 0x86a   :  { %5571 = vmatprep.subr.bf16.mxu1 %v6742_v55 }
 0x86b   :  { %5536 = vmatpush3.bf16.msra.mxu0 %v5849_v12 }
 0x86c   :  { %5537 = vmatprep.subr.bf16.mxu0 %v6742_v55 }
 0x86d   :  { %5572 = vmatpush3.bf16.msra.mxu1 %v5857_v26  ;;  %v5894_v26 = vld [vmem:[#allocation17 + $0xd0] ss:$8 sps:$4 sm:$0xff]  }
 0x86e   :  { %5573 = vmatprep.subr.bf16.mxu1 %v6742_v55 }
 0x86f   :  { %5538 = vmatpush3.bf16.msra.mxu0 %v5850_v13  ;;  %v5872_v13 = vld [vmem:[#allocation16 + $0x88] sm:$0xff]  }
 0x870   :  { %5543 = vmatprep.subr.bf16.mxu0 %v6742_v55 }
 0x871   :  { %5574 = vmatpush3.bf16.msra.mxu1 %v5858_v27  ;;  %v5899_v27 = vld [vmem:[#allocation17 + $0xe4] ss:$8 sps:$4 sm:$0xff]  }
 0x872   :  { %5540 = vmatmul.mubr.msk.bf16.vlgmr.msra.gmra.mrb[44].mxu0 %vm131_vm0, %v2319_v17  ;;  %5575 = vmatprep.subr.bf16.mxu1 %v6742_v55  ;;  %v5876_v17 = vld [vmem:[#allocation16 + $0xa8] sm:$0xff]  }
 0x873   :  { %5544 = vmatpush3.bf16.msra.mxu0 %v5851_v16  ;;  %5551 = vmatprep.mubr.msk.bf16.mxu0 %vm6305_vm1, %v6742_v55  ;;  %v5875_v16 = vld [vmem:[#allocation16 + $0xa0] sm:$0xff]  }
 0x874   :  { %5545 = vmatprep.subr.bf16.mxu0 %v6742_v55 }
 0x875   :  { %5576 = vmatpush3.bf16.msra.mxu1 %v5859_v28  ;;  %v5897_v28 = vld [vmem:[#allocation17 + $0xe0] ss:$8 sps:$4 sm:$0xff]  }
 0x876   :  { %5577 = vmatprep.subr.bf16.mxu1 %v6742_v55 }
 0x877   :  { %5546 = vmatpush3.bf16.msra.mxu0 %v5852_v18  ;;  %v5877_v18 = vld [vmem:[#allocation16 + $0xb0] sm:$0xff]  }
 0x878   :  { %5547 = vmatprep.subr.bf16.mxu0 %v6742_v55 }
 0x879   :  { %5578 = vmatpush3.bf16.msra.mxu1 %v5860_v29  ;;  %v5902_v29 = vld [vmem:[#allocation17 + $0xf4] ss:$8 sps:$4 sm:$0xff]  }
 0x87a   :  { %5579 = vmatprep.subr.bf16.mxu1 %v6742_v55 }
 0x87b   :  { %5548 = vmatpush3.bf16.msra.mxu0 %v5853_v19  ;;  %v5878_v19 = vld [vmem:[#allocation16 + $0xb8] sm:$0xff]  }
 0x87c   :  { %5549 = vmatprep.subr.bf16.mxu0 %v6742_v55 }
 0x87d   :  { %5580 = vmatpush3.bf16.msra.mxu1 %v5861_v30  ;;  %v5900_v30 = vld [vmem:[#allocation17 + $0xf0] ss:$8 sps:$4 sm:$0xff]  }
 0x87e   :  { %5581 = vmatprep.subr.bf16.mxu1 %v6742_v55 }
 0x87f   :  { %5550 = vmatpush3.bf16.msra.mxu0 %v5854_v20 }
 0x880   :  { %3095 = vmatprep.subr.bf16.mxu0 %v5881_v34  ;;  %v5981_v34 = vld [vmem:[%s7171_s5 + $0x100] ss:$8 sps:$4 sm:$0xff]  }
 0x881   :  { %5582 = vmatpush3.bf16.msra.mxu1 %v5862_v31  ;;  %v6306_v31 = vmov 0  }
 0x882   :  { %5552 = vmatmul.mubr.msk.bf16.vlgmr.msra.gmra.mrb[48].mxu0 %vm131_vm0, %v2461_v23  ;;  %5587 = vmatprep.subr.bf16.mxu1 %v6742_v55  ;;  %v5893_v23 = vld [vmem:[#allocation17 + $0xc4] ss:$8 sps:$4 sm:$0xff]  }
 0x883   :  { %3096 = vmatpush1.bf16.msra.mxu0 %v5879_v32  ;;  %3127 = vmatprep.mubr.bf16.mxu0 %v6306_v31  ;;  %v5905_v32 = vld [vmem:[#allocation17 + $0x4] ss:$8 sps:$4 sm:$0xff]  }
 0x884   :  { %3097 = vmatprep.subr.bf16.mxu0 %v5884_v35  ;;  %v5983_v35 = vld [vmem:[%s7171_s5 + $0x104] ss:$8 sps:$4 sm:$0xff]  }
 0x887   :  { %3098 = vmatpush1.bf16.msra.mxu0 %v5882_v36  ;;  %v5987_v36 = vld [vmem:[%s7171_s5 + $0x110] ss:$8 sps:$4 sm:$0xff]  }
 0x888   :  { %3099 = vmatprep.subr.bf16.mxu0 %v5887_v37  ;;  %v5989_v37 = vld [vmem:[%s7171_s5 + $0x114] ss:$8 sps:$4 sm:$0xff]  }
 0x88b   :  { %3100 = vmatpush1.bf16.msra.mxu0 %v5885_v38  ;;  %v2552_v38 = vld [vmem:[%s7175_s9 + $0x7] ss:$0 sm:$0xff] }
 0x88c   :  { %3101 = vmatprep.subr.bf16.mxu0 %v5890_v39  ;;  %v2949_v39 = vld [vmem:[%s7175_s9 + $0x10] ss:$0 sm:$0xff] }
 0x88f   :  { %3102 = vmatpush1.bf16.msra.mxu0 %v5888_v40 }
 0x890   :  { %3103 = vmatprep.subr.bf16.mxu0 %v5893_v23 }
 0x893   :  { %3104 = vmatpush1.bf16.msra.mxu0 %v5891_v24  ;;  %v5932_v24 = vld [vmem:[#allocation17 + $0x114] ss:$8 sps:$4 sm:$0xff]  }
 0x894   :  { %3105 = vmatprep.subr.bf16.mxu0 %v5896_v25  ;;  %v5930_v25 = vld [vmem:[#allocation17 + $0x110] ss:$8 sps:$4 sm:$0xff]  }
 0x897   :  { %3106 = vmatpush1.bf16.msra.mxu0 %v5894_v26  ;;  %v5935_v26 = vld [vmem:[#allocation17 + $0x124] ss:$8 sps:$4 sm:$0xff]  }
 0x898   :  { %3107 = vmatprep.subr.bf16.mxu0 %v5899_v27  ;;  %v5933_v27 = vld [vmem:[#allocation17 + $0x120] ss:$8 sps:$4 sm:$0xff]  }
 0x89b   :  { %3108 = vmatpush1.bf16.msra.mxu0 %v5897_v28  ;;  %v5938_v28 = vld [vmem:[#allocation17 + $0x134] ss:$8 sps:$4 sm:$0xff]  }
 0x89c   :  { %3109 = vmatprep.subr.bf16.mxu0 %v5902_v29  ;;  %v5936_v29 = vld [vmem:[#allocation17 + $0x130] ss:$8 sps:$4 sm:$0xff]  }
 0x89f   :  { %3110 = vmatpush1.bf16.msra.mxu0 %v5900_v30  ;;  %v5941_v30 = vld [vmem:[#allocation17 + $0x144] ss:$8 sps:$4 sm:$0xff]  }
 0x8a0   :  { %3218 = vmatprep.subr.bf16.mxu0 %v5905_v32  ;;  %v5939_v32 = vld [vmem:[#allocation17 + $0x140] ss:$8 sps:$4 sm:$0xff]  }
 0x935   :  { %v2384_v41 = vpop.f32.mrb[40].mxu0 }
 0x936   :  { %v5529_v42 = vpop.f32.mrb[41].mxu0 }
 0x937   :  { %v2387_v43 = vpop.f32.mrb[42].mxu0  ;;  %v5995_v42 = vld [vmem:[%s7171_s5 + $0x124] ss:$8 sps:$4 sm:$0xff]  }
 0x938   :  { %v5530_v60 = vpop.f32.mrb[43].mxu0 }
 0x945   :  { %v2452_v44 = vpop.f32.mrb[44].mxu0 }
 0x946   :  { %v2453_v45 = vadd.f32 %v2452_v44, %v2384_v41  ;;  %v5541_v46 = vpop.f32.mrb[45].mxu0  ;;  %v5993_v41 = vld [vmem:[%s7171_s5 + $0x120] ss:$8 sps:$4 sm:$0xff]  }
 0x947   :  { %v2455_v47 = vpop.f32.mrb[46].mxu0 }
 0x948   :  { %v2456_v63 = vadd.f32 %v2455_v47, %v2387_v43  ;;  %v5542_v48 = vpop.f32.mrb[47].mxu0 }
 0x949   :  { %v6001_v48 = vld [vmem:[%s7171_s5 + $0x134] ss:$8 sps:$4 sm:$0xff]  }
 0x955   :  { %v2523_v49 = vpop.f32.mrb[48].mxu0 }
 0x956   :  { %v2530_v51 = vadd.f32 %v2523_v49, %v2453_v45  ;;  %v5553_v52 = vpop.f32.mrb[49].mxu0 }
 0x957   :  { %v2526_v53 = vpop.f32.mrb[50].mxu0  ;;  %v6005_v52 = vld [vmem:[%s7171_s5 + $0x140] ss:$8 sps:$4 sm:$0xff]  }
 0x958   :  { %v2533_v54 = vadd.f32 %v2532_v50, %v2530_v51  ;;  %v2531_v56 = vadd.f32 %v2526_v53, %v2456_v63  ;;  %v5554_v57 = vpop.f32.mrb[51].mxu0  ;;  %v5999_v63 = vld [vmem:[%s7171_s5 + $0x130] ss:$8 sps:$4 sm:$0xff]   ;;  %v6007_v53 = vld [vmem:[%s7171_s5 + $0x144] ss:$8 sps:$4 sm:$0xff]  }
 0x95a   :  { %v2535_v58 = vmax.f32 %v2533_v54, 0.0  ;;  %v2534_v59 = vadd.f32 %v2532_v50, %v2531_v56  ;;  %v6011_v54 = vld [vmem:[%s7171_s5 + $0x150] ss:$8 sps:$4 sm:$0xff]   ;;  %v6013_v56 = vld [vmem:[%s7171_s5 + $0x154] ss:$8 sps:$4 sm:$0xff]  }
 0x95c   :  { %2537 = vst [vmem:[#allocation8 + $0x1] sm:$0xff] %v2535_v58  ;;  %v2536_v61 = vmax.f32 %v2534_v59, 0.0  ;;  %v5903_v58 = vld [vmem:[#allocation17] ss:$8 sps:$4 sm:$0xff]  }
 0x95d   :  { %2539 = vst [vmem:[#allocation8 + $0x5] sm:$0x3] %v6742_v55 }
 0x95e   :  { %2538 = vst [vmem:[#allocation8 + $0x9] sm:$0x3] %v2536_v61 }
 0x964   :  { %v2674_v33 = vld [vmem:[#allocation8 + $0x1] sm:$0xff] }
 0x965   :  { %v2675_v62 = vld [vmem:[#allocation8 + $0x9] sm:$0x3]  ;;  %v2671_v9 = vld [vmem:[#allocation8] sm:$0xff] }
 0x966   :  { %v2676_v1 = vpack.c.bf16 %v2675_v62, %v2674_v33  ;;  %v2672_v10 = vld [vmem:[#allocation8 + $0x8] sm:$0x3]  ;;  %v2856_v21 = vld [vmem:[#allocation8 + $0xa] sm:$0x3]  ;;  %v5908_v33 = vld [vmem:[#allocation17 + $0x14] ss:$8 sps:$4 sm:$0xff]  }
 0x967   :  { %v2673_v12 = vpack.c.bf16 %v2672_v10, %v2671_v9  ;;  %v2855_v20 = vld [vmem:[#allocation8 + $0x2] sm:$0xff]  ;;  %v6017_v62 = vld [vmem:[%s7171_s5 + $0x160] ss:$8 sps:$4 sm:$0xff]   ;;  %v143_v10 = vlaneseq }
 0x968   :  { %5584 = vmatmul.mubr.bf16.vlgmr.msra.gmra.mrb[52].mxu1 %v2676_v1  ;;  %v2857_v22 = vpack.c.bf16 %v2856_v21, %v2855_v20  ;;  %v5906_v1 = vld [vmem:[#allocation17 + $0x10] ss:$8 sps:$4 sm:$0xff]  }
 0x969   :  { %5588 = vmatpush3.bf16.msra.mxu1 %v5863_v0  ;;  %5603 = vmatprep.mubr.msk.bf16.mxu1 %vm6305_vm1, %v6742_v55  ;;  %v6019_v0 = vld [vmem:[%s7171_s5 + $0x164] ss:$8 sps:$4 sm:$0xff]   ;;  %v5912_v9 = vld [vmem:[#allocation17 + $0x30] ss:$8 sps:$4 sm:$0xff]   ;;  %vm145_vm9 = vcmp.lt.s32.totalorder %v143_v10, 256 }
 0x96a   :  { %5589 = vmatprep.subr.bf16.mxu1 %v6742_v55  ;;  %147 = vst.msk [vmem:[#allocation10] ss:$8 sm:$0x3] %vm145_vm9, %v6742_v55  ;;  %150 = vst.msk [vmem:[#allocation10 + $0x13] ss:$8 sm:$0x3] %vm145_vm9, %v6742_v55 }
 0x96d   :  { %5590 = vmatpush3.bf16.msra.mxu1 %v5864_v2  ;;  %v6025_v2 = vld [vmem:[%s7171_s5 + $0x174] ss:$8 sps:$4 sm:$0xff]  }
 0x96e   :  { %5591 = vmatprep.subr.bf16.mxu1 %v6742_v55 }
 0x971   :  { %5592 = vmatpush3.bf16.msra.mxu1 %v5865_v3  ;;  %v5911_v3 = vld [vmem:[#allocation17 + $0x24] ss:$8 sps:$4 sm:$0xff]  }
 0x972   :  { %5593 = vmatprep.subr.bf16.mxu1 %v6742_v55 }
 0x975   :  { %5594 = vmatpush3.bf16.msra.mxu1 %v5866_v4  ;;  %v6023_v4 = vld [vmem:[%s7171_s5 + $0x170] ss:$8 sps:$4 sm:$0xff]  }
 0x976   :  { %5595 = vmatprep.subr.bf16.mxu1 %v6742_v55 }
 0x979   :  { %5596 = vmatpush3.bf16.msra.mxu1 %v5867_v5  ;;  %v5909_v5 = vld [vmem:[#allocation17 + $0x20] ss:$8 sps:$4 sm:$0xff]  }
 0x97a   :  { %5597 = vmatprep.subr.bf16.mxu1 %v6742_v55 }
 0x97d   :  { %5598 = vmatpush3.bf16.msra.mxu1 %v5868_v6  ;;  %v6031_v6 = vld [vmem:[%s7171_s5 + $0x184] ss:$8 sps:$4 sm:$0xff]  }
 0x97e   :  { %5599 = vmatprep.subr.bf16.mxu1 %v6742_v55 }
 0x981   :  { %5600 = vmatpush3.bf16.msra.mxu1 %v5869_v7  ;;  %v5914_v7 = vld [vmem:[#allocation17 + $0x34] ss:$8 sps:$4 sm:$0xff]  }
 0x982   :  { %5601 = vmatprep.subr.bf16.mxu1 %v6742_v55 }
 0x985   :  { %5602 = vmatpush3.bf16.msra.mxu1 %v5870_v8  ;;  %v6029_v8 = vld [vmem:[%s7171_s5 + $0x180] ss:$8 sps:$4 sm:$0xff]  }
 0x986   :  { %5607 = vmatprep.subr.bf16.mxu1 %v6742_v55 }
 0x988   :  { %5604 = vmatmul.mubr.bf16.vlgmr.msra.gmra.mrb[52].mxu1 %v2673_v12  ;;  %v5915_v12 = vld [vmem:[#allocation17 + $0x40] ss:$8 sps:$4 sm:$0xff]  }
 0x989   :  { %5608 = vmatpush3.bf16.msra.mxu1 %v5871_v11  ;;  %5623 = vmatprep.mubr.msk.bf16.mxu1 %vm6305_vm1, %v6742_v55  ;;  %v5917_v11 = vld [vmem:[#allocation17 + $0x44] ss:$8 sps:$4 sm:$0xff]  }
 0x98a   :  { %5609 = vmatprep.subr.bf16.mxu1 %v6742_v55 }
 0x98d   :  { %5610 = vmatpush3.bf16.msra.mxu1 %v5872_v13  ;;  %v5920_v13 = vld [vmem:[#allocation17 + $0x54] ss:$8 sps:$4 sm:$0xff]  }
 0x98e   :  { %5611 = vmatprep.subr.bf16.mxu1 %v6742_v55 }
 0x991   :  { %5612 = vmatpush3.bf16.msra.mxu1 %v5873_v14  ;;  %v5918_v14 = vld [vmem:[#allocation17 + $0x50] ss:$8 sps:$4 sm:$0xff]  }
 0x992   :  { %5613 = vmatprep.subr.bf16.mxu1 %v6742_v55 }
 0x995   :  { %5614 = vmatpush3.bf16.msra.mxu1 %v5874_v15  ;;  %v5923_v15 = vld [vmem:[#allocation17 + $0x64] ss:$8 sps:$4 sm:$0xff]  }
 0x996   :  { %5615 = vmatprep.subr.bf16.mxu1 %v6742_v55 }
 0x999   :  { %5616 = vmatpush3.bf16.msra.mxu1 %v5875_v16  ;;  %v5921_v16 = vld [vmem:[#allocation17 + $0x60] ss:$8 sps:$4 sm:$0xff]  }
 0x99a   :  { %5617 = vmatprep.subr.bf16.mxu1 %v6742_v55 }
 0x99d   :  { %5618 = vmatpush3.bf16.msra.mxu1 %v5876_v17  ;;  %v5926_v17 = vld [vmem:[#allocation17 + $0x74] ss:$8 sps:$4 sm:$0xff]  }
 0x99e   :  { %5619 = vmatprep.subr.bf16.mxu1 %v6742_v55 }
 0x9a1   :  { %5620 = vmatpush3.bf16.msra.mxu1 %v5877_v18  ;;  %v5924_v18 = vld [vmem:[#allocation17 + $0x70] ss:$8 sps:$4 sm:$0xff]  }
 0x9a2   :  { %5621 = vmatprep.subr.bf16.mxu1 %v6742_v55 }
 0x9a5   :  { %5622 = vmatpush3.bf16.msra.mxu1 %v5878_v19  ;;  %v5929_v19 = vld [vmem:[#allocation17 + $0x104] ss:$8 sps:$4 sm:$0xff]  }
 0x9a6   :  { %3875 = vmatprep.subr.bf16.mxu1 %v5983_v35  ;;  %v5942_v35 = vld [vmem:[#allocation17 + $0x150] ss:$8 sps:$4 sm:$0xff]  }
 0x9a8   :  { %5624 = vmatmul.mubr.bf16.vlgmr.msra.gmra.mrb[52].mxu1 %v2857_v22  ;;  %v5927_v22 = vld [vmem:[#allocation17 + $0x100] ss:$8 sps:$4 sm:$0xff]  }
 0x9a9   :  { %3876 = vmatpush1.bf16.msra.mxu1 %v5981_v34  ;;  %v5944_v34 = vld [vmem:[#allocation17 + $0x154] ss:$8 sps:$4 sm:$0xff]  }
 0x9aa   :  { %3877 = vmatprep.subr.bf16.mxu1 %v5989_v37  ;;  %v5945_v37 = vld [vmem:[#allocation17 + $0x160] ss:$8 sps:$4 sm:$0xff]  }
 0x9ad   :  { %3878 = vmatpush1.bf16.msra.mxu1 %v5987_v36  ;;  %v5947_v36 = vld [vmem:[#allocation17 + $0x164] ss:$8 sps:$4 sm:$0xff]  }
 0x9ae   :  { %3879 = vmatprep.subr.bf16.mxu1 %v5995_v42 }
 0x9b1   :  { %3880 = vmatpush1.bf16.msra.mxu1 %v5993_v41 }
 0x9b2   :  { %3881 = vmatprep.subr.bf16.mxu1 %v6001_v48  ;;  %v5960_v48 = vld [vmem:[#allocation17 + $0x1b0] ss:$8 sps:$4 sm:$0xff]  }
 0x9b5   :  { %3882 = vmatpush1.bf16.msra.mxu1 %v5999_v63  ;;  %v5962_v63 = vld [vmem:[#allocation17 + $0x1b4] ss:$8 sps:$4 sm:$0xff]  }
 0x9b6   :  { %3883 = vmatprep.subr.bf16.mxu1 %v6007_v53  ;;  %v5971_v53 = vld [vmem:[#allocation17 + $0x1e4] ss:$8 sps:$4 sm:$0xff]  }
 0x9b9   :  { %3884 = vmatpush1.bf16.msra.mxu1 %v6005_v52  ;;  %v5966_v52 = vld [vmem:[#allocation17 + $0x1d0] ss:$8 sps:$4 sm:$0xff]  }
 0x9ba   :  { %3885 = vmatprep.subr.bf16.mxu1 %v6013_v56  ;;  %v5972_v56 = vld [vmem:[#allocation17 + $0x1f0] ss:$8 sps:$4 sm:$0xff]  }
 0x9bd   :  { %3886 = vmatpush1.bf16.msra.mxu1 %v6011_v54  ;;  %v5974_v54 = vld [vmem:[#allocation17 + $0x1f4] ss:$8 sps:$4 sm:$0xff]  }
 0x9be   :  { %3887 = vmatprep.subr.bf16.mxu1 %v6019_v0  ;;  %v5978_v0 = vld [vmem:[%s7171_s5 + $0x10] ss:$8 sps:$4 sm:$0xff]  }
 0x9c1   :  { %3888 = vmatpush1.bf16.msra.mxu1 %v6017_v62  ;;  %v5980_v62 = vld [vmem:[%s7171_s5 + $0x14] ss:$8 sps:$4 sm:$0xff]  }
 0x9c2   :  { %3889 = vmatprep.subr.bf16.mxu1 %v6025_v2  ;;  %v5992_v2 = vld [vmem:[%s7171_s5 + $0x34] ss:$8 sps:$4 sm:$0xff]  }
 0x9c5   :  { %3890 = vmatpush1.bf16.msra.mxu1 %v6023_v4  ;;  %v5998_v4 = vld [vmem:[%s7171_s5 + $0x44] ss:$8 sps:$4 sm:$0xff]  }
 0x9c6   :  { %3891 = vmatprep.subr.bf16.mxu1 %v6031_v6  ;;  %v6004_v6 = vld [vmem:[%s7171_s5 + $0x54] ss:$8 sps:$4 sm:$0xff]  }
 0x9c9   :  { %3892 = vmatpush1.bf16.msra.mxu1 %v6029_v8  ;;  %v6010_v8 = vld [vmem:[%s7171_s5 + $0x64] ss:$8 sps:$4 sm:$0xff]  }
 0xa7b   :  { %v2940_v40 = vpop.f32.mrb[52].mxu1 }
 0xa7c   :  { %v5655_v43 = vadd.f32 %v2940_v40, %v2552_v38  ;;  %v5625_v60 = vpop.f32.mrb[53].mxu1  ;;  %v5953_v40 = vld [vmem:[#allocation17 + $0x184] ss:$8 sps:$4 sm:$0xff]  }
 0xa7d   :  { %v2943_v44 = vpop.f32.mrb[54].mxu1 }
 0xa7e   :  { %v5656_v45 = vadd.f32 %v5655_v43, %v2949_v39  ;;  %v5657_v46 = vadd.f32 %v2943_v44, %v2552_v38  ;;  %v5626_v47 = vpop.f32.mrb[55].mxu1  ;;  %v5950_v38 = vld [vmem:[#allocation17 + $0x174] ss:$8 sps:$4 sm:$0xff]   ;;  %v5951_v43 = vld [vmem:[#allocation17 + $0x180] ss:$8 sps:$4 sm:$0xff]  }
 0xa7f   :  { %v5956_v44 = vld [vmem:[#allocation17 + $0x194] ss:$8 sps:$4 sm:$0xff]   ;;  %v5957_v47 = vld [vmem:[#allocation17 + $0x1a0] ss:$8 sps:$4 sm:$0xff]  }
 0xa80   :  { %v2954_v49 = vmax.f32 %v5656_v45, 0.0  ;;  %v5658_v50 = vadd.f32 %v5657_v46, %v2949_v39  ;;  %v5948_v39 = vld [vmem:[#allocation17 + $0x170] ss:$8 sps:$4 sm:$0xff]   ;;  %v5959_v46 = vld [vmem:[#allocation17 + $0x1a4] ss:$8 sps:$4 sm:$0xff]  }
 0xa81   :  { %v5954_v45 = vld [vmem:[#allocation17 + $0x190] ss:$8 sps:$4 sm:$0xff]  }
 0xa82   :  { %2956 = vst [vmem:[#allocation9 + $0x1] sm:$0xff] %v2954_v49  ;;  %v2955_v51 = vmax.f32 %v5658_v50, 0.0  ;;  %v5965_v49 = vld [vmem:[#allocation17 + $0x1c4] ss:$8 sps:$4 sm:$0xff]   ;;  %v5963_v50 = vld [vmem:[#allocation17 + $0x1c0] ss:$8 sps:$4 sm:$0xff]  }
 0xa83   :  { %2958 = vst [vmem:[#allocation9 + $0x5] sm:$0x3] %v6742_v55 }
 0xa84   :  { %2957 = vst [vmem:[#allocation9 + $0x9] sm:$0x3] %v2955_v51  ;;  %v5968_v51 = vld [vmem:[#allocation17 + $0x1d4] ss:$8 sps:$4 sm:$0xff]  }
 0xa8a   :  { %v6848_v57 = vld [vmem:[#allocation9 + $0x1] sm:$0xff] }
 0xa8b   :  { %v3013_v59 = vld [vmem:[#allocation9 + $0x9] sm:$0x3]  ;;  %v3009_v20 = vld [vmem:[#allocation9] sm:$0xff] }
 0xa8c   :  { %v3014_v61 = vpack.c.bf16 %v3013_v59, %v6848_v57  ;;  %v3010_v21 = vld [vmem:[#allocation9 + $0x8] sm:$0x3]  ;;  %v3262_v42 = vld [vmem:[#allocation9 + $0xa] sm:$0x3] }
 0xa8d   :  { %v3011_v23 = vpack.c.bf16 %v3010_v21, %v3009_v20  ;;  %v3261_v41 = vld [vmem:[#allocation9 + $0x2] sm:$0xff]  ;;  %v6035_v20 = vld [vmem:[%s7171_s5 + $0x190] ss:$8 sps:$4 sm:$0xff]   ;;  %v6040_v21 = vld [vmem:[%s7171_s5 + $0xb4] ss:$8 sps:$4 sm:$0xff]  }
 0xa8e   :  { %3128 = vmatmul.mubr.bf16.vlgmr.msra.gmra.mrb[52].mxu0 %v3014_v61  ;;  %v3263_v60 = vpack.c.bf16 %v3262_v42, %v3261_v41  ;;  %v3434_v59 = vld [vmem:[#allocation9 + $0x9] sm:$0x3]  ;;  %v6067_v41 = vld [vmem:[%s7171_s5 + $0x1e4] ss:$8 sps:$4 sm:$0xff]  }
 0xa8f   :  { %3219 = vmatpush1.bf16.msra.mxu0 %v5903_v58  ;;  %3250 = vmatprep.mubr.bf16.mxu0 %v6306_v31  ;;  %v5977_v58 = vld [vmem:[%s7171_s5 + $0x4] ss:$8 sps:$4 sm:$0xff]   ;;  %v5975_v61 = vld [vmem:[%s7171_s5] ss:$8 sps:$4 sm:$0xff]  }
 0xa90   :  { %3220 = vmatprep.subr.bf16.mxu0 %v5908_v33  ;;  %v3435_v33 = vpack.c.bf16 %v3434_v59, %v6848_v57  ;;  %v5984_v57 = vld [vmem:[%s7171_s5 + $0x20] ss:$8 sps:$4 sm:$0xff]  }
 0xa91   :  { %v6065_v42 = vld [vmem:[%s7171_s5 + $0x1e0] ss:$8 sps:$4 sm:$0xff]  }
 0xa93   :  { %3221 = vmatpush1.bf16.msra.mxu0 %v5906_v1  ;;  %v5986_v1 = vld [vmem:[%s7171_s5 + $0x24] ss:$8 sps:$4 sm:$0xff]  }
 0xa94   :  { %3222 = vmatprep.subr.bf16.mxu0 %v5911_v3  ;;  %v5990_v3 = vld [vmem:[%s7171_s5 + $0x30] ss:$8 sps:$4 sm:$0xff]  }
 0xa97   :  { %3223 = vmatpush1.bf16.msra.mxu0 %v5909_v5  ;;  %v5996_v5 = vld [vmem:[%s7171_s5 + $0x40] ss:$8 sps:$4 sm:$0xff]  }
 0xa98   :  { %3224 = vmatprep.subr.bf16.mxu0 %v5914_v7  ;;  %v6002_v7 = vld [vmem:[%s7171_s5 + $0x50] ss:$8 sps:$4 sm:$0xff]  }
 0xa9b   :  { %3225 = vmatpush1.bf16.msra.mxu0 %v5912_v9  ;;  %v6008_v9 = vld [vmem:[%s7171_s5 + $0x60] ss:$8 sps:$4 sm:$0xff]  }
 0xa9c   :  { %3226 = vmatprep.subr.bf16.mxu0 %v5917_v11  ;;  %v6016_v11 = vld [vmem:[%s7171_s5 + $0x74] ss:$8 sps:$4 sm:$0xff]  }
 0xa9f   :  { %3227 = vmatpush1.bf16.msra.mxu0 %v5915_v12  ;;  %v6014_v12 = vld [vmem:[%s7171_s5 + $0x70] ss:$8 sps:$4 sm:$0xff]  }
 0xaa0   :  { %3228 = vmatprep.subr.bf16.mxu0 %v5920_v13  ;;  %v6022_v13 = vld [vmem:[%s7171_s5 + $0x84] ss:$8 sps:$4 sm:$0xff]  }
 0xaa3   :  { %3229 = vmatpush1.bf16.msra.mxu0 %v5918_v14  ;;  %v6020_v14 = vld [vmem:[%s7171_s5 + $0x80] ss:$8 sps:$4 sm:$0xff]  }
 0xaa4   :  { %3230 = vmatprep.subr.bf16.mxu0 %v5923_v15  ;;  %v6028_v15 = vld [vmem:[%s7171_s5 + $0x94] ss:$8 sps:$4 sm:$0xff]  }
 0xaa7   :  { %3231 = vmatpush1.bf16.msra.mxu0 %v5921_v16  ;;  %v6026_v16 = vld [vmem:[%s7171_s5 + $0x90] ss:$8 sps:$4 sm:$0xff]  }
 0xaa8   :  { %3232 = vmatprep.subr.bf16.mxu0 %v5926_v17  ;;  %v6034_v17 = vld [vmem:[%s7171_s5 + $0xa4] ss:$8 sps:$4 sm:$0xff]  }
 0xaab   :  { %3233 = vmatpush1.bf16.msra.mxu0 %v5924_v18  ;;  %v6032_v18 = vld [vmem:[%s7171_s5 + $0xa0] ss:$8 sps:$4 sm:$0xff]  }
 0xaac   :  { %3344 = vmatprep.subr.bf16.mxu0 %v5929_v19  ;;  %v6037_v19 = vld [vmem:[%s7171_s5 + $0x194] ss:$8 sps:$4 sm:$0xff]  }
 0xaad   :  { %3893 = vmatprep.subr.bf16.mxu1 %v6037_v19 }
 0xaae   :  { %3251 = vmatmul.mubr.bf16.vlgmr.msra.gmra.mrb[52].mxu0 %v3011_v23  ;;  %3894 = vmatpush1.bf16.msra.mxu1 %v6035_v20  ;;  %v6043_v23 = vld [vmem:[%s7171_s5 + $0x1a4] ss:$8 sps:$4 sm:$0xff]   ;;  %v6076_v20 = vld [vmem:[%s7171_s5 + $0x214] ss:$8 sps:$4 sm:$0xff]  }
 0xaaf   :  { %3345 = vmatpush1.bf16.msra.mxu0 %v5927_v22  ;;  %3376 = vmatprep.mubr.bf16.mxu0 %v6306_v31  ;;  %v6038_v22 = vld [vmem:[%s7171_s5 + $0xb0] ss:$8 sps:$4 sm:$0xff]  }
 0xab0   :  { %3346 = vmatprep.subr.bf16.mxu0 %v5932_v24  ;;  %v6041_v24 = vld [vmem:[%s7171_s5 + $0x1a0] ss:$8 sps:$4 sm:$0xff]   ;;  %3895 = vmatprep.subr.bf16.mxu1 %v6043_v23 }
 0xab2   :  { %3896 = vmatpush1.bf16.msra.mxu1 %v6041_v24 }
 0xab3   :  { %3347 = vmatpush1.bf16.msra.mxu0 %v5930_v25  ;;  %v6046_v25 = vld [vmem:[%s7171_s5 + $0xc4] ss:$8 sps:$4 sm:$0xff]  }
 0xab4   :  { %3348 = vmatprep.subr.bf16.mxu0 %v5935_v26  ;;  %v6044_v26 = vld [vmem:[%s7171_s5 + $0xc0] ss:$8 sps:$4 sm:$0xff]  }
 0xab7   :  { %3349 = vmatpush1.bf16.msra.mxu0 %v5933_v27  ;;  %v6049_v27 = vld [vmem:[%s7171_s5 + $0x1b4] ss:$8 sps:$4 sm:$0xff]  }
 0xab8   :  { %3350 = vmatprep.subr.bf16.mxu0 %v5938_v28  ;;  %v6047_v28 = vld [vmem:[%s7171_s5 + $0x1b0] ss:$8 sps:$4 sm:$0xff]   ;;  %3897 = vmatprep.subr.bf16.mxu1 %v6049_v27 }
 0xab9   :  { %3898 = vmatpush1.bf16.msra.mxu1 %v6047_v28 }
 0xabb   :  { %3351 = vmatpush1.bf16.msra.mxu0 %v5936_v29  ;;  %v6052_v29 = vld [vmem:[%s7171_s5 + $0xd4] ss:$8 sps:$4 sm:$0xff]  }
 0xabc   :  { %3352 = vmatprep.subr.bf16.mxu0 %v5941_v30  ;;  %v6050_v30 = vld [vmem:[%s7171_s5 + $0xd0] ss:$8 sps:$4 sm:$0xff]  }
 0xabf   :  { %3353 = vmatpush1.bf16.msra.mxu0 %v5939_v32  ;;  %v6055_v32 = vld [vmem:[%s7171_s5 + $0x1c4] ss:$8 sps:$4 sm:$0xff]  }
 0xac0   :  { %3354 = vmatprep.subr.bf16.mxu0 %v5944_v34  ;;  %v6053_v34 = vld [vmem:[%s7171_s5 + $0x1c0] ss:$8 sps:$4 sm:$0xff]   ;;  %3899 = vmatprep.subr.bf16.mxu1 %v6055_v32 }
 0xac1   :  { %3900 = vmatpush1.bf16.msra.mxu1 %v6053_v34  ;;  %v6077_v34 = vld [vmem:[%s7171_s5 + $0x220] ss:$8 sps:$4 sm:$0xff]  }
 0xac3   :  { %3355 = vmatpush1.bf16.msra.mxu0 %v5942_v35  ;;  %v6056_v35 = vld [vmem:[%s7171_s5 + $0xe0] ss:$8 sps:$4 sm:$0xff]  }
 0xac4   :  { %3356 = vmatprep.subr.bf16.mxu0 %v5947_v36  ;;  %v6058_v36 = vld [vmem:[%s7171_s5 + $0xe4] ss:$8 sps:$4 sm:$0xff]  }
 0xac7   :  { %3357 = vmatpush1.bf16.msra.mxu0 %v5945_v37  ;;  %v6061_v37 = vld [vmem:[%s7171_s5 + $0x1d4] ss:$8 sps:$4 sm:$0xff]  }
 0xac8   :  { %3358 = vmatprep.subr.bf16.mxu0 %v5950_v38  ;;  %v6059_v38 = vld [vmem:[%s7171_s5 + $0x1d0] ss:$8 sps:$4 sm:$0xff]   ;;  %3901 = vmatprep.subr.bf16.mxu1 %v6061_v37 }
 0xac9   :  { %3902 = vmatpush1.bf16.msra.mxu1 %v6059_v38  ;;  %v6080_v37 = vld [vmem:[%s7171_s5 + $0x230] ss:$8 sps:$4 sm:$0xff]  }
 0xaca   :  { %3903 = vmatprep.subr.bf16.mxu1 %v6067_v41 }
 0xacb   :  { %3359 = vmatpush1.bf16.msra.mxu0 %v5948_v39  ;;  %v6064_v39 = vld [vmem:[%s7171_s5 + $0xf4] ss:$8 sps:$4 sm:$0xff]  }
 0xacc   :  { %3546 = vmatprep.subr.bf16.mxu0 %v5953_v40  ;;  %v6062_v40 = vld [vmem:[%s7171_s5 + $0xf0] ss:$8 sps:$4 sm:$0xff]  }
 0xacd   :  { %3904 = vmatpush1.bf16.msra.mxu1 %v6065_v42 }
 0xace   :  { %3377 = vmatmul.mubr.bf16.vlgmr.msra.gmra.mrb[52].mxu0 %v3263_v60  ;;  %v6071_v60 = vld [vmem:[%s7171_s5 + $0x1f0] ss:$8 sps:$4 sm:$0xff]  }
 0xacf   :  { %3547 = vmatpush1.bf16.msra.mxu0 %v5951_v43  ;;  %3578 = vmatprep.mubr.bf16.mxu0 %v6306_v31  ;;  %v5969_v31 = vld [vmem:[#allocation17 + $0x1e0] ss:$8 sps:$4 sm:$0xff]   ;;  %v6070_v43 = vld [vmem:[%s7171_s5 + $0x204] ss:$8 sps:$4 sm:$0xff]  }
 0xad0   :  { %3548 = vmatprep.subr.bf16.mxu0 %v5956_v44  ;;  %v6073_v44 = vld [vmem:[%s7171_s5 + $0x1f4] ss:$8 sps:$4 sm:$0xff]  }
 0xad1   :  { %3905 = vmatprep.subr.bf16.mxu1 %v6073_v44  ;;  %v6086_v44 = vld [vmem:[%s7171_s5 + $0x250] ss:$8 sps:$4 sm:$0xff]  }
 0xad2   :  { %3906 = vmatpush1.bf16.msra.mxu1 %v6071_v60  ;;  %v6088_v60 = vld [vmem:[%s7171_s5 + $0x254] ss:$8 sps:$4 sm:$0xff]  }
 0xad3   :  { %3549 = vmatpush1.bf16.msra.mxu0 %v5954_v45  ;;  %5627 = vmatprep.subr.bf16.mxu1 %v6742_v55  ;;  %v3395_v45 = vshrl.u32 %v143_v10, 7 }
 0xad4   :  { %3550 = vmatprep.subr.bf16.mxu0 %v5959_v46 }
 0xad5   :  { %v7019_v46 = vsub.s32 0, %v3395_v45 }
 0xad7   :  { %3551 = vmatpush1.bf16.msra.mxu0 %v5957_v47  ;;  %v4835_v47 = vld [vmem:[%s7175_s9 + $0x11] ss:$8 sm:$0x3] }
 0xad8   :  { %3552 = vmatprep.subr.bf16.mxu0 %v5962_v63  ;;  %v7024_v63 = vsub.s32 1, %v3395_v45  ;;  %v6091_v45 = vld [vmem:[%s7171_s5 + $0x264] ss:$8 sps:$4 sm:$0xff]  }
 0xadb   :  { %3553 = vmatpush1.bf16.msra.mxu0 %v5960_v48  ;;  %v3397_v48 = vrot.slane %v4835_v47, %v7019_v46 }
 0xadc   :  { %3554 = vmatprep.subr.bf16.mxu0 %v5965_v49  ;;  %v3401_v49 = vrot.slane %v4835_v47, %v7024_v63  ;;  %v6089_v47 = vld [vmem:[%s7171_s5 + $0x260] ss:$8 sps:$4 sm:$0xff]  }
 0xadf   :  { %3555 = vmatpush1.bf16.msra.mxu0 %v5963_v50 }
 0xae0   :  { %3556 = vmatprep.subr.bf16.mxu0 %v5968_v51 }
 0xae3   :  { %3557 = vmatpush1.bf16.msra.mxu0 %v5966_v52 }
 0xae4   :  { %3558 = vmatprep.subr.bf16.mxu0 %v5971_v53 }
 0xae7   :  { %3559 = vmatpush1.bf16.msra.mxu0 %v5969_v31 }
 0xae8   :  { %3560 = vmatprep.subr.bf16.mxu0 %v5974_v54 }
 0xaeb   :  { %3561 = vmatpush1.bf16.msra.mxu0 %v5972_v56 }
 0xaec   :  { %4078 = vmatprep.subr.bf16.mxu0 %v5977_v58 }
 0xaee   :  { %3579 = vmatmul.mubr.bf16.vlgmr.msra.gmra.mrb[56].mxu0 %v3435_v33 }
 0xaef   :  { %4079 = vmatpush1.bf16.msra.mxu0 %v5975_v61 }
 0xaf0   :  { %4080 = vmatprep.subr.bf16.mxu0 %v5980_v62 }
 0xaf3   :  { %4081 = vmatpush1.bf16.msra.mxu0 %v5978_v0 }
 0xaf4   :  { %4082 = vmatprep.subr.bf16.mxu0 %v5986_v1 }
 0xaf7   :  { %4083 = vmatpush1.bf16.msra.mxu0 %v5984_v57 }
 0xaf8   :  { %4084 = vmatprep.subr.bf16.mxu0 %v5992_v2 }
 0xafb   :  { %4085 = vmatpush1.bf16.msra.mxu0 %v5990_v3 }
 0xafc   :  { %4086 = vmatprep.subr.bf16.mxu0 %v5998_v4 }
 0xaff   :  { %4087 = vmatpush1.bf16.msra.mxu0 %v5996_v5 }
 0xb00   :  { %4088 = vmatprep.subr.bf16.mxu0 %v6004_v6 }
 0xb03   :  { %4089 = vmatpush1.bf16.msra.mxu0 %v6002_v7 }
 0xb04   :  { %4090 = vmatprep.subr.bf16.mxu0 %v6010_v8 }
 0xb07   :  { %4091 = vmatpush1.bf16.msra.mxu0 %v6008_v9 }
 0xb08   :  { %4092 = vmatprep.subr.bf16.mxu0 %v6016_v11 }
 0xb0b   :  { %4093 = vmatpush1.bf16.msra.mxu0 %v6014_v12 }
 0xb0c   :  { %4094 = vmatprep.subr.bf16.mxu0 %v6022_v13 }
 0xb0f   :  { %4095 = vmatpush1.bf16.msra.mxu0 %v6020_v14 }
 0xb10   :  { %4096 = vmatprep.subr.bf16.mxu0 %v6028_v15 }
 0xb13   :  { %4097 = vmatpush1.bf16.msra.mxu0 %v6026_v16  ;;  %v6068_v16 = vld [vmem:[%s7171_s5 + $0x200] ss:$8 sps:$4 sm:$0xff]  }
 0xb14   :  { %4098 = vmatprep.subr.bf16.mxu0 %v6034_v17 }
 0xb17   :  { %4099 = vmatpush1.bf16.msra.mxu0 %v6032_v18 }
 0xb18   :  { %4100 = vmatprep.subr.bf16.mxu0 %v6040_v21 }
 0xb1b   :  { %4101 = vmatpush1.bf16.msra.mxu0 %v6038_v22 }
 0xb1c   :  { %4102 = vmatprep.subr.bf16.mxu0 %v6046_v25  ;;  %v6074_v25 = vld [vmem:[%s7171_s5 + $0x210] ss:$8 sps:$4 sm:$0xff]  }
 0xb1f   :  { %4103 = vmatpush1.bf16.msra.mxu0 %v6044_v26 }
 0xb20   :  { %4104 = vmatprep.subr.bf16.mxu0 %v6052_v29  ;;  %v6079_v29 = vld [vmem:[%s7171_s5 + $0x224] ss:$8 sps:$4 sm:$0xff]  }
 0xb23   :  { %4105 = vmatpush1.bf16.msra.mxu0 %v6050_v30 }
 0xb24   :  { %4106 = vmatprep.subr.bf16.mxu0 %v6058_v36  ;;  %v7048_v36 = vld [vmem:[#allocation2 + $0x23] sm:$0xff] }
 0xb27   :  { %4107 = vmatpush1.bf16.msra.mxu0 %v6056_v35  ;;  %v6082_v35 = vld [vmem:[%s7171_s5 + $0x234] ss:$8 sps:$4 sm:$0xff]  }
 0xb28   :  { %4108 = vmatprep.subr.bf16.mxu0 %v6064_v39  ;;  %v6085_v39 = vld [vmem:[%s7171_s5 + $0x244] ss:$8 sps:$4 sm:$0xff]  }
 0xb2b   :  { %4109 = vmatpush1.bf16.msra.mxu0 %v6062_v40 }
 0xb2c   :  { %4293 = vmatprep.subr.bf16.mxu0 %v6070_v43  ;;  %v6083_v43 = vld [vmem:[%s7171_s5 + $0x240] ss:$8 sps:$4 sm:$0xff]  }
 0xba1   :  { %v3378_v50 = vpop.f32.mrb[52].mxu0 }
 0xba2   :  { %v3404_v51 = vadd.f32 %v3397_v48, %v3378_v50  ;;  %v3380_v52 = vpop.f32.mrb[53].mxu0  ;;  %v6097_v50 = vld [vmem:[%s7171_s5 + $0x284] ss:$8 sps:$4 sm:$0xff]  }
 0xba3   :  { %v3405_v53 = vadd.f32 %v3401_v49, %v3380_v52  ;;  %v3382_v31 = vpop.f32.mrb[54].mxu0  ;;  %v6100_v52 = vld [vmem:[%s7171_s5 + $0x294] ss:$8 sps:$4 sm:$0xff]  }
 0xba4   :  { %v3408_v54 = vmax.f32 %v3404_v51, 0.0  ;;  %v3406_v56 = vadd.f32 %v3397_v48, %v3382_v31  ;;  %v3384_v10 = vpop.f32.mrb[55].mxu0  ;;  %v6094_v48 = vld [vmem:[%s7171_s5 + $0x274] ss:$8 sps:$4 sm:$0xff]   ;;  %v6095_v51 = vld [vmem:[%s7171_s5 + $0x280] ss:$8 sps:$4 sm:$0xff]  }
 0xba5   :  { %v3409_v58 = vmax.f32 %v3405_v53, 0.0  ;;  %v3407_v59 = vadd.f32 %v3401_v49, %v3384_v10  ;;  %v6092_v49 = vld [vmem:[%s7171_s5 + $0x270] ss:$8 sps:$4 sm:$0xff]   ;;  %v6103_v31 = vld [vmem:[%s7171_s5 + $0x2a4] ss:$8 sps:$4 sm:$0xff]  }
 0xba6   :  { %v3417_v61 = vrot.slane %v3408_v54, 7  ;;  %v3410_v33 = vmax.f32 %v3406_v56, 0.0  ;;  %v6098_v53 = vld [vmem:[%s7171_s5 + $0x290] ss:$8 sps:$4 sm:$0xff]   ;;  %v6101_v54 = vld [vmem:[%s7171_s5 + $0x2a0] ss:$8 sps:$4 sm:$0xff]  }
 0xba7   :  { %v3418_v62 = vrot.slane %v3409_v58, 7  ;;  %v3411_v0 = vmax.f32 %v3407_v59, 0.0  ;;  %v6106_v56 = vld [vmem:[%s7171_s5 + $0x2b4] ss:$8 sps:$4 sm:$0xff]   ;;  %v6104_v10 = vld [vmem:[%s7171_s5 + $0x2b0] ss:$8 sps:$4 sm:$0xff]  }
 0xba8   :  { %3427 = vst [vmem:[#allocation10] sm:$0xfe] %v3417_v61  ;;  %v3419_v1 = vrot.slane %v3410_v33, 7  ;;  %v6109_v58 = vld [vmem:[%s7171_s5 + $0x2c4] ss:$8 sps:$4 sm:$0xff]  }
 0xba9   :  { %3431 = vst [vmem:[#allocation10] sm:$0x60] %v6742_v55  ;;  %3428 = vst [vmem:[#allocation10 + $0x8] sm:$0xfe] %v3418_v62  ;;  %v3421_v57 = vrot.slane %v3411_v0, 7 }
 0xbaa   :  { %3432 = vst [vmem:[#allocation10 + $0x8] sm:$0x60] %v6742_v55  ;;  %v3420_v2 = vsel %vm3416_vm10, %v3417_v61, %v3419_v1  ;;  %v6107_v59 = vld [vmem:[%s7171_s5 + $0x2c0] ss:$8 sps:$4 sm:$0xff]   ;;  %v6112_v61 = vld [vmem:[%s7171_s5 + $0x2d4] ss:$8 sps:$4 sm:$0xff]  }
 0xbab   :  { %3429 = vst [vmem:[#allocation10 + $0x10] sm:$0x7] %v3420_v2  ;;  %v3422_v3 = vsel %vm3416_vm10, %v3418_v62, %v3421_v57  ;;  %v6110_v33 = vld [vmem:[%s7171_s5 + $0x2d0] ss:$8 sps:$4 sm:$0xff]   ;;  %v6115_v62 = vld [vmem:[%s7171_s5 + $0x2e4] ss:$8 sps:$4 sm:$0xff]  }
 0xbac   :  { %3430 = vst [vmem:[#allocation10 + $0x18] sm:$0x7] %v3422_v3  ;;  %v6113_v0 = vld [vmem:[%s7171_s5 + $0x2e0] ss:$8 sps:$4 sm:$0xff]   ;;  %v6118_v1 = vld [vmem:[%s7171_s5 + $0x2f4] ss:$8 sps:$4 sm:$0xff]  }
 0xbad   :  { %v6116_v2 = vld [vmem:[%s7171_s5 + $0x2f0] ss:$8 sps:$4 sm:$0xff]  }
 0xbb0   :  { %v3693_v6 = vld [vmem:[#allocation10] sm:$0xfe] }
 0xbb1   :  { %v3688_v4 = vld [vmem:[#allocation10 + $0x8] sm:$0xff]  ;;  %v3687_v55 = vld [vmem:[#allocation10] sm:$0xff] }
 0xbb2   :  { %v4122_v5 = vld [vmem:[#allocation10 + $0x8] sm:$0xfc]  ;;  %v3689_v7 = vld [vmem:[#allocation10 + $0x10] sm:$0x3]  ;;  %v4121_v3 = vld [vmem:[#allocation10] sm:$0xfc] }
 0xbb3   :  { %v3694_v8 = vld [vmem:[#allocation10 + $0x8] sm:$0xfe]  ;;  %v3695_v9 = vld [vmem:[#allocation10 + $0x10] sm:$0x7]  ;;  %v3690_v11 = vld [vmem:[#allocation10 + $0x18] sm:$0x3]  ;;  %v3691_v19 = vpack.c.bf16 %v3689_v7, %v3687_v55 }
 0xbb4   :  { %v4124_v12 = vld [vmem:[#allocation10 + $0x18] sm:$0xf]  ;;  %v3697_v14 = vpack.c.bf16 %v3695_v9, %v3693_v6  ;;  %v3692_v15 = vpack.c.bf16 %v3690_v11, %v3688_v4  ;;  %v4123_v57 = vld [vmem:[#allocation10 + $0x10] sm:$0xf] }
 0xbb5   :  { %v3696_v13 = vld [vmem:[#allocation10 + $0x18] sm:$0x7]  ;;  %v4126_v17 = vpack.c.bf16 %v4124_v12, %v4122_v5  ;;  %v4125_v4 = vpack.c.bf16 %v4123_v57, %v4121_v3  ;;  %v4836_v6 = vld [vmem:[%s7175_s9 + $0x12] ss:$8 sm:$0x3] }
 0xbb6   :  { %v3698_v18 = vpack.c.bf16 %v3696_v13, %v3694_v8  ;;  %v3702_v21 = vshll.u32 %v3697_v14, 16  ;;  %4110 = vmatprep.mubr.bf16.mxu0 %v3692_v15  ;;  %v3700_v28 = vshrl.u32 %v3697_v14, 16  ;;  %v3459_v7 = vrot.slane %v4836_v6, %v7019_v46 }
 0xbb7   :  { %v4130_v22 = vrot.slane %v4126_v17, 1  ;;  %4111 = vmatmul.mubr.bf16.vlgmr.msra.gmra.mrb[60].mxu0 %v3691_v19  ;;  %v4129_v5 = vrot.slane %v4125_v4, 1  ;;  %v3463_v8 = vrot.slane %v4836_v6, %v7024_v63 }
 0xbb8   :  { %v3709_v23 = vshll.u32 %v3698_v18, 16  ;;  %v3704_v24 = vrot.slane %v3702_v21, 1  ;;  %4294 = vmatpush1.bf16.msra.mxu0 %v6068_v16  ;;  %v3707_v26 = vshrl.u32 %v3698_v18, 16  ;;  %v5013_v21 = vld [vmem:[%s7175_s9 + $0x13] ss:$8 sm:$0x3] }
 0xbb9   :  { %4325 = vmatprep.mubr.bf16.mxu0 %v4130_v22  ;;  %4295 = vmatprep.subr.bf16.mxu0 %v6076_v20  ;;  %v4346_v22 = vrot.slane %v5013_v21, %v7019_v46 }
 0xbba   :  { %v3711_v27 = vrot.slane %v3709_v23, 1  ;;  %v3705_v32 = vor.u32 %v3704_v24, %v3700_v28  ;;  %v4350_v28 = vrot.slane %v5013_v21, %v7024_v63 }
 0xbbc   :  { %v3712_v30 = vor.u32 %v3711_v27, %v3707_v26  ;;  %4296 = vmatpush1.bf16.msra.mxu0 %v6074_v25 }
 0xbbd   :  { %4297 = vmatprep.subr.bf16.mxu0 %v6079_v29 }
 0xbbe   :  { %3907 = vmatprep.mubr.bf16.mxu1 %v3712_v30 }
 0xbbf   :  { %3908 = vmatmul.mubr.bf16.vlgmr.msra.gmra.mrb[56].mxu1 %v3705_v32 }
 0xbc0   :  { %5635 = vmatprep.mubr.msk.bf16.mxu1 %vm6305_vm1, %v7048_v36  ;;  %4298 = vmatpush1.bf16.msra.mxu0 %v6077_v34 }
 0xbc1   :  { %v3580_v38 = vpop.f32.mrb[56].mxu0  ;;  %4299 = vmatprep.subr.bf16.mxu0 %v6082_v35 }
 0xbc2   :  { %v3582_v40 = vpop.f32.mrb[57].mxu0  ;;  %v3581_v9 = vadd.f32 %v3580_v38, %v3459_v7 }
 0xbc3   :  { %v3584_v41 = vpop.f32.mrb[58].mxu0  ;;  %v3583_v11 = vadd.f32 %v3582_v40, %v3463_v8 }
 0xbc4   :  { %4300 = vmatpush1.bf16.msra.mxu0 %v6080_v37  ;;  %v3586_v42 = vpop.f32.mrb[59].mxu0  ;;  %v3585_v13 = vadd.f32 %v3584_v41, %v3459_v7  ;;  %v6119_v41 = vld [vmem:[#allocation20 + $0x20] sm:$0xff]  }
 0xbc5   :  { %4301 = vmatprep.subr.bf16.mxu0 %v6085_v39  ;;  %v3587_v16 = vadd.f32 %v3586_v42, %v3463_v8  ;;  %5628 = vmatpush3.bf16.msra.mxu1 %v6119_v41  ;;  %v6123_v7 = vld [vmem:[#allocation20] sm:$0xff]  }
 0xbc6   :  { %5629 = vmatprep.subr.bf16.mxu1 %v7048_v36 }
 0xbc8   :  { %4302 = vmatpush1.bf16.msra.mxu0 %v6083_v43 }
 0xbc9   :  { %4303 = vmatprep.subr.bf16.mxu0 %v6088_v60  ;;  %v6120_v60 = vld [vmem:[#allocation20 + $0x28] sm:$0xff]  }
 0xbca   :  { %5630 = vmatpush3.bf16.msra.mxu1 %v6120_v60 }
 0xbcb   :  { %5631 = vmatprep.subr.bf16.mxu1 %v7048_v36 }
 0xbcc   :  { %4304 = vmatpush1.bf16.msra.mxu0 %v6086_v44  ;;  %v6121_v44 = vld [vmem:[#allocation20 + $0x30] sm:$0xff]  }
 0xbcd   :  { %4305 = vmatprep.subr.bf16.mxu0 %v6091_v45  ;;  %v6122_v45 = vld [vmem:[#allocation20 + $0x38] sm:$0xff]  }
 0xbce   :  { %5632 = vmatpush3.bf16.msra.mxu1 %v6121_v44 }
 0xbcf   :  { %5633 = vmatprep.subr.bf16.mxu1 %v7048_v36 }
 0xbd0   :  { %4306 = vmatpush1.bf16.msra.mxu0 %v6089_v47 }
 0xbd1   :  { %4307 = vmatprep.subr.bf16.mxu0 %v6094_v48 }
 0xbd2   :  { %5634 = vmatpush3.bf16.msra.mxu1 %v6122_v45 }
 0xbd3   :  { %5639 = vmatprep.subr.bf16.mxu1 %v7048_v36 }
 0xbd4   :  { %4308 = vmatpush1.bf16.msra.mxu0 %v6092_v49 }
 0xbd5   :  { %4309 = vmatprep.subr.bf16.mxu0 %v6097_v50 }
 0xbd8   :  { %4310 = vmatpush1.bf16.msra.mxu0 %v6095_v51 }
 0xbd9   :  { %4311 = vmatprep.subr.bf16.mxu0 %v6100_v52 }
 0xbdc   :  { %4312 = vmatpush1.bf16.msra.mxu0 %v6098_v53 }
 0xbdd   :  { %4313 = vmatprep.subr.bf16.mxu0 %v6103_v31 }
 0xbe0   :  { %4314 = vmatpush1.bf16.msra.mxu0 %v6101_v54 }
 0xbe1   :  { %4315 = vmatprep.subr.bf16.mxu0 %v6106_v56 }
 0xbe4   :  { %4316 = vmatpush1.bf16.msra.mxu0 %v6104_v10 }
 0xbe5   :  { %4317 = vmatprep.subr.bf16.mxu0 %v6109_v58 }
 0xbe8   :  { %4318 = vmatpush1.bf16.msra.mxu0 %v6107_v59 }
 0xbe9   :  { %4319 = vmatprep.subr.bf16.mxu0 %v6112_v61 }
 0xbec   :  { %4320 = vmatpush1.bf16.msra.mxu0 %v6110_v33 }
 0xbed   :  { %4321 = vmatprep.subr.bf16.mxu0 %v6115_v62 }
 0xbf0   :  { %4322 = vmatpush1.bf16.msra.mxu0 %v6113_v0 }
 0xbf1   :  { %4323 = vmatprep.subr.bf16.mxu0 %v6118_v1 }
 0xbf4   :  { %4324 = vmatpush1.bf16.msra.mxu0 %v6116_v2 }
 0xbf7   :  { %4326 = vmatmul.mubr.bf16.vlgmr.msra.gmra.mrb[60].mxu0 %v4129_v5 }
 0xc92   :  { %v3909_v12 = vpop.f32.mrb[56].mxu1 }
 0xc93   :  { %v5660_v14 = vadd.f32 %v3909_v12, %v3581_v9  ;;  %v3911_v15 = vpop.f32.mrb[57].mxu1 }
 0xc94   :  { %v5664_v55 = vadd.f32 %v3911_v15, %v3583_v11  ;;  %v3913_v17 = vpop.f32.mrb[58].mxu1  ;;  %v6124_v11 = vld [vmem:[#allocation20 + $0x8] sm:$0xff]   ;;  %v6126_v15 = vld [vmem:[#allocation20 + $0x18] sm:$0xff]  }
 0xc95   :  { %v5668_v18 = vadd.f32 %v3913_v17, %v3585_v13  ;;  %v3915_v19 = vpop.f32.mrb[59].mxu1  ;;  %v6125_v13 = vld [vmem:[#allocation20 + $0x10] sm:$0xff]  }
 0xc96   :  { %v5672_v20 = vadd.f32 %v3915_v19, %v3587_v16 }
 0xcca   :  { %v4327_v23 = vpop.f32.mrb[60].mxu0 }
 0xccb   :  { %v5661_v24 = vadd.f32 %v5660_v14, %v4327_v23  ;;  %v4329_v25 = vpop.f32.mrb[61].mxu0 }
 0xccc   :  { %v5665_v26 = vadd.f32 %v5664_v55, %v4329_v25  ;;  %v4331_v27 = vpop.f32.mrb[62].mxu0 }
 0xccd   :  { %v5669_v29 = vadd.f32 %v5668_v18, %v4331_v27  ;;  %v4333_v30 = vpop.f32.mrb[63].mxu0  ;;  %v5662_v32 = vadd.f32 %v5661_v24, %v4346_v22 }
 0xcce   :  { %v5673_v34 = vadd.f32 %v5672_v20, %v4333_v30  ;;  %v5666_v38 = vadd.f32 %v5665_v26, %v4350_v28 }
 0xccf   :  { %v5670_v35 = vadd.f32 %v5669_v29, %v4346_v22  ;;  %v4361_v39 = vmax.f32 %v5662_v32, 0.0  ;;  %v4557_v22 = vld [vmem:[%s7175_s9 + $0x14] ss:$0 sm:$0xff] }
 0xcd0   :  { %v5674_v37 = vadd.f32 %v5673_v34, %v4350_v28  ;;  %v4362_v46 = vmax.f32 %v5666_v38, 0.0 }
 0xcd1   :  { %v4363_v40 = vmax.f32 %v5670_v35, 0.0 }
 0xcd2   :  { %v4364_v42 = vmax.f32 %v5674_v37, 0.0 }
 0xcd3   :  { %v5733_v43 = vpack.i.bf16 %v4363_v40, %v4361_v39 }
 0xcd4   :  { %v5738_v63 = vpack.i.bf16 %v4364_v42, %v4362_v46 }
 0xcd5   :  { %5734 = vrot.lane.b32.xlu0 %v5733_v43, %s6296_s29 }
 0xcd9   :  { %5739 = vrot.lane.b32.xlu0 %v5738_v63, %s6296_s29 }
 0xd47   :  { %v5735_v47 = vpop.permute.xlu0 %5734 }
 0xd48   :  { %v5737_v48 = vunpack.i.h.bf16 %v5735_v47  ;;  %v5736_v49 = vunpack.i.l.bf16 %v5735_v47 }
 0xd4a   :  { %v4374_v53 = vmax.f32 %v4363_v40, %v5737_v48  ;;  %v4373_v31 = vmax.f32 %v4361_v39, %v5736_v49 }
 0xd4b   :  { %v5740_v50 = vpop.permute.xlu0 %5739 }
 0xd4c   :  { %v5742_v51 = vunpack.i.h.bf16 %v5740_v50  ;;  %v5741_v52 = vunpack.i.l.bf16 %v5740_v50 }
 0xd4e   :  { %v4384_v54 = vmax.f32 %v4364_v42, %v5742_v51  ;;  %v4383_v56 = vmax.f32 %v4362_v46, %v5741_v52 }
 0xd50   :  { %v4386_v10 = vmax.f32 %v4374_v53, %v4384_v54  ;;  %v4385_v58 = vmax.f32 %v4373_v31, %v4383_v56 }
 0xd52   :  { %v4397_v59 = vsel %vm968_vm6, %v4386_v10, -inf  ;;  %v4396_v61 = vsel %vm4395_vm11, %v4385_v58, -inf  ;;  %v4388_v0 = vsel %vm4387_vm12, %v4385_v58, -inf }
 0xd53   :  { %v4398_v33 = vmax.f32 %v4396_v61, %v4397_v59  ;;  %v4389_v57 = vrot.slane %v4388_v0, 4 }
 0xd55   :  { %v4399_v62 = vrot.slane %v4398_v33, 4  ;;  %v4390_v4 = vmax.f32 %v4388_v0, %v4389_v57 }
 0xd57   :  { %v4400_v1 = vmax.f32 %v4398_v33, %v4399_v62  ;;  %v4391_v8 = vrot.slane %v4390_v4, 2 }
 0xd59   :  { %v4401_v2 = vrot.slane %v4400_v1, 2  ;;  %v4392_v12 = vmax.f32 %v4390_v4, %v4391_v8 }
 0xd5b   :  { %v4402_v3 = vmax.f32 %v4400_v1, %v4401_v2  ;;  %v4393_v14 = vrot.slane %v4392_v12, 1 }
 0xd5d   :  { %v4403_v5 = vrot.slane %v4402_v3, 1  ;;  %v4394_v16 = vmax.f32 %v4392_v12, %v4393_v14 }
 0xd5f   :  { %v4404_v6 = vmax.f32 %v4402_v3, %v4403_v5  ;;  %v4405_v55 = vpack.c.bf16 %v4394_v16, %v4394_v16 }
 0xd61   :  { %v4414_v9 = vpack.c.bf16 %v4404_v6, %v4404_v6 }
 0xd63   :  { %5636 = vmatmul.mubr.msk.bf16.vlgmr.msra.gmra.mrb[60].mxu1 %vm131_vm0, %v4414_v9 }
 0xd64   :  { %5640 = vmatpush3.bf16.msra.mxu1 %v6123_v7  ;;  %5647 = vmatprep.mubr.msk.bf16.mxu1 %vm6305_vm1, %v7048_v36 }
 0xd65   :  { %5641 = vmatprep.subr.bf16.mxu1 %v7048_v36 }
 0xd68   :  { %5642 = vmatpush3.bf16.msra.mxu1 %v6124_v11 }
 0xd69   :  { %5643 = vmatprep.subr.bf16.mxu1 %v7048_v36 }
 0xd6c   :  { %5644 = vmatpush3.bf16.msra.mxu1 %v6125_v13 }
 0xd6d   :  { %5645 = vmatprep.subr.bf16.mxu1 %v7048_v36 }
 0xd70   :  { %5646 = vmatpush3.bf16.msra.mxu1 %v6126_v15 }
 0xd73   :  { %5648 = vmatmul.mubr.msk.bf16.vlgmr.msra.gmra.mrb[64].mxu1 %vm131_vm0, %v4405_v55 }
 0xe36   :  { %v4484_v17 = vpop.f32.mrb[60].mxu1 }
 0xe37   :  { %v5637_v18 = vpop.f32.mrb[61].mxu1 }
 0xe38   :  { %v4487_v19 = vpop.f32.mrb[62].mxu1 }
 0xe39   :  { %v5638_v20 = vpop.f32.mrb[63].mxu1 }
 0xe46   :  { %v4551_v21 = vpop.f32.mrb[64].mxu1 }
 0xe47   :  { %v4552_v23 = vadd.f32 %v4551_v21, %v4484_v17  ;;  %v5649_v24 = vpop.f32.mrb[65].mxu1 }
 0xe48   :  { %v4554_v25 = vpop.f32.mrb[66].mxu1 }
 0xe49   :  { %v4558_v36 = vadd.f32 %v4557_v22, %v4552_v23  ;;  %v5650_v26 = vpop.f32.mrb[67].mxu1 }
 0xe4b   :  { %4560 = vst.msk [vmem:[#allocation22] sm:$0x1] %vm4559_vm13, %v4558_v36 }
 0xe4c   :  { %6273 = shalt.err (!%p6270_p10)
}
 0xe4d   :  { %s6274_s28 = scalar_lea.hbm %s7177_s11, 16 }
 0xe4e   :  { %p6275_p11 = scmp.ne.s32.totalorder %s7177_s11, %s6274_s28  ;;  %p6278_p12 = scmp.lt.u32.totalorder %s6274_s28, %s7177_s11 }
 0xe50   :  { %p6280_p13 = pnand %p6278_p12, %p6275_p11 }
 0xe52   :  { %6283 = shalt.err (!%p6280_p13)
}
 0xe53   :  { %4570 = dma.vmem_to_hbm [thread:$0]  %s4568_s18, 16, %s7177_s11, [#allocation13]  }
 0xe54   :  { %6292 = dma.done.wait [#allocation13], 16  }
 0xe55   :  { %6293 = vsyncadd [#allocation13], 4294967280 }
 0xe56   :  { %4574 = vsyncpa [#allocation12], 1 }
 0xe57   :  { %4575 = vsyncpa [#allocation15], 1 }
 0xe58   :  { %4576 = vsyncpa [#allocation18], 1 }
 0xe59   :  { %4577 = vsyncpa [#allocation21], 1 }
 0xe5a   :  { %4578 = vsyncpa [#allocation13], 1 }

</bundles_post_ra>
